<compile_context>
chip_gen: v7x
topology: tpu7x:2x2x1
jax: 0.10.0
libtpu: 0.0.40
codegen_flags: <defaults>
</compile_context>

<pallas_src>
import functools

import jax
import jax.numpy as jnp
from jax.experimental import pallas as pl
from jax.experimental.pallas import tpu as pltpu


# ----------------------------------------------------------------------------
# Fused Conv2dLSTMCell kernel
# ----------------------------------------------------------------------------
def _lstm_cell_kernel(xp_ref, cell_ref, w_ref, b_ref, cell_out_ref, hid_out_ref,
                      *, ksize, wp, rows, cout, matmul_dtype):
    # xp_ref:   (1, L, Ctot)        zero-padded [hidden, x] slab, row-major flat
    # cell_ref: (1, R, Cout)        previous cell state, "wide" spatial layout
    # w_ref:    (k*k*Ctot, 4*Cout)  packed gate weights (bf16)
    # b_ref:    (1, 4*Cout)         packed gate biases (f32)
    # outputs:  (1, R, Cout)        new cell / new hidden, "wide" layout
    taps = []
    for dy in range(ksize):
        for dx in range(ksize):
            off = dy * wp + dx                       # static flat offset of tap
            taps.append(xp_ref[0, off:off + rows, :])
    patches = jnp.concatenate(taps, axis=-1)         # (R, k*k*Ctot), in VMEM/vregs

    # One MXU matmul for all four gates (K = k*k*Ctot, N = 4*Cout lanes).
    gates = jnp.dot(patches.astype(matmul_dtype), w_ref[...],
                    preferred_element_type=jnp.float32)
    gates = gates + b_ref[...]                       # f32 epilogue

    f_gate = jax.nn.sigmoid(gates[:, 0 * cout:1 * cout])
    i_gate = jax.nn.sigmoid(gates[:, 1 * cout:2 * cout])
    o_gate = jax.nn.sigmoid(gates[:, 2 * cout:3 * cout])
    g_gate = jnp.tanh(gates[:, 3 * cout:4 * cout])

    c_new = f_gate * cell_ref[0] + i_gate * g_gate
    cell_out_ref[0] = c_new
    hid_out_ref[0] = o_gate * jnp.tanh(c_new)


def conv2d_lstm_cell(x, states, params, *, ksize=3):
    """One Conv2dLSTMCell step. x: (N,H,W,Cin); states: (cell, hidden) NHWC."""
    cell, hidden = states
    n, h, w_dim, cin = x.shape
    cout = cell.shape[-1]
    ctot = cin + cout
    p = ksize // 2
    wp = w_dim + 2 * p
    rows = h * wp                                     # "wide" spatial row count

    # torch.cat((hidden, input), dim=1)  ->  channels-last concat, hidden first.
    xcat = jnp.concatenate([hidden, x], axis=-1)
    # Zero pad p on each side plus ONE extra bottom row so the flat window of the
    # last tap (offset (k-1)*Wp + (k-1)) stays in bounds.
    xp4 = jnp.pad(xcat, ((0, 0), (p, p + 1), (p, p), (0, 0)))
    l_pad = xp4.shape[1] * xp4.shape[2]
    xp = xp4.reshape(n, l_pad, ctot)
    # Previous cell state in the "wide" layout: right-pad W to Wp and flatten.
    cell_w = jnp.pad(cell, ((0, 0), (0, 0), (0, 2 * p), (0, 0))).reshape(n, rows, cout)

    w_pk, b_pk = params["w"], params["b"]
    kern = functools.partial(_lstm_cell_kernel, ksize=ksize, wp=wp, rows=rows,
                             cout=cout, matmul_dtype=w_pk.dtype)
    cell_new, hidden_new = pl.pallas_call(
        kern,
        out_shape=(jax.ShapeDtypeStruct((n, rows, cout), jnp.float32),
                   jax.ShapeDtypeStruct((n, rows, cout), jnp.float32)),
        grid=(n,),
        in_specs=[
            pl.BlockSpec((1, l_pad, ctot), lambda b: (b, 0, 0)),
            pl.BlockSpec((1, rows, cout), lambda b: (b, 0, 0)),
            pl.BlockSpec(w_pk.shape, lambda b: (0, 0)),
            pl.BlockSpec(b_pk.shape, lambda b: (0, 0)),
        ],
        out_specs=(pl.BlockSpec((1, rows, cout), lambda b: (b, 0, 0)),
                   pl.BlockSpec((1, rows, cout), lambda b: (b, 0, 0))),
        compiler_params=pltpu.CompilerParams(dimension_semantics=("parallel",)),
    )(xp, cell_w, w_pk, b_pk)

    # Drop the 2p garbage columns of the wide layout.
    cell_new = cell_new.reshape(n, h, wp, cout)[:, :, :w_dim, :]
    hidden_new = hidden_new.reshape(n, h, wp, cout)[:, :, :w_dim, :]
    return cell_new, hidden_new


# ----------------------------------------------------------------------------
# Deterministic synthetic parameters (PyTorch Conv2d default-init style)
# ----------------------------------------------------------------------------
def conv2d_lstm_cell_init(key, in_channels, out_channels, ksize=3,
                          matmul_dtype=jnp.bfloat16):
    """Packed layout (also how real PyTorch weights would be loaded): each gate's
    conv weight (Cout, Ctot, kh, kw) -- Ctot channel order [hidden, input],
    matching torch.cat((hidden, input), dim=1) -- is permuted to (kh, kw, Ctot,
    Cout); the 4 gates [forget, input, output, state] are stacked along columns:
    w_packed[(dy*k + dx)*Ctot + c, gate*Cout + oc]."""
    ctot = in_channels + out_channels
    kk = ksize * ksize
    kw_key, kb_key = jax.random.split(key)
    bound = 1.0 / float(ctot * kk) ** 0.5
    w_raw = jax.random.uniform(kw_key, (4, out_channels, ctot, ksize, ksize),
                               jnp.float32, -bound, bound)
    b_raw = jax.random.uniform(kb_key, (4, out_channels), jnp.float32, -bound, bound)
    w_packed = jnp.transpose(w_raw, (3, 4, 2, 0, 1)).reshape(kk * ctot,
                                                             4 * out_channels)
    b_packed = b_raw.reshape(1, 4 * out_channels)
    return {"w": w_packed.astype(matmul_dtype), "b": b_packed,
            "w_raw": w_raw, "b_raw": b_raw}


# ----------------------------------------------------------------------------
# Pure-JAX reference (mirrors the PyTorch forward), for validation
# ----------------------------------------------------------------------------
def conv2d_lstm_cell_reference(x, states, params, *, ksize=3):
    cell, hidden = states
    xcat = jnp.concatenate([hidden, x], axis=-1)

    def conv(gate):
        k_hwio = jnp.transpose(params["w_raw"][gate], (2, 3, 1, 0))
        y = jax.lax.conv_general_dilated(
            xcat, k_hwio, window_strides=(1, 1), padding="SAME",
            dimension_numbers=("NHWC", "HWIO", "NHWC"),
            precision=jax.lax.Precision.HIGHEST)
        return y + params["b_raw"][gate]

    forget_gate = jax.nn.sigmoid(conv(0))
    input_gate = jax.nn.sigmoid(conv(1))
    output_gate = jax.nn.sigmoid(conv(2))
    state_gate = jnp.tanh(conv(3))
    cell_new = forget_gate * cell + input_gate * state_gate
    hidden_new = output_gate * jnp.tanh(cell_new)
    return cell_new, hidden_new


if __name__ == "__main__":
    key = jax.random.PRNGKey(0)
    k_p, k_x, k_c, k_h = jax.random.split(key, 4)

    n, h, w = 2, 16, 16
    in_channels, out_channels = 4, 32     # 4*Cout = 128 -> full-width gate matmul

    params = conv2d_lstm_cell_init(k_p, in_channels, out_channels)
    # NHWC inputs (a PyTorch NCHW input would be x.transpose(0, 2, 3, 1))
    x = jax.random.normal(k_x, (n, h, w, in_channels), jnp.float32)
    cell0 = jax.random.normal(k_c, (n, h, w, out_channels), jnp.float32)
    hidden0 = jax.random.normal(k_h, (n, h, w, out_channels), jnp.float32)

    step = jax.jit(functools.partial(conv2d_lstm_cell, ksize=3))
    cell1, hidden1 = step(x, (cell0, hidden0), params)
    jax.block_until_ready((cell1, hidden1))

    assert cell1.shape == (n, h, w, out_channels), cell1.shape
    assert hidden1.shape == (n, h, w, out_channels), hidden1.shape
    assert bool(jnp.all(jnp.isfinite(cell1)))
    assert bool(jnp.all(jnp.isfinite(hidden1)))

    # Validate against the pure-JAX reference (bf16 MXU operands -> loose tol).
    cell_ref, hidden_ref = conv2d_lstm_cell_reference(x, (cell0, hidden0), params,
                                                      ksize=3)
    err = max(float(jnp.max(jnp.abs(cell1 - cell_ref))),
              float(jnp.max(jnp.abs(hidden1 - hidden_ref))))
    assert err < 5e-2, f"max abs error vs reference: {err}"

    print("KERNEL_OK")
</pallas_src>

<mosaic_0001>
module attributes {stable_mosaic.version = 11 : i64} {
  func.func @_lstm_cell_kernel(%arg0: i32, %arg1: memref<1x342x36xf32, #tpu.memory_space<vmem>>, %arg2: memref<1x288x32xf32, #tpu.memory_space<vmem>>, %arg3: memref<324x128xbf16, #tpu.memory_space<vmem>>, %arg4: memref<1x128xf32, #tpu.memory_space<vmem>>, %arg5: memref<1x288x32xf32, #tpu.memory_space<vmem>>, %arg6: memref<1x288x32xf32, #tpu.memory_space<vmem>>) attributes {dimension_semantics = [#tpu.dimension_semantics<parallel>], iteration_bounds = array<i64: 2>, scalar_prefetch = 0 : i64, scratch_operands = 0 : i64, tpu.core_type = #tpu.core_type<tc>, window_params = [{transform_indices = @transform_0, window_bounds = array<i64: 1, 342, 36>}, {transform_indices = @transform_1, window_bounds = array<i64: 1, 288, 32>}, {pipeline_mode = #tpu.pipeline_mode<synchronous>, transform_indices = @transform_2, window_bounds = array<i64: 324, 128>}, {pipeline_mode = #tpu.pipeline_mode<synchronous>, transform_indices = @transform_3, window_bounds = array<i64: 1, 128>}, {transform_indices = @transform_4, window_bounds = array<i64: 1, 288, 32>}, {transform_indices = @transform_5, window_bounds = array<i64: 1, 288, 32>}]} {
    %c0 = arith.constant 0 : index
    %c0_0 = arith.constant 0 : index
    %c0_1 = arith.constant 0 : index
    %0 = vector.load %arg1[%c0, %c0_0, %c0_1] : memref<1x342x36xf32, #tpu.memory_space<vmem>>, vector<1x288x36xf32>
    %1 = vector.shape_cast %0 : vector<1x288x36xf32> to vector<288x36xf32>
    %c0_2 = arith.constant 0 : index
    %c1 = arith.constant 1 : index
    %c0_3 = arith.constant 0 : index
    %2 = vector.load %arg1[%c0_2, %c1, %c0_3] : memref<1x342x36xf32, #tpu.memory_space<vmem>>, vector<1x288x36xf32>
    %3 = vector.shape_cast %2 : vector<1x288x36xf32> to vector<288x36xf32>
    %c0_4 = arith.constant 0 : index
    %c2 = arith.constant 2 : index
    %c0_5 = arith.constant 0 : index
    %4 = vector.load %arg1[%c0_4, %c2, %c0_5] : memref<1x342x36xf32, #tpu.memory_space<vmem>>, vector<1x288x36xf32>
    %5 = vector.shape_cast %4 : vector<1x288x36xf32> to vector<288x36xf32>
    %c0_6 = arith.constant 0 : index
    %c18 = arith.constant 18 : index
    %c0_7 = arith.constant 0 : index
    %6 = vector.load %arg1[%c0_6, %c18, %c0_7] : memref<1x342x36xf32, #tpu.memory_space<vmem>>, vector<1x288x36xf32>
    %7 = vector.shape_cast %6 : vector<1x288x36xf32> to vector<288x36xf32>
    %c0_8 = arith.constant 0 : index
    %c19 = arith.constant 19 : index
    %c0_9 = arith.constant 0 : index
    %8 = vector.load %arg1[%c0_8, %c19, %c0_9] : memref<1x342x36xf32, #tpu.memory_space<vmem>>, vector<1x288x36xf32>
    %9 = vector.shape_cast %8 : vector<1x288x36xf32> to vector<288x36xf32>
    %c0_10 = arith.constant 0 : index
    %c20 = arith.constant 20 : index
    %c0_11 = arith.constant 0 : index
    %10 = vector.load %arg1[%c0_10, %c20, %c0_11] : memref<1x342x36xf32, #tpu.memory_space<vmem>>, vector<1x288x36xf32>
    %11 = vector.shape_cast %10 : vector<1x288x36xf32> to vector<288x36xf32>
    %c0_12 = arith.constant 0 : index
    %c36 = arith.constant 36 : index
    %c0_13 = arith.constant 0 : index
    %12 = vector.load %arg1[%c0_12, %c36, %c0_13] : memref<1x342x36xf32, #tpu.memory_space<vmem>>, vector<1x288x36xf32>
    %13 = vector.shape_cast %12 : vector<1x288x36xf32> to vector<288x36xf32>
    %c0_14 = arith.constant 0 : index
    %c37 = arith.constant 37 : index
    %c0_15 = arith.constant 0 : index
    %14 = vector.load %arg1[%c0_14, %c37, %c0_15] : memref<1x342x36xf32, #tpu.memory_space<vmem>>, vector<1x288x36xf32>
    %15 = vector.shape_cast %14 : vector<1x288x36xf32> to vector<288x36xf32>
    %c0_16 = arith.constant 0 : index
    %c38 = arith.constant 38 : index
    %c0_17 = arith.constant 0 : index
    %16 = vector.load %arg1[%c0_16, %c38, %c0_17] : memref<1x342x36xf32, #tpu.memory_space<vmem>>, vector<1x288x36xf32>
    %17 = vector.shape_cast %16 : vector<1x288x36xf32> to vector<288x36xf32>
    %18 = tpu.concatenate %1, %3, %5, %7, %9, %11, %13, %15, %17 in 1 : vector<288x36xf32>, vector<288x36xf32>, vector<288x36xf32>, vector<288x36xf32>, vector<288x36xf32>, vector<288x36xf32>, vector<288x36xf32>, vector<288x36xf32>, vector<288x36xf32> -> vector<288x324xf32>
    %19 = arith.truncf %18 : vector<288x324xf32> to vector<288x324xbf16>
    %c0_18 = arith.constant 0 : index
    %c0_19 = arith.constant 0 : index
    %20 = vector.load %arg3[%c0_18, %c0_19] : memref<324x128xbf16, #tpu.memory_space<vmem>>, vector<324x128xbf16>
    %cst = arith.constant dense<0.000000e+00> : vector<288x128xf32>
    %21 = tpu.matmul %19, %20, %cst {dimension_numbers = #tpu.dot_dimension_numbers<[1], [0], [0], [1], [0, 0, 1, 1], [], []>} : vector<288x324xbf16>, vector<324x128xbf16>, vector<288x128xf32> -> vector<288x128xf32>
    %c0_20 = arith.constant 0 : index
    %c0_21 = arith.constant 0 : index
    %22 = vector.load %arg4[%c0_20, %c0_21] : memref<1x128xf32, #tpu.memory_space<vmem>>, vector<1x128xf32>
    %23 = vector.broadcast %22 : vector<1x128xf32> to vector<288x128xf32>
    %24 = arith.addf %21, %23 : vector<288x128xf32>
    %25 = vector.extract_strided_slice %24 {offsets = [0, 0], sizes = [288, 32], strides = [1, 1]} : vector<288x128xf32> to vector<288x32xf32>
    %26 = arith.negf %25 : vector<288x32xf32>
    %27 = math.exp %26 : vector<288x32xf32>
    %cst_22 = arith.constant 1.000000e+00 : f32
    %28 = vector.broadcast %cst_22 : f32 to vector<288x32xf32>
    %29 = arith.addf %28, %27 : vector<288x32xf32>
    %30 = arith.divf %28, %29 : vector<288x32xf32>
    %31 = vector.extract_strided_slice %24 {offsets = [0, 32], sizes = [288, 32], strides = [1, 1]} : vector<288x128xf32> to vector<288x32xf32>
    %32 = arith.negf %31 : vector<288x32xf32>
    %33 = math.exp %32 : vector<288x32xf32>
    %cst_23 = arith.constant 1.000000e+00 : f32
    %34 = vector.broadcast %cst_23 : f32 to vector<288x32xf32>
    %35 = arith.addf %34, %33 : vector<288x32xf32>
    %36 = arith.divf %34, %35 : vector<288x32xf32>
    %37 = vector.extract_strided_slice %24 {offsets = [0, 64], sizes = [288, 32], strides = [1, 1]} : vector<288x128xf32> to vector<288x32xf32>
    %38 = arith.negf %37 : vector<288x32xf32>
    %39 = math.exp %38 : vector<288x32xf32>
    %cst_24 = arith.constant 1.000000e+00 : f32
    %40 = vector.broadcast %cst_24 : f32 to vector<288x32xf32>
    %41 = arith.addf %40, %39 : vector<288x32xf32>
    %42 = arith.divf %40, %41 : vector<288x32xf32>
    %43 = vector.extract_strided_slice %24 {offsets = [0, 96], sizes = [288, 32], strides = [1, 1]} : vector<288x128xf32> to vector<288x32xf32>
    %44 = math.tanh %43 : vector<288x32xf32>
    %c0_25 = arith.constant 0 : index
    %c0_26 = arith.constant 0 : index
    %c0_27 = arith.constant 0 : index
    %45 = vector.load %arg2[%c0_25, %c0_26, %c0_27] : memref<1x288x32xf32, #tpu.memory_space<vmem>>, vector<1x288x32xf32>
    %46 = vector.shape_cast %45 : vector<1x288x32xf32> to vector<288x32xf32>
    %47 = arith.mulf %30, %46 : vector<288x32xf32>
    %48 = arith.mulf %36, %44 : vector<288x32xf32>
    %49 = arith.addf %47, %48 : vector<288x32xf32>
    %c0_28 = arith.constant 0 : index
    %c0_29 = arith.constant 0 : index
    %c0_30 = arith.constant 0 : index
    %50 = vector.load %arg5[%c0_28, %c0_29, %c0_30] : memref<1x288x32xf32, #tpu.memory_space<vmem>>, vector<1x288x32xf32>
    %51 = vector.shape_cast %50 : vector<1x288x32xf32> to vector<288x32xf32>
    %52 = vector.shape_cast %49 : vector<288x32xf32> to vector<1x288x32xf32>
    tpu.vector_store %arg5[%c0_28, %c0_29, %c0_30], %52 {strides = array<i32>} : memref<1x288x32xf32, #tpu.memory_space<vmem>>, vector<1x288x32xf32>,
    %53 = math.tanh %49 : vector<288x32xf32>
    %54 = arith.mulf %42, %53 : vector<288x32xf32>
    %c0_31 = arith.constant 0 : index
    %c0_32 = arith.constant 0 : index
    %c0_33 = arith.constant 0 : index
    %55 = vector.load %arg6[%c0_31, %c0_32, %c0_33] : memref<1x288x32xf32, #tpu.memory_space<vmem>>, vector<1x288x32xf32>
    %56 = vector.shape_cast %55 : vector<1x288x32xf32> to vector<288x32xf32>
    %57 = vector.shape_cast %54 : vector<288x32xf32> to vector<1x288x32xf32>
    tpu.vector_store %arg6[%c0_31, %c0_32, %c0_33], %57 {strides = array<i32>} : memref<1x288x32xf32, #tpu.memory_space<vmem>>, vector<1x288x32xf32>,
    return
  }
  func.func @transform_0(%arg0: i32) -> (i32, i32, i32) {
    %c0_i32 = arith.constant 0 : i32
    %c0_i32_0 = arith.constant 0 : i32
    %c0_i32_1 = arith.constant 0 : i32
    return %arg0, %c0_i32, %c0_i32_0 : i32, i32, i32
  }
  func.func @transform_1(%arg0: i32) -> (i32, i32, i32) {
    %c0_i32 = arith.constant 0 : i32
    %c0_i32_0 = arith.constant 0 : i32
    %c0_i32_1 = arith.constant 0 : i32
    return %arg0, %c0_i32, %c0_i32_0 : i32, i32, i32
  }
  func.func @transform_2(%arg0: i32) -> (i32, i32) {
    %c0_i32 = arith.constant 0 : i32
    %c0_i32_0 = arith.constant 0 : i32
    %c0_i32_1 = arith.constant 0 : i32
    return %c0_i32, %c0_i32_0 : i32, i32
  }
  func.func @transform_3(%arg0: i32) -> (i32, i32) {
    %c0_i32 = arith.constant 0 : i32
    %c0_i32_0 = arith.constant 0 : i32
    %c0_i32_1 = arith.constant 0 : i32
    return %c0_i32, %c0_i32_0 : i32, i32
  }
  func.func @transform_4(%arg0: i32) -> (i32, i32, i32) {
    %c0_i32 = arith.constant 0 : i32
    %c0_i32_0 = arith.constant 0 : i32
    %c0_i32_1 = arith.constant 0 : i32
    return %arg0, %c0_i32, %c0_i32_0 : i32, i32, i32
  }
  func.func @transform_5(%arg0: i32) -> (i32, i32, i32) {
    %c0_i32 = arith.constant 0 : i32
    %c0_i32_0 = arith.constant 0 : i32
    %c0_i32_1 = arith.constant 0 : i32
    return %arg0, %c0_i32, %c0_i32_0 : i32, i32, i32
  }
}

</mosaic_0001>

<bundles_post_ra>
// kernel: conv2d_lstm_cell.1
= control target key start
LH: loop header
LB: loop body
LE: loop exit
PB: predicated region body
PF: predicated region fallthrough
CT: control target
= control target key end

     0   :  { %s5037_s18 = smov 0   ;;  %s7485_s0 = inlined_call_operand.vmem [shape: f32[2,342,36], index: 0, kind: input, shape index: {}]   ;;  %s7486_s1 = inlined_call_operand.vmem [shape: f32[2,288,32], index: 1, kind: input, shape index: {}]   ;;  %s7487_s2 = inlined_call_operand.vmem [shape: bf16[324,128], index: 2, kind: input, shape index: {}]   ;;  %s7488_s3 = inlined_call_operand.vmem [shape: f32[1,128], index: 3, kind: input, shape index: {}]   ;;  %s7489_s4 = inlined_call_operand.vmem [shape: f32[2,288,32], index: 4, kind: output, shape index: {0}]   ;;  %s7490_s5 = inlined_call_operand.vmem [shape: f32[2,288,32], index: 5, kind: output, shape index: {1}]  }
   0x1 LB: > { %s3749_s19 = sadd.s32 4294967295, %s4994_s18   ;;  %p3753_p0 = scmp.ge.s32.totalorder %s4994_s18, 1  ;;  %s4994_s18 = sphi %s5037_s18, %s16_s18  }
   0x2   : > { %p200_p1 = scmp.lt.s32.totalorder %s4994_s18, 3 }
   0x4   : > { %p201_p2 = pnand %p3753_p0, %p200_p1 }
   0x6   : > { %204 = sbr.rel (%p201_p2) target bundleno = 1157 (0x485), region = 36 }
   0xd   : > { %p238_p3 = scmp.lt.s32.totalorder %s3749_s19, 1  ;;  %s4996_s24 = smov 36   ;;  %vm1599_vm0 = vcmask 293888   ;;  %vm1636_vm1 = vcmask 588800   ;;  %vm1673_vm2 = vcmask 883712   ;;  %vm1710_vm3 = vcmask 130048  }
   0xe   : > { %s4997_s25 = smov 72   ;;  %s4999_s13 = smov 108   ;;  %vm1747_vm4 = vcmask 424960   ;;  %vm1784_vm5 = vcmask 719872   ;;  %vm1821_vm6 = vcmask 1014784   ;;  %vm2175_vm7 = vcmask 1041408  }
   0xf   : > { %s7664_s19 = smov (!%p238_p3, %s3749_s19), 1  ;;  %s5000_s10 = smov 52   ;;  %vm1858_vm8 = vcmask 261120   ;;  %vm2120_vm9 = vcmask 556032  }
  0x10   : > { %s3938_s20 = smul.u32 344, %s7664_s19  ;;  %s5002_s14 = smov 124  }
  0x11   : > { %s5003_s15 = smov 88   ;;  %s5005_s6 = smov 64  }
  0x12   : > { %s5051_s23 = scalar_lea.vmem %s7485_s0, %s3938_s20  ;;  %s5004_s20 = smov 32  }
  0x13   : > { %v299_v0 = vld [vmem:[%s5051_s23 + $0x21] sm:$0xff]  ;;  %v300_v1 = vld [vmem:[%s5051_s23 + $0x29] sm:$0xff]  ;;  %v301_v5 = vld [vmem:[%s5051_s23 + $0x31] sm:$0xff]  ;;  %s5006_s7 = smov 96   ;;  %s7113_s8 = smul.u32 288, %s7664_s19 }
  0x14   : > { %v295_v2 = vld [vmem:[%s5051_s23 + $0x1] sm:$0xff]  ;;  %v3969_v3 = vpack.i.bf16 %v300_v1, %v299_v0  ;;  %v296_v4 = vld [vmem:[%s5051_s23 + $0x9] sm:$0xff]  ;;  %v302_v6 = vld [vmem:[%s5051_s23 + $0x39] sm:$0xff] }
  0x15   : > { %v3959_v7 = vpack.i.bf16 %v296_v4, %v295_v2  ;;  %v297_v8 = vld [vmem:[%s5051_s23 + $0x11] sm:$0xff]  ;;  %v298_v9 = vld [vmem:[%s5051_s23 + $0x19] sm:$0xff]  ;;  %v3974_v10 = vpack.i.bf16 %v302_v6, %v301_v5  ;;  %v303_v14 = vld [vmem:[%s5051_s23 + $0x41] sm:$0xff]  ;;  %s7127_s19 = scalar_lea.vmem %s7486_s1, %s7113_s8  ;;  %s7399_s16 = scalar_lea.vmem %s7490_s5, %s7113_s8 }
  0x16   : > { %3970 = vrot.lane.b32.xlu1 %v3969_v3, %s4996_s24  ;;  %v3964_v11 = vpack.i.bf16 %v298_v9, %v297_v8  ;;  %v305_v12 = vld [vmem:[%s5051_s23 + $0x51] sm:$0xff]  ;;  %v306_v13 = vld [vmem:[%s5051_s23 + $0x59] sm:$0xff]  ;;  %v304_v15 = vld [vmem:[%s5051_s23 + $0x49] sm:$0xff] }
  0x17   : > { %3960 = vrot.lane.b32.xlu0 %v3959_v7, %s4996_s24  ;;  %v3984_v16 = vpack.i.bf16 %v306_v13, %v305_v12  ;;  %v3979_v17 = vpack.i.bf16 %v304_v15, %v303_v14  ;;  %v309_v18 = vld [vmem:[%s5051_s23 + $0x71] sm:$0xff]  ;;  %v310_v19 = vld [vmem:[%s5051_s23 + $0x79] sm:$0xff]  ;;  %v307_v20 = vld [vmem:[%s5051_s23 + $0x61] sm:$0xff]  ;;  %v4998_v15 = vmov 0  }
  0x18   : > { %v308_v21 = vld [vmem:[%s5051_s23 + $0x69] sm:$0xff]  ;;  %v3994_v22 = vpack.i.bf16 %v310_v19, %v309_v18  ;;  %v313_v24 = vld [vmem:[%s5051_s23 + $0x91] sm:$0xff]  ;;  %v314_v25 = vld [vmem:[%s5051_s23 + $0x99] sm:$0xff]  ;;  %2179 = vmatprep.subr.bf16.mxu0 %v4998_v15  ;;  %3905 = vmatprep.subr.bf16.mxu1 %v4998_v15 }
  0x19   : > { %v3989_v23 = vpack.i.bf16 %v308_v21, %v307_v20  ;;  %v311_v26 = vld [vmem:[%s5051_s23 + $0x81] sm:$0xff]  ;;  %v312_v27 = vld [vmem:[%s5051_s23 + $0x89] sm:$0xff]  ;;  %v4004_v28 = vpack.i.bf16 %v314_v25, %v313_v24  ;;  %v317_v30 = vld [vmem:[%s5051_s23 + $0xb1] sm:$0xff] }
  0x1a   : > { %3975 = vrot.lane.b32.xlu1 %v3974_v10, %s4996_s24  ;;  %v3999_v29 = vpack.i.bf16 %v312_v27, %v311_v26  ;;  %v318_v31 = vld [vmem:[%s5051_s23 + $0xb9] sm:$0xff]  ;;  %v315_v32 = vld [vmem:[%s5051_s23 + $0xa1] sm:$0xff]  ;;  %v316_v33 = vld [vmem:[%s5051_s23 + $0xa9] sm:$0xff] }
  0x1b   : > { %3965 = vrot.lane.b32.xlu0 %v3964_v11, %s4996_s24  ;;  %v4014_v34 = vpack.i.bf16 %v318_v31, %v317_v30  ;;  %v4009_v35 = vpack.i.bf16 %v316_v33, %v315_v32  ;;  %v321_v36 = vld [vmem:[%s5051_s23 + $0xd1] sm:$0xff]  ;;  %v322_v37 = vld [vmem:[%s5051_s23 + $0xd9] sm:$0xff]  ;;  %v319_v38 = vld [vmem:[%s5051_s23 + $0xc1] sm:$0xff] }
  0x1c   : > { %v320_v39 = vld [vmem:[%s5051_s23 + $0xc9] sm:$0xff]  ;;  %v4024_v40 = vpack.i.bf16 %v322_v37, %v321_v36  ;;  %v325_v42 = vld [vmem:[%s5051_s23 + $0xf1] sm:$0xff]  ;;  %v326_v43 = vld [vmem:[%s5051_s23 + $0xf9] sm:$0xff] }
  0x1d   : > { %v4019_v41 = vpack.i.bf16 %v320_v39, %v319_v38  ;;  %v323_v44 = vld [vmem:[%s5051_s23 + $0xe1] sm:$0xff]  ;;  %v324_v45 = vld [vmem:[%s5051_s23 + $0xe9] sm:$0xff]  ;;  %v4034_v46 = vpack.i.bf16 %v326_v43, %v325_v42  ;;  %v329_v48 = vld [vmem:[%s5051_s23 + $0x111] sm:$0xff] }
  0x1e   : > { %3985 = vrot.lane.b32.xlu1 %v3984_v16, %s4996_s24  ;;  %v4029_v47 = vpack.i.bf16 %v324_v45, %v323_v44  ;;  %v330_v49 = vld [vmem:[%s5051_s23 + $0x119] sm:$0xff]  ;;  %v327_v50 = vld [vmem:[%s5051_s23 + $0x101] sm:$0xff]  ;;  %v328_v51 = vld [vmem:[%s5051_s23 + $0x109] sm:$0xff] }
  0x1f   : > { %3980 = vrot.lane.b32.xlu0 %v3979_v17, %s4996_s24  ;;  %v4044_v52 = vpack.i.bf16 %v330_v49, %v329_v48  ;;  %v433_v53 = vld [vmem:[%s5051_s23 + $0xf4] sm:$0xff]  ;;  %v434_v54 = vld [vmem:[%s5051_s23 + $0xfc] sm:$0xff]  ;;  %v4039_v55 = vpack.i.bf16 %v328_v51, %v327_v50  ;;  %v332_v60 = vld [vmem:[%s5051_s23 + $0xa] sm:$0xff] }
  0x20   : > { %v333_v56 = vld [vmem:[%s5051_s23 + $0x12] sm:$0xff]  ;;  %v334_v57 = vld [vmem:[%s5051_s23 + $0x1a] sm:$0xff]  ;;  %v5109_v58 = vpack.i.bf16 %v434_v54, %v433_v53  ;;  %v331_v59 = vld [vmem:[%s5051_s23 + $0x2] sm:$0xff] }
  0x21   : > { %v5114_v61 = vpack.i.bf16 %v334_v57, %v333_v56  ;;  %v4049_v62 = vpack.i.bf16 %v332_v60, %v331_v59  ;;  %v337_v63 = vld [vmem:[%s5051_s23 + $0x32] sm:$0xff]  ;;  %v338_v0 = vld [vmem:[%s5051_s23 + $0x3a] sm:$0xff]  ;;  %v335_v1 = vld [vmem:[%s5051_s23 + $0x22] sm:$0xff] }
  0x22   : > { %3995 = vrot.lane.b32.xlu1 %v3994_v22, %s4996_s24  ;;  %7547 = vst [vmem:[#allocation2_spill] sm:$0xff] %v5109_v58  ;;  %v336_v2 = vld [vmem:[%s5051_s23 + $0x2a] sm:$0xff]  ;;  %v5123_v3 = vpack.i.bf16 %v338_v0, %v337_v63  ;;  %v341_v5 = vld [vmem:[%s5051_s23 + $0x52] sm:$0xff]  ;;  %v342_v6 = vld [vmem:[%s5051_s23 + $0x5a] sm:$0xff] }
  0x23   : > { %3990 = vrot.lane.b32.xlu0 %v3989_v23, %s4996_s24  ;;  %v5126_v4 = vpack.i.bf16 %v336_v2, %v335_v1  ;;  %v339_v7 = vld [vmem:[%s5051_s23 + $0x42] sm:$0xff]  ;;  %v340_v8 = vld [vmem:[%s5051_s23 + $0x4a] sm:$0xff]  ;;  %v5134_v9 = vpack.i.bf16 %v342_v6, %v341_v5  ;;  %v345_v11 = vld [vmem:[%s5051_s23 + $0x72] sm:$0xff] }
  0x24   : > { %v5138_v10 = vpack.i.bf16 %v340_v8, %v339_v7  ;;  %v346_v12 = vld [vmem:[%s5051_s23 + $0x7a] sm:$0xff]  ;;  %v343_v13 = vld [vmem:[%s5051_s23 + $0x62] sm:$0xff]  ;;  %v344_v14 = vld [vmem:[%s5051_s23 + $0x6a] sm:$0xff] }
  0x25   : > { %v5148_v16 = vpack.i.bf16 %v346_v12, %v345_v11  ;;  %v5152_v17 = vpack.i.bf16 %v344_v14, %v343_v13  ;;  %v349_v18 = vld [vmem:[%s5051_s23 + $0x92] sm:$0xff]  ;;  %v350_v19 = vld [vmem:[%s5051_s23 + $0x9a] sm:$0xff]  ;;  %v347_v20 = vld [vmem:[%s5051_s23 + $0x82] sm:$0xff] }
  0x26   : > { %4005 = vrot.lane.b32.xlu1 %v4004_v28, %s4996_s24  ;;  %v348_v21 = vld [vmem:[%s5051_s23 + $0x8a] sm:$0xff]  ;;  %v5160_v22 = vpack.i.bf16 %v350_v19, %v349_v18  ;;  %v353_v24 = vld [vmem:[%s5051_s23 + $0xb2] sm:$0xff]  ;;  %v354_v25 = vld [vmem:[%s5051_s23 + $0xba] sm:$0xff] }
  0x27   : > { %4000 = vrot.lane.b32.xlu0 %v3999_v29, %s4996_s24  ;;  %v5164_v23 = vpack.i.bf16 %v348_v21, %v347_v20  ;;  %v351_v26 = vld [vmem:[%s5051_s23 + $0xa2] sm:$0xff]  ;;  %v352_v27 = vld [vmem:[%s5051_s23 + $0xaa] sm:$0xff]  ;;  %v5175_v29 = vpack.i.bf16 %v354_v25, %v353_v24  ;;  %v357_v32 = vld [vmem:[%s5051_s23 + $0xd2] sm:$0xff] }
  0x28   : > { %v4679_v28 = vld [vmem:[%s7487_s2] sm:$0xff]   ;;  %v4680_v30 = vld [vmem:[%s7487_s2 + $0x8] sm:$0xff]   ;;  %v5182_v31 = vpack.i.bf16 %v352_v27, %v351_v26  ;;  %v361_v36 = vld [vmem:[%s5051_s23 + $0xf2] sm:$0xff] }
  0x29   : > { %2180 = vmatpush1.bf16.msra.mxu0 %v4679_v28  ;;  %v358_v33 = vld [vmem:[%s5051_s23 + $0xda] sm:$0xff]  ;;  %3921 = vmatpush1.bf16.msra.mxu1 %v4679_v28  ;;  %v4681_v39 = vld [vmem:[%s7487_s2 + $0x10] sm:$0xff]   ;;  %v363_v48 = vld [vmem:[%s5051_s23 + $0x102] sm:$0xff] }
  0x2a   : > { %4015 = vrot.lane.b32.xlu1 %v4014_v34, %s4996_s24  ;;  %2181 = vmatprep.subr.bf16.mxu0 %v4998_v15  ;;  %v355_v34 = vld [vmem:[%s5051_s23 + $0xc2] sm:$0xff]  ;;  %v362_v37 = vld [vmem:[%s5051_s23 + $0xfa] sm:$0xff]  ;;  %v5194_v38 = vpack.i.bf16 %v358_v33, %v357_v32  ;;  %v360_v42 = vld [vmem:[%s5051_s23 + $0xea] sm:$0xff] }
  0x2b   : > { %4010 = vrot.lane.b32.xlu0 %v4009_v35, %s4996_s24  ;;  %v356_v35 = vld [vmem:[%s5051_s23 + $0xca] sm:$0xff]  ;;  %3906 = vmatprep.subr.bf16.mxu1 %v4998_v15  ;;  %v365_v43 = vld [vmem:[%s5051_s23 + $0x112] sm:$0xff]  ;;  %v366_v44 = vld [vmem:[%s5051_s23 + $0x11a] sm:$0xff]  ;;  %v5211_v45 = vpack.i.bf16 %v362_v37, %v361_v36 }
  0x2c   : > { %v364_v49 = vld [vmem:[%s5051_s23 + $0x10a] sm:$0xff]  ;;  %v4683_v50 = vld [vmem:[%s7487_s2 + $0x20] sm:$0xff]   ;;  %v5229_v51 = vpack.i.bf16 %v366_v44, %v365_v43  ;;  %v4690_v60 = vld [vmem:[%s7487_s2 + $0x58] sm:$0xff]  }
  0x2d   : > { %2182 = vmatpush1.bf16.msra.mxu0 %v4680_v30  ;;  %3922 = vmatpush1.bf16.msra.mxu1 %v4680_v30  ;;  %v4684_v53 = vld [vmem:[%s7487_s2 + $0x28] sm:$0xff]   ;;  %v4685_v54 = vld [vmem:[%s7487_s2 + $0x30] sm:$0xff]   ;;  %v4687_v56 = vld [vmem:[%s7487_s2 + $0x40] sm:$0xff]  }
  0x2e   : > { %4025 = vrot.lane.b32.xlu1 %v4024_v40, %s4996_s24  ;;  %v5201_v40 = vpack.i.bf16 %v356_v35, %v355_v34  ;;  %2183 = vmatprep.subr.bf16.mxu0 %v4998_v15  ;;  %v4688_v57 = vld [vmem:[%s7487_s2 + $0x48] sm:$0xff]   ;;  %v4689_v59 = vld [vmem:[%s7487_s2 + $0x50] sm:$0xff]   ;;  %v370_v5 = vld [vmem:[%s5051_s23 + $0x1b] sm:$0xff] }
  0x2f   : > { %4020 = vrot.lane.b32.xlu0 %v4019_v41, %s4996_s24  ;;  %v359_v41 = vld [vmem:[%s5051_s23 + $0xe2] sm:$0xff]  ;;  %3907 = vmatprep.subr.bf16.mxu1 %v4998_v15  ;;  %v368_v63 = vld [vmem:[%s5051_s23 + $0x12a] sm:$0xff]  ;;  %v405_v2 = vld [vmem:[%s5051_s23 + $0x14] sm:$0xff] }
  0x30   : > { %v4692_v1 = vld [vmem:[%s7487_s2 + $0x68] sm:$0xff]   ;;  %v4693_v7 = vld [vmem:[%s7487_s2 + $0x70] sm:$0xff]   ;;  %v4694_v14 = vld [vmem:[%s7487_s2 + $0x78] sm:$0xff]  }
  0x31   : > { %2184 = vmatpush1.bf16.msra.mxu0 %v4681_v39  ;;  %3923 = vmatpush1.bf16.msra.mxu1 %v4681_v39  ;;  %v407_v11 = vld [vmem:[%s5051_s23 + $0x24] sm:$0xff]  ;;  %v408_v12 = vld [vmem:[%s5051_s23 + $0x2c] sm:$0xff]  ;;  %v398_v18 = vld [vmem:[%s5051_s23 + $0xfb] sm:$0xff] }
  0x32   : > { %4035 = vrot.lane.b32.xlu1 %v4034_v46, %s4996_s24  ;;  %v4682_v46 = vld [vmem:[%s7487_s2 + $0x18] sm:$0xff]   ;;  %2185 = vmatprep.subr.bf16.mxu0 %v4998_v15  ;;  %v371_v19 = vld [vmem:[%s5051_s23 + $0x23] sm:$0xff]  ;;  %v372_v20 = vld [vmem:[%s5051_s23 + $0x2b] sm:$0xff] }
  0x33   : > { %4030 = vrot.lane.b32.xlu0 %v4029_v47, %s4996_s24  ;;  %v5218_v47 = vpack.i.bf16 %v360_v42, %v359_v41  ;;  %3908 = vmatprep.subr.bf16.mxu1 %v4998_v15  ;;  %v436_v25 = vld [vmem:[%s5051_s23 + $0x10c] sm:$0xff]  ;;  %v409_v27 = vld [vmem:[%s5051_s23 + $0x34] sm:$0xff]  ;;  %v410_v28 = vld [vmem:[%s5051_s23 + $0x3c] sm:$0xff] }
  0x34   : > { %v471_v32 = vld [vmem:[%s5051_s23 + $0x105] sm:$0xff]  ;;  %v472_v33 = vld [vmem:[%s5051_s23 + $0x10d] sm:$0xff]  ;;  %v445_v35 = vld [vmem:[%s5051_s23 + $0x35] sm:$0xff] }
  0x35   : > { %2186 = vmatpush1.bf16.msra.mxu0 %v4682_v46  ;;  %3924 = vmatpush1.bf16.msra.mxu1 %v4682_v46  ;;  %v446_v36 = vld [vmem:[%s5051_s23 + $0x3d] sm:$0xff]  ;;  %v400_v41 = vld [vmem:[%s5051_s23 + $0x10b] sm:$0xff]  ;;  %v373_v43 = vld [vmem:[%s5051_s23 + $0x33] sm:$0xff] }
  0x36   : > { %4045 = vrot.lane.b32.xlu1 %v4044_v52, %s4996_s24  ;;  %v4129_v52 = vpack.i.bf16 %v364_v49, %v363_v48  ;;  %2187 = vmatprep.subr.bf16.mxu0 %v4998_v15  ;;  %v4279_v39 = vpack.i.bf16 %v446_v36, %v445_v35  ;;  %v374_v44 = vld [vmem:[%s5051_s23 + $0x3b] sm:$0xff] }
  0x37   : > { %4040 = vrot.lane.b32.xlu0 %v4039_v55, %s4996_s24  ;;  %3909 = vmatprep.subr.bf16.mxu1 %v4998_v15  ;;  %v4686_v55 = vld [vmem:[%s7487_s2 + $0x38] sm:$0xff]  }
  0x39   : > { %2188 = vmatpush1.bf16.msra.mxu0 %v4683_v50  ;;  %3925 = vmatpush1.bf16.msra.mxu1 %v4683_v50  ;;  %v437_v50 = vld [vmem:[%s5051_s23 + $0x114] sm:$0xff] }
  0x3a   : > { %4055 = vrot.lane.b32.xlu1 %v5114_v61, %s4997_s25  ;;  %2189 = vmatprep.subr.bf16.mxu0 %v4998_v15 }
  0x3b   : > { %4050 = vrot.lane.b32.xlu0 %v4049_v62, %s4997_s25  ;;  %3910 = vmatprep.subr.bf16.mxu1 %v4998_v15  ;;  %v367_v62 = vld [vmem:[%s5051_s23 + $0x122] sm:$0xff] }
  0x3c   : > { %v4224_v0 = vpack.i.bf16 %v368_v63, %v367_v62  ;;  %v447_v62 = vld [vmem:[%s5051_s23 + $0x45] sm:$0xff]  ;;  %v448_v63 = vld [vmem:[%s5051_s23 + $0x4d] sm:$0xff] }
  0x3d   : > { %2190 = vmatpush1.bf16.msra.mxu0 %v4684_v53  ;;  %3926 = vmatpush1.bf16.msra.mxu1 %v4684_v53  ;;  %v411_v53 = vld [vmem:[%s5051_s23 + $0x44] sm:$0xff] }
  0x3e   : > { %4065 = vrot.lane.b32.xlu1 %v5123_v3, %s4997_s25  ;;  %2191 = vmatprep.subr.bf16.mxu0 %v4998_v15 }
  0x3f   : > { %4060 = vrot.lane.b32.xlu0 %v5126_v4, %s4997_s25  ;;  %3911 = vmatprep.subr.bf16.mxu1 %v4998_v15 }
  0x41   : > { %2192 = vmatpush1.bf16.msra.mxu0 %v4685_v54  ;;  %3927 = vmatpush1.bf16.msra.mxu1 %v4685_v54  ;;  %v412_v54 = vld [vmem:[%s5051_s23 + $0x4c] sm:$0xff] }
  0x42   : > { %4075 = vrot.lane.b32.xlu1 %v5134_v9, %s4997_s25  ;;  %2193 = vmatprep.subr.bf16.mxu0 %v4998_v15 }
  0x43   : > { %4070 = vrot.lane.b32.xlu0 %v5138_v10, %s4997_s25  ;;  %3912 = vmatprep.subr.bf16.mxu1 %v4998_v15 }
  0x45   : > { %2194 = vmatpush1.bf16.msra.mxu0 %v4686_v55  ;;  %3928 = vmatpush1.bf16.msra.mxu1 %v4686_v55 }
  0x46   : > { %4085 = vrot.lane.b32.xlu1 %v5148_v16, %s4997_s25  ;;  %2195 = vmatprep.subr.bf16.mxu0 %v4998_v15 }
  0x47   : > { %4080 = vrot.lane.b32.xlu0 %v5152_v17, %s4997_s25  ;;  %3913 = vmatprep.subr.bf16.mxu1 %v4998_v15 }
  0x49   : > { %2196 = vmatpush1.bf16.msra.mxu0 %v4687_v56  ;;  %3929 = vmatpush1.bf16.msra.mxu1 %v4687_v56 }
  0x4a   : > { %4095 = vrot.lane.b32.xlu1 %v5160_v22, %s4997_s25  ;;  %2197 = vmatprep.subr.bf16.mxu0 %v4998_v15 }
  0x4b   : > { %4090 = vrot.lane.b32.xlu0 %v5164_v23, %s4997_s25  ;;  %3914 = vmatprep.subr.bf16.mxu1 %v4998_v15 }
  0x4d   : > { %2198 = vmatpush1.bf16.msra.mxu0 %v4688_v57  ;;  %3930 = vmatpush1.bf16.msra.mxu1 %v4688_v57  ;;  %v4309_v57 = vpack.i.bf16 %v412_v54, %v411_v53  ;;  %v415_v54 = vld [vmem:[%s5051_s23 + $0x64] sm:$0xff] }
  0x4e   : > { %4105 = vrot.lane.b32.xlu1 %v5175_v29, %s4997_s25  ;;  %2199 = vmatprep.subr.bf16.mxu0 %v4998_v15 }
  0x4f   : > { %4100 = vrot.lane.b32.xlu0 %v5182_v31, %s4997_s25  ;;  %3915 = vmatprep.subr.bf16.mxu1 %v4998_v15 }
  0x51   : > { %2200 = vmatpush1.bf16.msra.mxu0 %v4689_v59  ;;  %3931 = vmatpush1.bf16.msra.mxu1 %v4689_v59  ;;  %v473_v59 = vld [vmem:[%s5051_s23 + $0x115] sm:$0xff] }
  0x52   : > { %4115 = vrot.lane.b32.xlu1 %v5194_v38, %s4997_s25  ;;  %2201 = vmatprep.subr.bf16.mxu0 %v4998_v15 }
  0x53   : > { %4110 = vrot.lane.b32.xlu0 %v5201_v40, %s4997_s25  ;;  %3916 = vmatprep.subr.bf16.mxu1 %v4998_v15 }
  0x55   : > { %2202 = vmatpush1.bf16.msra.mxu0 %v4690_v60  ;;  %3932 = vmatpush1.bf16.msra.mxu1 %v4690_v60  ;;  %v474_v60 = vld [vmem:[%s5051_s23 + $0x11d] sm:$0xff] }
  0x56   : > { %4125 = vrot.lane.b32.xlu1 %v5211_v45, %s4997_s25  ;;  %2203 = vmatprep.subr.bf16.mxu0 %v4998_v15 }
  0x57   : > { %4120 = vrot.lane.b32.xlu0 %v5218_v47, %s4997_s25  ;;  %3917 = vmatprep.subr.bf16.mxu1 %v4998_v15 }
  0x5a   : > { %4135 = vrot.lane.b32.xlu1 %v5229_v51, %s4997_s25 }
  0x5b   : > { %4130 = vrot.lane.b32.xlu0 %v4129_v52, %s4997_s25 }
  0x5e   : > { %4145 = vrot.lane.b32.xlu1 %v5126_v4, %s4999_s13  ;;  %v369_v4 = vld [vmem:[%s5051_s23 + $0x13] sm:$0xff] }
  0x5f   : > { %4140 = vrot.lane.b32.xlu0 %v5114_v61, %s4999_s13  ;;  %v4691_v61 = vld [vmem:[%s7487_s2 + $0x60] sm:$0xff]   ;;  %v4229_v8 = vpack.i.bf16 %v370_v5, %v369_v4 }
  0x60   : > { %2204 = vmatpush1.bf16.msra.mxu0 %v4691_v61  ;;  %3933 = vmatpush1.bf16.msra.mxu1 %v4691_v61  ;;  %v402_v4 = vld [vmem:[%s5051_s23 + $0x11b] sm:$0xff] }
  0x61   : > { %2205 = vmatprep.subr.bf16.mxu0 %v4998_v15  ;;  %3918 = vmatprep.subr.bf16.mxu1 %v4998_v15 }
  0x62   : > { %4155 = vrot.lane.b32.xlu1 %v5138_v10, %s4999_s13  ;;  %v444_v10 = vld [vmem:[%s5051_s23 + $0x2d] sm:$0xff] }
  0x63   : > { %4150 = vrot.lane.b32.xlu0 %v5123_v3, %s4999_s13  ;;  %v406_v3 = vld [vmem:[%s5051_s23 + $0x1c] sm:$0xff] }
  0x64   : > { %v4234_v6 = vpack.i.bf16 %v406_v3, %v405_v2  ;;  %2206 = vmatpush1.bf16.msra.mxu0 %v4692_v1  ;;  %3934 = vmatpush1.bf16.msra.mxu1 %v4692_v1  ;;  %v4324_v1 = vpack.i.bf16 %v474_v60, %v473_v59  ;;  %v4319_v2 = vpack.i.bf16 %v448_v63, %v447_v62  ;;  %v401_v3 = vld [vmem:[%s5051_s23 + $0x113] sm:$0xff] }
  0x65   : > { %2207 = vmatprep.subr.bf16.mxu0 %v4998_v15  ;;  %3919 = vmatprep.subr.bf16.mxu1 %v4998_v15 }
  0x66   : > { %4165 = vrot.lane.b32.xlu1 %v5152_v17, %s4999_s13  ;;  %v397_v17 = vld [vmem:[%s5051_s23 + $0xf3] sm:$0xff] }
  0x67   : > { %4160 = vrot.lane.b32.xlu0 %v5134_v9, %s4999_s13  ;;  %v443_v9 = vld [vmem:[%s5051_s23 + $0x25] sm:$0xff]  ;;  %v4254_v21 = vpack.i.bf16 %v398_v18, %v397_v17  ;;  %v413_v17 = vld [vmem:[%s5051_s23 + $0x54] sm:$0xff]  ;;  %v414_v18 = vld [vmem:[%s5051_s23 + $0x5c] sm:$0xff] }
  0x68   : > { %v4244_v13 = vpack.i.bf16 %v444_v10, %v443_v9  ;;  %2208 = vmatpush1.bf16.msra.mxu0 %v4693_v7  ;;  %3935 = vmatpush1.bf16.msra.mxu1 %v4693_v7  ;;  %v376_v7 = vld [vmem:[%s5051_s23 + $0x4b] sm:$0xff]  ;;  %v4334_v9 = vpack.i.bf16 %v402_v4, %v401_v3 }
  0x69   : > { %2209 = vmatprep.subr.bf16.mxu0 %v4998_v15  ;;  %3920 = vmatprep.subr.bf16.mxu1 %v4998_v15  ;;  %v435_v15 = vld [vmem:[%s5051_s23 + $0x104] sm:$0xff]  ;;  %v5484_v4 = vld [vmem:[%s5051_s23 + $0x6d] sm:$0xff] }
  0x6a   : > { %4175 = vrot.lane.b32.xlu1 %v5164_v23, %s4999_s13  ;;  %v4274_v30 = vpack.i.bf16 %v436_v25, %v435_v15  ;;  %v476_v15 = vld [vmem:[%s5051_s23 + $0x12d] sm:$0xff]  ;;  %v5481_v3 = vld [vmem:[%s5051_s23 + $0x65] sm:$0xff] }
  0x6b   : > { %4170 = vrot.lane.b32.xlu0 %v5148_v16, %s4999_s13  ;;  %v4239_v16 = vpack.i.bf16 %v408_v12, %v407_v11 }
  0x6c   : > { %2210 = vmatpush1.bf16.msra.mxu0 %v4694_v14  ;;  %3936 = vmatpush1.bf16.msra.mxu1 %v4694_v14  ;;  %v440_v14 = vld [vmem:[%s5051_s23 + $0x12c] sm:$0xff] }
  0x6e   : > { %4185 = vrot.lane.b32.xlu1 %v5182_v31, %s4999_s13  ;;  %v4269_v31 = vpack.i.bf16 %v410_v28, %v409_v27  ;;  %v449_v27 = vld [vmem:[%s5051_s23 + $0x55] sm:$0xff]  ;;  %v450_v28 = vld [vmem:[%s5051_s23 + $0x5d] sm:$0xff] }
  0x6f   : > { %4180 = vrot.lane.b32.xlu0 %v5160_v22, %s4999_s13  ;;  %v4249_v22 = vpack.i.bf16 %v372_v20, %v371_v19 }
  0x72   : > { %4195 = vrot.lane.b32.xlu1 %v5201_v40, %s4999_s13  ;;  %v399_v40 = vld [vmem:[%s5051_s23 + $0x103] sm:$0xff] }
  0x73   : > { %4190 = vrot.lane.b32.xlu0 %v5175_v29, %s4999_s13  ;;  %v4294_v46 = vpack.i.bf16 %v400_v41, %v399_v40  ;;  %v377_v40 = vld [vmem:[%s5051_s23 + $0x53] sm:$0xff] }
  0x74   : > { %v273_v41 = vld [vmem:[%s5051_s23 + $0x70] sm:$0xff] }
  0x76   : > { %4205 = vrot.lane.b32.xlu1 %v5218_v47, %s4999_s13  ;;  %v4289_v47 = vpack.i.bf16 %v374_v44, %v373_v43  ;;  %v274_v43 = vld [vmem:[%s5051_s23 + $0x78] sm:$0xff]  ;;  %v4359_v44 = vpack.i.bf16 %v450_v28, %v449_v27 }
  0x77   : > { %4200 = vrot.lane.b32.xlu0 %v5194_v38, %s4999_s13  ;;  %v4284_v38 = vpack.i.bf16 %v472_v33, %v471_v32 }
  0x7a   : > { %4215 = vrot.lane.b32.xlu1 %v4129_v52, %s4999_s13 }
  0x7b   : > { %4210 = vrot.lane.b32.xlu0 %v5211_v45, %s4999_s13 }
  0x7e   : > { %4225 = vrot.lane.b32.xlu1 %v4224_v0, %s4999_s13 }
  0x7f   : > { %4220 = vrot.lane.b32.xlu0 %v5229_v51, %s4999_s13  ;;  %s5001_s13 = smov 16   ;;  %v438_v51 = vld [vmem:[%s5051_s23 + $0x11c] sm:$0xff] }
  0x80   : > { %v4314_v56 = vpack.i.bf16 %v438_v51, %v437_v50 }
  0x82   : > { %4235 = vrot.lane.b32.xlu1 %v4234_v6, %s5000_s10  ;;  %v375_v6 = vld [vmem:[%s5051_s23 + $0x43] sm:$0xff] }
  0x83   : > { %4230 = vrot.lane.b32.xlu0 %v4229_v8, %s5001_s13  ;;  %v4329_v10 = vpack.i.bf16 %v376_v7, %v375_v6  ;;  %v271_v7 = vld [vmem:[%s5051_s23 + $0x60] sm:$0xff] }
  0x86   : > { %4245 = vrot.lane.b32.xlu1 %v4244_v13, %s5002_s14  ;;  %v439_v13 = vld [vmem:[%s5051_s23 + $0x124] sm:$0xff] }
  0x87   : > { %4240 = vrot.lane.b32.xlu0 %v4239_v16, %s5003_s15  ;;  %v5433_v20 = vpack.i.bf16 %v440_v14, %v439_v13  ;;  %v5494_v13 = vld [vmem:[%s7487_s2 + $0x80] sm:$0xff]  }
  0x88   : > { %v5345_v23 = vpop.permute.xlu1 %3970  ;;  %3859 = vmatprep.subr.bf16.mxu1 %v5494_v13 }
  0x89   : > { %v5347_v24 = vpop.permute.xlu0 %3960 }
  0x8a   : > { %4255 = vrot.lane.b32.xlu1 %v4254_v21, %s5001_s13  ;;  %v5436_v21 = vpack.i.bf16 %v414_v18, %v413_v17 }
  0x8b   : > { %4250 = vrot.lane.b32.xlu0 %v4249_v22, %s5001_s13  ;;  %v475_v22 = vld [vmem:[%s5051_s23 + $0x125] sm:$0xff] }
  0x8c   : > { %v5353_v26 = vpop.permute.xlu1 %3975  ;;  %v4364_v36 = vpack.i.bf16 %v476_v15, %v475_v22 }
  0x8d   : > { %v5357_v29 = vpop.permute.xlu0 %3965 }
  0x8e   : > { %4265 = vrot.lane.b32.xlu1 %v5109_v58, %s5000_s10 }
  0x8f   : > { %4260 = vrot.lane.b32.xlu0 %v4239_v16, %s5000_s10 }
  0x90   : > { %v5364_v34 = vpop.permute.xlu1 %3985 }
  0x91   : > { %v5368_v37 = vpop.permute.xlu0 %3980  ;;  %v3988_v33 = vunpack.i.h.bf16 %v5364_v34  ;;  %v3987_v35 = vunpack.i.l.bf16 %v5364_v34  ;;  %v5461_v34 = vld [vmem:[%s5051_s23 + $0x134] sm:$0xff] }
  0x92   : > { %4275 = vrot.lane.b32.xlu1 %v4274_v30, %s5003_s15 }
  0x93   : > { %4270 = vrot.lane.b32.xlu0 %v4269_v31, %s5003_s15 }
  0x94   : > { %v5374_v42 = vpop.permute.xlu1 %3995 }
  0x95   : > { %v5378_v45 = vpop.permute.xlu0 %3990  ;;  %v3998_v50 = vunpack.i.h.bf16 %v5374_v42  ;;  %v3997_v51 = vunpack.i.l.bf16 %v5374_v42 }
  0x96   : > { %4285 = vrot.lane.b32.xlu1 %v4284_v38, %s5002_s14  ;;  %v403_v38 = vld [vmem:[%s5051_s23 + $0x123] sm:$0xff]  ;;  %v3993_v59 = vunpack.i.h.bf16 %v5378_v45  ;;  %v3992_v60 = vunpack.i.l.bf16 %v5378_v45 }
  0x97   : > { %4280 = vrot.lane.b32.xlu0 %v4279_v39, %s5002_s14  ;;  %v404_v39 = vld [vmem:[%s5051_s23 + $0x12b] sm:$0xff]  ;;  %v1614_v15 = vsel %vm1599_vm0, %v273_v41, %v3997_v51  ;;  %v1615_v27 = vsel %vm1599_vm0, %v274_v43, %v3998_v50  ;;  %v278_v50 = vld [vmem:[%s5051_s23 + $0x98] sm:$0xff] }
  0x98   : > { %v5382_v48 = vpop.permute.xlu1 %4005 }
  0x99   : > { %v5384_v49 = vpop.permute.xlu0 %4000  ;;  %v4007_v41 = vunpack.i.l.bf16 %v5382_v48 }
  0x9a   : > { %4295 = vrot.lane.b32.xlu1 %v4294_v46, %s5001_s13  ;;  %v378_v46 = vld [vmem:[%s5051_s23 + $0x5b] sm:$0xff]  ;;  %v4003_v51 = vunpack.i.h.bf16 %v5384_v49 }
  0x9b   : > { %4290 = vrot.lane.b32.xlu0 %v4289_v47, %s5001_s13  ;;  %v5464_v47 = vld [vmem:[%s5051_s23 + $0x13c] sm:$0xff]  ;;  %v4369_v45 = vpack.i.bf16 %v378_v46, %v377_v40  ;;  %v4008_v40 = vunpack.i.h.bf16 %v5382_v48  ;;  %v277_v46 = vld [vmem:[%s5051_s23 + $0x90] sm:$0xff] }
  0x9c   : > { %v5390_v52 = vpop.permute.xlu1 %4015  ;;  %v4394_v14 = vpack.i.bf16 %v5464_v47, %v5461_v34  ;;  %v275_v48 = vld [vmem:[%s5051_s23 + $0x80] sm:$0xff]  ;;  %v284_v34 = vld [vmem:[%s5051_s23 + $0xc8] sm:$0xff] }
  0x9d   : > { %v5394_v55 = vpop.permute.xlu0 %4010 }
  0x9e   : > { %4305 = vrot.lane.b32.xlu1 %v4274_v30, %s5000_s10  ;;  %v269_v30 = vld [vmem:[%s5051_s23 + $0x50] sm:$0xff] }
  0x9f   : > { %4300 = vrot.lane.b32.xlu0 %v4269_v31, %s5000_s10  ;;  %v270_v31 = vld [vmem:[%s5051_s23 + $0x58] sm:$0xff]  ;;  %v1610_v42 = vsel %vm1599_vm0, %v269_v30, %v3987_v35 }
  0xa0   : > { %v5400_v61 = vpop.permute.xlu1 %4025  ;;  %v1611_v6 = vsel %vm1599_vm0, %v270_v31, %v3988_v33  ;;  %v4399_v31 = vpack.i.bf16 %v5484_v4, %v5481_v3  ;;  %v1612_v33 = vsel %vm1599_vm0, %v271_v7, %v3992_v60  ;;  %v4018_v60 = vunpack.i.h.bf16 %v5390_v52  ;;  %v282_v7 = vld [vmem:[%s5051_s23 + $0xb8] sm:$0xff] }
  0xa1   : > { %v5404_v0 = vpop.permute.xlu0 %4020 }
  0xa2   : > { %4315 = vrot.lane.b32.xlu1 %v4314_v56, %s5003_s15 }
  0xa3   : > { %4310 = vrot.lane.b32.xlu0 %v4309_v57, %s5003_s15 }
  0xa4   : > { %v5410_v5 = vpop.permute.xlu1 %4035 }
  0xa5   : > { %v5414_v8 = vpop.permute.xlu0 %4030 }
  0xa6   : > { %4325 = vrot.lane.b32.xlu1 %v4324_v1, %s5002_s14 }
  0xa7   : > { %4320 = vrot.lane.b32.xlu0 %v4319_v2, %s5002_s14  ;;  %v5478_v2 = vld [vmem:[%s5051_s23 + $0x13d] sm:$0xff] }
  0xa8   : > { %v5418_v11 = vpop.permute.xlu1 %4045 }
  0xa9   : > { %7548 = vst [vmem:[#allocation3_spill] sm:$0xff] %v5418_v11  ;;  %v5420_v12 = vpop.permute.xlu0 %4040  ;;  %v288_v11 = vld [vmem:[%s5051_s23 + $0xe8] sm:$0xff] }
  0xaa   : > { %4335 = vrot.lane.b32.xlu1 %v4334_v9, %s5001_s13  ;;  %v272_v9 = vld [vmem:[%s5051_s23 + $0x68] sm:$0xff] }
  0xab   : > { %4330 = vrot.lane.b32.xlu0 %v4329_v10, %s5001_s13  ;;  %v4374_v10 = vpack.i.bf16 %v404_v39, %v403_v38  ;;  %v1613_v35 = vsel %vm1599_vm0, %v272_v9, %v3993_v59  ;;  %v276_v59 = vld [vmem:[%s5051_s23 + $0x88] sm:$0xff]  ;;  %v4013_v9 = vunpack.i.h.bf16 %v5394_v55 }
  0xac   : > { %v5426_v16 = vpop.permute.xlu1 %4055 }
  0xad   : > { %v5430_v19 = vpop.permute.xlu0 %4050 }
  0xae   : > { %4345 = vrot.lane.b32.xlu1 %v4314_v56, %s5000_s10  ;;  %v416_v56 = vld [vmem:[%s5051_s23 + $0x6c] sm:$0xff] }
  0xaf   : > { %4340 = vrot.lane.b32.xlu0 %v4309_v57, %s5000_s10  ;;  %v5471_v57 = vld [vmem:[%s5051_s23 + $0x135] sm:$0xff]  ;;  %v5499_v17 = vpack.i.bf16 %v416_v56, %v415_v54 }
  0xb0   : > { %v5440_v25 = vpop.permute.xlu1 %4065  ;;  %v4404_v30 = vpack.i.bf16 %v5478_v2, %v5471_v57 }
  0xb1   : > { %v5446_v32 = vpop.permute.xlu0 %4060 }
  0xb2   : > { %4355 = vrot.lane.b32.xlu1 %v5433_v20, %s5003_s15 }
  0xb3   : > { %4350 = vrot.lane.b32.xlu0 %v5436_v21, %s5003_s15 }
  0xb4   : > { %v4076_v53 = vpop.permute.xlu1 %4075 }
  0xb5   : > { %v4078_v62 = vunpack.i.h.bf16 %v4076_v53  ;;  %v4077_v63 = vunpack.i.l.bf16 %v4076_v53  ;;  %v5475_v1 = vpop.permute.xlu0 %4070  ;;  %v4002_v53 = vunpack.i.l.bf16 %v5384_v49 }
  0xb6   : > { %7549 = vst [vmem:[#allocation4_spill] sm:$0xff] %v5475_v1  ;;  %4365 = vrot.lane.b32.xlu1 %v4364_v36, %s5002_s14 }
  0xb7   : > { %4360 = vrot.lane.b32.xlu0 %v4359_v44, %s5002_s14  ;;  %v5502_v18 = vsel %vm1636_vm1, %v1610_v42, %v4077_v63  ;;  %v5505_v22 = vsel %vm1636_vm1, %v1611_v6, %v4078_v62  ;;  %v4017_v62 = vunpack.i.l.bf16 %v5390_v52  ;;  %v281_v6 = vld [vmem:[%s5051_s23 + $0xb0] sm:$0xff]  ;;  %v1619_v52 = vsel %vm1599_vm0, %v278_v50, %v4008_v40 }
  0xb8   : > { %v4086_v28 = vpop.permute.xlu1 %4085 }
  0xb9   : > { %v4088_v36 = vunpack.i.h.bf16 %v4086_v28  ;;  %v4087_v38 = vunpack.i.l.bf16 %v4086_v28  ;;  %v4081_v39 = vpop.permute.xlu0 %4080  ;;  %v1618_v28 = vsel %vm1599_vm0, %v277_v46, %v4007_v41  ;;  %v1622_v40 = vsel %vm1599_vm0, %v281_v6, %v4017_v62 }
  0xba   : > { %v4083_v43 = vunpack.i.h.bf16 %v4081_v39  ;;  %v4082_v44 = vunpack.i.l.bf16 %v4081_v39  ;;  %4375 = vrot.lane.b32.xlu1 %v4374_v10, %s5001_s13  ;;  %v4012_v10 = vunpack.i.l.bf16 %v5394_v55  ;;  %v4027_v62 = vunpack.i.l.bf16 %v5400_v61 }
  0xbb   : > { %4370 = vrot.lane.b32.xlu0 %v4369_v45, %s5001_s13  ;;  %v5525_v54 = vsel %vm1636_vm1, %v1614_v15, %v4087_v38  ;;  %v5528_v56 = vsel %vm1636_vm1, %v1615_v27, %v4088_v36  ;;  %v279_v36 = vld [vmem:[%s5051_s23 + $0xa0] sm:$0xff]  ;;  %v280_v38 = vld [vmem:[%s5051_s23 + $0xa8] sm:$0xff] }
  0xbc   : > { %v4096_v63 = vpop.permute.xlu1 %4095  ;;  %v5535_v42 = vsel %vm1636_vm1, %v1612_v33, %v4082_v44  ;;  %v5538_v49 = vsel %vm1636_vm1, %v1613_v35, %v4083_v43  ;;  %v1616_v35 = vsel %vm1599_vm0, %v275_v48, %v4002_v53  ;;  %v1617_v43 = vsel %vm1599_vm0, %v276_v59, %v4003_v51 }
  0xbd   : > { %v4098_v45 = vunpack.i.h.bf16 %v4096_v63  ;;  %v4097_v15 = vunpack.i.l.bf16 %v4096_v63  ;;  %v4091_v27 = vpop.permute.xlu0 %4090  ;;  %v1623_v44 = vsel %vm1599_vm0, %v282_v7, %v4018_v60  ;;  %v1620_v50 = vsel %vm1599_vm0, %v279_v36, %v4012_v10  ;;  %v379_v7 = vld [vmem:[%s5051_s23 + $0x63] sm:$0xff]  ;;  %v380_v10 = vld [vmem:[%s5051_s23 + $0x6b] sm:$0xff] }
  0xbe   : > { %v4093_v33 = vunpack.i.h.bf16 %v4091_v27  ;;  %v4092_v39 = vunpack.i.l.bf16 %v4091_v27  ;;  %4385 = vrot.lane.b32.xlu1 %v5433_v20, %s5000_s10  ;;  %v1621_v51 = vsel %vm1599_vm0, %v280_v38, %v4013_v9  ;;  %v4028_v60 = vunpack.i.h.bf16 %v5400_v61  ;;  %v286_v9 = vld [vmem:[%s5051_s23 + $0xd8] sm:$0xff] }
  0xbf   : > { %4380 = vrot.lane.b32.xlu0 %v5436_v21, %s5000_s10  ;;  %v5555_v55 = vsel %vm1636_vm1, %v1618_v28, %v4097_v15  ;;  %v5558_v41 = vsel %vm1636_vm1, %v1619_v52, %v4098_v45  ;;  %v285_v45 = vld [vmem:[%s5051_s23 + $0xd0] sm:$0xff]  ;;  %v4023_v15 = vunpack.i.h.bf16 %v5404_v0  ;;  %v4022_v27 = vunpack.i.l.bf16 %v5404_v0  ;;  %v283_v52 = vld [vmem:[%s5051_s23 + $0xc0] sm:$0xff] }
  0xc0   : > { %v4106_v20 = vpop.permute.xlu1 %4105  ;;  %v5563_v46 = vsel %vm1636_vm1, %v1616_v35, %v4092_v39  ;;  %v5566_v21 = vsel %vm1636_vm1, %v1617_v43, %v4093_v33  ;;  %v4409_v39 = vpack.i.bf16 %v380_v10, %v379_v7  ;;  %v1626_v35 = vsel %vm1599_vm0, %v285_v45, %v4027_v62  ;;  %v479_v10 = vld [vmem:[%s5051_s23 + $0x26] sm:$0xff]  ;;  %v480_v45 = vld [vmem:[%s5051_s23 + $0x2e] sm:$0xff] }
  0xc1   : > { %v4108_v53 = vunpack.i.h.bf16 %v4106_v20  ;;  %v4107_v48 = vunpack.i.l.bf16 %v4106_v20  ;;  %v4101_v59 = vpop.permute.xlu0 %4100  ;;  %v1627_v43 = vsel %vm1599_vm0, %v286_v9, %v4028_v60  ;;  %v1624_v20 = vsel %vm1599_vm0, %v283_v52, %v4022_v27  ;;  %v381_v52 = vld [vmem:[%s5051_s23 + $0x73] sm:$0xff] }
  0xc2   : > { %v4103_v63 = vunpack.i.h.bf16 %v4101_v59  ;;  %v4102_v6 = vunpack.i.l.bf16 %v4101_v59  ;;  %4395 = vrot.lane.b32.xlu1 %v4394_v14, %s5003_s15  ;;  %v418_v59 = vld [vmem:[%s5051_s23 + $0x7c] sm:$0xff] }
  0xc3   : > { %4390 = vrot.lane.b32.xlu0 %v5499_v17, %s5003_s15  ;;  %v5585_v61 = vsel %vm1636_vm1, %v1622_v40, %v4107_v48  ;;  %v5588_v28 = vsel %vm1636_vm1, %v1623_v44, %v4108_v53  ;;  %v454_v53 = vld [vmem:[%s5051_s23 + $0x7d] sm:$0xff] }
  0xc4   : > { %v4116_v47 = vpop.permute.xlu1 %4115  ;;  %v5593_v14 = vsel %vm1636_vm1, %v1620_v50, %v4102_v6  ;;  %v5596_v36 = vsel %vm1636_vm1, %v1621_v51, %v4103_v63  ;;  %v1625_v50 = vsel %vm1599_vm0, %v284_v34, %v4023_v15  ;;  %v453_v51 = vld [vmem:[%s5051_s23 + $0x75] sm:$0xff]  ;;  %v482_v6 = vld [vmem:[%s5051_s23 + $0x3e] sm:$0xff]  ;;  %v4429_v15 = vpack.i.bf16 %v480_v45, %v479_v10 }
  0xc5   : > { %v4118_v0 = vunpack.i.h.bf16 %v4116_v47  ;;  %v4117_v38 = vunpack.i.l.bf16 %v4116_v47  ;;  %v4111_v33 = vpop.permute.xlu0 %4110  ;;  %v481_v63 = vld [vmem:[%s5051_s23 + $0x36] sm:$0xff] }
  0xc6   : > { %v4113_v40 = vunpack.i.h.bf16 %v4111_v33  ;;  %v4112_v44 = vunpack.i.l.bf16 %v4111_v33  ;;  %4405 = vrot.lane.b32.xlu1 %v4404_v30, %s5002_s14  ;;  %v417_v30 = vld [vmem:[%s5051_s23 + $0x74] sm:$0xff] }
  0xc7   : > { %4400 = vrot.lane.b32.xlu0 %v4399_v31, %s5002_s14  ;;  %v5613_v48 = vsel %vm1636_vm1, %v1626_v35, %v4117_v38  ;;  %v5616_v57 = vsel %vm1636_vm1, %v1627_v43, %v4118_v0  ;;  %v4424_v31 = vpack.i.bf16 %v454_v53, %v453_v51  ;;  %v4419_v62 = vpack.i.bf16 %v418_v59, %v417_v30  ;;  %v382_v34 = vld [vmem:[%s5051_s23 + $0x7b] sm:$0xff]  ;;  %v455_v38 = vld [vmem:[%s5051_s23 + $0x85] sm:$0xff]  ;;  %v456_v33 = vld [vmem:[%s5051_s23 + $0x8d] sm:$0xff] }
  0xc8   : > { %v5618_v2 = vpop.permute.xlu1 %4125  ;;  %v5623_v60 = vsel %vm1636_vm1, %v1624_v20, %v4112_v44  ;;  %v5626_v3 = vsel %vm1636_vm1, %v1625_v50, %v4113_v40  ;;  %v4439_v0 = vpack.i.bf16 %v382_v34, %v381_v52  ;;  %v419_v35 = vld [vmem:[%s5051_s23 + $0x84] sm:$0xff]  ;;  %v420_v43 = vld [vmem:[%s5051_s23 + $0x8c] sm:$0xff]  ;;  %v4454_v44 = vpack.i.bf16 %v456_v33, %v455_v38  ;;  %v485_v50 = vld [vmem:[%s5051_s23 + $0x56] sm:$0xff] }
  0xc9   : > { %v5628_v4 = vpop.permute.xlu0 %4120  ;;  %v4449_v20 = vpack.i.bf16 %v420_v43, %v419_v35  ;;  %v486_v51 = vld [vmem:[%s5051_s23 + $0x5e] sm:$0xff]  ;;  %v483_v30 = vld [vmem:[%s5051_s23 + $0x46] sm:$0xff]  ;;  %v484_v59 = vld [vmem:[%s5051_s23 + $0x4e] sm:$0xff] }
  0xca   : > { %4415 = vrot.lane.b32.xlu1 %v5499_v17, %s5000_s10  ;;  %v4434_v17 = vpack.i.bf16 %v482_v6, %v481_v63  ;;  %v4459_v10 = vpack.i.bf16 %v484_v59, %v483_v30  ;;  %v383_v52 = vld [vmem:[%s5051_s23 + $0x83] sm:$0xff]  ;;  %v384_v34 = vld [vmem:[%s5051_s23 + $0x8b] sm:$0xff] }
  0xcb   : > { %4410 = vrot.lane.b32.xlu0 %v4409_v39, %s5001_s13  ;;  %v4469_v43 = vpack.i.bf16 %v384_v34, %v383_v52 }
  0xcc   : > { %v5635_v7 = vpop.permute.xlu1 %4135 }
  0xcd   : > { %7550 = vst [vmem:[#allocation5_spill] sm:$0xff] %v5635_v7  ;;  %v5639_v9 = vpop.permute.xlu0 %4130 }
  0xce   : > { %4425 = vrot.lane.b32.xlu1 %v4424_v31, %s5002_s14 }
  0xcf   : > { %4420 = vrot.lane.b32.xlu0 %v4419_v62, %s5003_s15 }
  0xd0   : > { %v5643_v27 = vpop.permute.xlu1 %4145 }
  0xd1   : > { %v5647_v47 = vpop.permute.xlu0 %4140 }
  0xd2   : > { %4435 = vrot.lane.b32.xlu1 %v4434_v17, %s5004_s20 }
  0xd3   : > { %4430 = vrot.lane.b32.xlu0 %v4429_v15, %s5004_s20 }
  0xd4   : > { %v5653_v39 = vpop.permute.xlu1 %4155 }
  0xd5   : > { %v5657_v40 = vpop.permute.xlu0 %4150 }
  0xd6   : > { %4445 = vrot.lane.b32.xlu1 %v4419_v62, %s5000_s10  ;;  %v4464_v62 = vpack.i.bf16 %v486_v51, %v485_v50  ;;  %v458_v50 = vld [vmem:[%s5051_s23 + $0x9d] sm:$0xff] }
  0xd7   : > { %4440 = vrot.lane.b32.xlu0 %v4439_v0, %s5001_s13 }
  0xd8   : > { %v5663_v53 = vpop.permute.xlu1 %4165 }
  0xd9   : > { %7551 = vst [vmem:[#allocation6_spill] sm:$0xff] %v5663_v53  ;;  %v7496_v31 = vunpack.i.h.bf16 %v5663_v53  ;;  %v7495_v63 = vunpack.i.l.bf16 %v5663_v53  ;;  %v5669_v6 = vpop.permute.xlu0 %4160 }
  0xda   : > { %7552 = vst [vmem:[#allocation7_spill] sm:$0xff] %v5669_v6  ;;  %4455 = vrot.lane.b32.xlu1 %v4454_v44, %s5002_s14  ;;  %v457_v44 = vld [vmem:[%s5051_s23 + $0x95] sm:$0xff] }
  0xdb   : > { %4450 = vrot.lane.b32.xlu0 %v4449_v20, %s5003_s15  ;;  %v5677_v45 = vsel %vm1673_vm2, %v5502_v18, %v7495_v63  ;;  %v5683_v17 = vsel %vm1673_vm2, %v5505_v22, %v7496_v31  ;;  %v490_v63 = vld [vmem:[%s5051_s23 + $0x7e] sm:$0xff] }
  0xdc   : > { %7553 = vst [vmem:[#allocation8_spill] sm:$0xff] %v5677_v45  ;;  %7554 = vst [vmem:[#allocation9_spill] sm:$0xff] %v5683_v17  ;;  %v5685_v15 = vpop.permute.xlu1 %4175  ;;  %v5973_v45 = vld [vmem:[%s5051_s23 + $0xc6] sm:$0xff]  ;;  %v5976_v17 = vld [vmem:[%s5051_s23 + $0xce] sm:$0xff] }
  0xdd   : > { %7555 = vst [vmem:[#allocation10_spill] sm:$0xff] %v5685_v15  ;;  %v7492_v38 = vunpack.i.h.bf16 %v5685_v15  ;;  %v7491_v18 = vunpack.i.l.bf16 %v5685_v15  ;;  %v5693_v33 = vpop.permute.xlu0 %4170 }
  0xde   : > { %7556 = vst [vmem:[#allocation11_spill] sm:$0xff] %v5693_v33  ;;  %v7494_v35 = vunpack.i.h.bf16 %v5693_v33  ;;  %v7493_v22 = vunpack.i.l.bf16 %v5693_v33  ;;  %4465 = vrot.lane.b32.xlu1 %v4464_v62, %s5004_s20  ;;  %v421_v62 = vld [vmem:[%s5051_s23 + $0x94] sm:$0xff] }
  0xdf   : > { %4460 = vrot.lane.b32.xlu0 %v4459_v10, %s5004_s20  ;;  %v5705_v51 = vsel %vm1673_vm2, %v5525_v54, %v7491_v18  ;;  %v5711_v30 = vsel %vm1673_vm2, %v5528_v56, %v7492_v38  ;;  %v422_v10 = vld [vmem:[%s5051_s23 + $0x9c] sm:$0xff] }
  0xe0   : > { %7557 = vst [vmem:[#allocation12_spill] sm:$0xff] %v5705_v51  ;;  %7558 = vst [vmem:[#allocation13_spill] sm:$0xff] %v5711_v30  ;;  %v5713_v59 = vpop.permute.xlu1 %4185  ;;  %v5721_v52 = vsel %vm1673_vm2, %v5535_v42, %v7493_v22  ;;  %v5727_v54 = vsel %vm1673_vm2, %v5538_v49, %v7494_v35  ;;  %v4484_v49 = vpack.i.bf16 %v458_v50, %v457_v44  ;;  %v489_v35 = vld [vmem:[%s5051_s23 + $0x76] sm:$0xff]  ;;  %v488_v44 = vld [vmem:[%s5051_s23 + $0x6e] sm:$0xff] }
  0xe1   : > { %7559 = vst [vmem:[#allocation14_spill] sm:$0xff] %v5713_v59  ;;  %7560 = vst [vmem:[#allocation15_spill] sm:$0xff] %v5721_v52  ;;  %v7498_v34 = vunpack.i.h.bf16 %v5713_v59  ;;  %v7497_v18 = vunpack.i.l.bf16 %v5713_v59  ;;  %v5733_v38 = vpop.permute.xlu0 %4180  ;;  %v4479_v56 = vpack.i.bf16 %v422_v10, %v421_v62  ;;  %v3962_v59 = vunpack.i.l.bf16 %v5347_v24  ;;  %v259_v51 = vld [vmem:[%s5051_s23] sm:$0xff]  ;;  %v260_v30 = vld [vmem:[%s5051_s23 + $0x8] sm:$0xff] }
  0xe2   : > { %7561 = vst [vmem:[#allocation16_spill] sm:$0xff] %v5727_v54  ;;  %7562 = vst [vmem:[#allocation17_spill] sm:$0xff] %v5733_v38  ;;  %v7499_v0 = vunpack.i.l.bf16 %v5733_v38  ;;  %4475 = vrot.lane.b32.xlu1 %v4449_v20, %s5000_s10  ;;  %v487_v20 = vld [vmem:[%s5051_s23 + $0x66] sm:$0xff]  ;;  %v7567_v50 = vunpack.i.h.bf16 %v5733_v38  ;;  %v5960_v52 = vld [vmem:[%s5051_s23 + $0xd5] sm:$0xff]  ;;  %v4143_v54 = vunpack.i.h.bf16 %v5647_v47 }
  0xe3   : > { %4470 = vrot.lane.b32.xlu0 %v4469_v43, %s5001_s13  ;;  %v5747_v31 = vsel %vm1673_vm2, %v5555_v55, %v7497_v18  ;;  %v5753_v42 = vsel %vm1673_vm2, %v5558_v41, %v7498_v34  ;;  %v427_v38 = vld [vmem:[%s5051_s23 + $0xc4] sm:$0xff] }
  0xe4   : > { %7563 = vst [vmem:[#allocation18_spill] sm:$0xff] %v5747_v31  ;;  %7564 = vst [vmem:[#allocation19_spill] sm:$0xff] %v5753_v42  ;;  %v5755_v22 = vpop.permute.xlu1 %4195  ;;  %v5763_v43 = vsel %vm1673_vm2, %v5563_v46, %v7499_v0  ;;  %v5769_v55 = vsel %vm1673_vm2, %v5566_v21, %v7567_v50  ;;  %v4494_v21 = vpack.i.bf16 %v490_v63, %v489_v35  ;;  %v385_v63 = vld [vmem:[%s5051_s23 + $0x93] sm:$0xff]  ;;  %v386_v35 = vld [vmem:[%s5051_s23 + $0x9b] sm:$0xff] }
  0xe5   : > { %7565 = vst [vmem:[#allocation20_spill] sm:$0xff] %v5755_v22  ;;  %7566 = vst [vmem:[#allocation21_spill] sm:$0xff] %v5763_v43  ;;  %v7500_v62 = vunpack.i.h.bf16 %v5755_v22  ;;  %v7501_v10 = vunpack.i.l.bf16 %v5755_v22  ;;  %v5775_v18 = vpop.permute.xlu0 %4190  ;;  %v4489_v50 = vpack.i.bf16 %v488_v44, %v487_v20  ;;  %v4499_v44 = vpack.i.bf16 %v386_v35, %v385_v63  ;;  %v5845_v63 = vld [vmem:[%s5051_s23 + $0x9e] sm:$0xff]  ;;  %v5848_v35 = vld [vmem:[%s5051_s23 + $0x86] sm:$0xff] }
  0xe6   : > { %7568 = vst [vmem:[#allocation22_spill] sm:$0xff] %v5769_v55  ;;  %7569 = vst [vmem:[#allocation23_spill] sm:$0xff] %v5775_v18  ;;  %v7502_v0 = vunpack.i.l.bf16 %v5775_v18  ;;  %4485 = vrot.lane.b32.xlu1 %v4484_v49, %s5002_s14  ;;  %v5851_v22 = vld [vmem:[%s5051_s23 + $0x8e] sm:$0xff] }
  0xe7   : > { %4480 = vrot.lane.b32.xlu0 %v4479_v56, %s5003_s15  ;;  %v5787_v41 = vsel %vm1673_vm2, %v5585_v61, %v7501_v10  ;;  %v5793_v46 = vsel %vm1673_vm2, %v5588_v28, %v7500_v62  ;;  %v7574_v61 = vunpack.i.h.bf16 %v5775_v18  ;;  %v460_v28 = vld [vmem:[%s5051_s23 + $0xad] sm:$0xff]  ;;  %v423_v62 = vld [vmem:[%s5051_s23 + $0xa4] sm:$0xff] }
  0xe8   : > { %7570 = vst [vmem:[#allocation24_spill] sm:$0xff] %v5787_v41  ;;  %7571 = vst [vmem:[#allocation25_spill] sm:$0xff] %v5793_v46  ;;  %v5795_v34 = vpop.permute.xlu1 %4205  ;;  %v5803_v49 = vsel %vm1673_vm2, %v5593_v14, %v7502_v0  ;;  %v424_v41 = vld [vmem:[%s5051_s23 + $0xac] sm:$0xff]  ;;  %v5828_v46 = vld [vmem:[%s5051_s23 + $0x96] sm:$0xff] }
  0xe9   : > { %7572 = vst [vmem:[#allocation26_spill] sm:$0xff] %v5795_v34  ;;  %7573 = vst [vmem:[#allocation27_spill] sm:$0xff] %v5803_v49  ;;  %v5809_v20 = vsel %vm1673_vm2, %v5596_v36, %v7574_v61  ;;  %v5815_v10 = vpop.permute.xlu0 %4200  ;;  %v459_v61 = vld [vmem:[%s5051_s23 + $0xa5] sm:$0xff]  ;;  %v7577_v14 = vunpack.i.l.bf16 %v5795_v34  ;;  %v5891_v31 = vpack.i.bf16 %v424_v41, %v423_v62  ;;  %v4524_v42 = vpack.i.bf16 %v5845_v63, %v5828_v46  ;;  %v5910_v62 = vld [vmem:[%s5051_s23 + $0xb3] sm:$0xff] }
  0xea   : > { %7575 = vst [vmem:[#allocation28_spill] sm:$0xff] %v5809_v20  ;;  %7576 = vst [vmem:[#allocation29_spill] sm:$0xff] %v5815_v10  ;;  %4495 = vrot.lane.b32.xlu1 %v4494_v21, %s5004_s20  ;;  %v7579_v21 = vunpack.i.h.bf16 %v5795_v34  ;;  %v5870_v20 = vld [vmem:[%s5051_s23 + $0xa3] sm:$0xff]  ;;  %v5873_v18 = vld [vmem:[%s5051_s23 + $0xab] sm:$0xff]  ;;  %v4519_v41 = vpack.i.bf16 %v5851_v22, %v5848_v35  ;;  %v3973_v63 = vunpack.i.h.bf16 %v5345_v23 }
  0xeb   : > { %4490 = vrot.lane.b32.xlu0 %v4489_v50, %s5004_s20  ;;  %v5834_v0 = vsel %vm1673_vm2, %v5613_v48, %v7577_v14  ;;  %v7581_v48 = vunpack.i.l.bf16 %v5815_v10  ;;  %v425_v34 = vld [vmem:[%s5051_s23 + $0xb4] sm:$0xff]  ;;  %v428_v22 = vld [vmem:[%s5051_s23 + $0xcc] sm:$0xff]  ;;  %v4529_v15 = vpack.i.bf16 %v5873_v18, %v5870_v20 }
  0xec   : > { %7578 = vst [vmem:[#allocation30_spill] sm:$0xff] %v5834_v0  ;;  %v5840_v36 = vsel %vm1673_vm2, %v5616_v57, %v7579_v21  ;;  %v5842_v50 = vpop.permute.xlu1 %4215  ;;  %v7583_v57 = vunpack.i.h.bf16 %v5815_v10  ;;  %v426_v0 = vld [vmem:[%s5051_s23 + $0xbc] sm:$0xff]  ;;  %v5924_v55 = vld [vmem:[%s5051_s23 + $0xcd] sm:$0xff]  ;;  %v5951_v33 = vpack.i.bf16 %v428_v22, %v427_v38  ;;  %v4142_v38 = vunpack.i.l.bf16 %v5647_v47 }
  0xed   : > { %7580 = vst [vmem:[#allocation31_spill] sm:$0xff] %v5840_v36  ;;  %v5857_v14 = vsel %vm1673_vm2, %v5623_v60, %v7581_v48  ;;  %v5867_v49 = vpop.permute.xlu0 %4210  ;;  %v5876_v60 = vld [vmem:[%s5051_s23 + $0xb5] sm:$0xff]  ;;  %v5879_v48 = vld [vmem:[%s5051_s23 + $0xbd] sm:$0xff]  ;;  %v264_v35 = vld [vmem:[%s5051_s23 + $0x28] sm:$0xff]  ;;  %v3978_v47 = vunpack.i.h.bf16 %v5353_v26 }
  0xee   : > { %7582 = vst [vmem:[#allocation32_spill] sm:$0xff] %v5857_v14  ;;  %v5863_v21 = vsel %vm1673_vm2, %v5626_v3, %v7583_v57  ;;  %4505 = vrot.lane.b32.xlu1 %v4479_v56, %s5000_s10  ;;  %v4514_v57 = vpack.i.bf16 %v460_v28, %v459_v61  ;;  %v5887_v36 = vld [vmem:[%s5051_s23 + $0xb6] sm:$0xff]  ;;  %v263_v10 = vld [vmem:[%s5051_s23 + $0x20] sm:$0xff]  ;;  %v5902_v28 = vld [vmem:[%s5051_s23 + $0xae] sm:$0xff]  ;;  %v3972_v61 = vunpack.i.l.bf16 %v5345_v23 }
  0xef   : > { %7584 = vst [vmem:[#allocation33_spill] sm:$0xff] %v5863_v21  ;;  %4500 = vrot.lane.b32.xlu0 %v4499_v44, %s5001_s13  ;;  %v5896_v3 = vld [vmem:[%s5051_s23 + $0xbe] sm:$0xff]  ;;  %v5899_v56 = vld [vmem:[%s5051_s23 + $0xa6] sm:$0xff]  ;;  %v3963_v21 = vunpack.i.h.bf16 %v5347_v24  ;;  %v5938_v24 = vpack.i.bf16 %v426_v0, %v425_v34  ;;  %v5954_v0 = vsel %vm1599_vm0, %v264_v35, %v3973_v63  ;;  %v1600_v34 = vsel %vm1599_vm0, %v259_v51, %v3962_v59  ;;  %v265_v51 = vld [vmem:[%s5051_s23 + $0x30] sm:$0xff] }
  0xf0   : > { %v5905_v14 = vpop.permute.xlu1 %4225  ;;  %v5913_v46 = vld [vmem:[%s5051_s23 + $0xbb] sm:$0xff]  ;;  %v5916_v44 = vld [vmem:[%s5051_s23 + $0xc5] sm:$0xff]  ;;  %v5945_v18 = vsel %vm1599_vm0, %v263_v10, %v3972_v61  ;;  %v3977_v10 = vunpack.i.l.bf16 %v5353_v26  ;;  %v4052_v59 = vunpack.i.l.bf16 %v5430_v19 }
  0xf1   : > { %7585 = vst [vmem:[#allocation34_spill] sm:$0xff] %v5905_v14  ;;  %v5921_v43 = vpop.permute.xlu0 %4220  ;;  %v5963_v23 = vld [vmem:[%s5051_s23 + $0xdd] sm:$0xff] }
  0xf2   : > { %4515 = vrot.lane.b32.xlu1 %v4514_v57, %s5002_s14  ;;  %v1601_v57 = vsel %vm1599_vm0, %v260_v30, %v3963_v21  ;;  %v4053_v30 = vunpack.i.h.bf16 %v5430_v19  ;;  %v5990_v7 = vsel %vm1599_vm0, %v265_v51, %v3977_v10  ;;  %v262_v19 = vld [vmem:[%s5051_s23 + $0x18] sm:$0xff]  ;;  %v1637_v51 = vsel %vm1636_vm1, %v1600_v34, %v4052_v59 }
  0xf3   : > { %4510 = vrot.lane.b32.xlu0 %v5891_v31, %s5003_s15  ;;  %7587 = vst [vmem:[#allocation36_spill] sm:$0xff] %v5990_v7  ;;  %v6017_v34 = vld [vmem:[%s5051_s23 + $0xd6] sm:$0xff]  ;;  %v4057_v7 = vunpack.i.l.bf16 %v5426_v16 }
  0xf4   : > { %v4236_v20 = vpop.permute.xlu1 %4235 }
  0xf5   : > { %v4231_v61 = vpop.permute.xlu0 %4230  ;;  %v4238_v21 = vunpack.i.h.bf16 %v4236_v20  ;;  %v4237_v35 = vunpack.i.l.bf16 %v4236_v20  ;;  %v3967_v20 = vunpack.i.l.bf16 %v5357_v29 }
  0xf6   : > { %v4233_v22 = vunpack.i.h.bf16 %v4231_v61  ;;  %v4232_v63 = vunpack.i.l.bf16 %v4231_v61  ;;  %4525 = vrot.lane.b32.xlu1 %v4524_v42, %s5004_s20 }
  0xf7   : > { %4520 = vrot.lane.b32.xlu0 %v4519_v41, %s5004_s20  ;;  %v3968_v41 = vunpack.i.h.bf16 %v5357_v29  ;;  %v266_v29 = vld [vmem:[%s5051_s23 + $0x38] sm:$0xff] }
  0xf8   : > { %v5979_v61 = vpop.permute.xlu1 %4245  ;;  %v1711_v42 = vsel %vm1710_vm3, %v4142_v38, %v4232_v63  ;;  %v1712_v53 = vsel %vm1710_vm3, %v4143_v54, %v4233_v22  ;;  %v261_v63 = vld [vmem:[%s5051_s23 + $0x10] sm:$0xff] }
  0xf9   : > { %7586 = vst [vmem:[#allocation35_spill] sm:$0xff] %v5979_v61  ;;  %v4241_v26 = vpop.permute.xlu0 %4240  ;;  %v1748_v14 = vsel %vm1747_vm4, %v1711_v42, %v4237_v35  ;;  %v1749_v10 = vsel %vm1747_vm4, %v1712_v53, %v4238_v21  ;;  %v6011_v53 = vld [vmem:[%s5051_s23 + $0xc3] sm:$0xff]  ;;  %v6014_v21 = vld [vmem:[%s5051_s23 + $0xcb] sm:$0xff]  ;;  %v429_v42 = vld [vmem:[%s5051_s23 + $0xd4] sm:$0xff] }
  0xfa   : > { %v4243_v58 = vunpack.i.h.bf16 %v4241_v26  ;;  %v4242_v1 = vunpack.i.l.bf16 %v4241_v26  ;;  %4535 = vrot.lane.b32.xlu1 %v5891_v31, %s5000_s10  ;;  %v1638_v31 = vsel %vm1636_vm1, %v1601_v57, %v4053_v30  ;;  %v4033_v57 = vunpack.i.h.bf16 %v5414_v8 }
  0xfb   : > { %4530 = vrot.lane.b32.xlu0 %v4529_v15, %s5001_s13  ;;  %v1674_v15 = vsel %vm1673_vm2, %v1637_v51, %v4142_v38  ;;  %v1675_v35 = vsel %vm1673_vm2, %v1638_v31, %v4143_v54  ;;  %v4032_v30 = vunpack.i.l.bf16 %v5414_v8  ;;  %v6030_v38 = vld [vmem:[%s5051_s23 + $0xde] sm:$0xff]  ;;  %v6035_v51 = vsel %vm1599_vm0, %v266_v29, %v3978_v47 }
  0xfc   : > { %v6004_v26 = vpop.permute.xlu1 %4255  ;;  %v1785_v22 = vsel %vm1784_vm5, %v1748_v14, %v4242_v1  ;;  %v1786_v6 = vsel %vm1784_vm5, %v1749_v10, %v4243_v58  ;;  %v7588_v1 = vunpack.i.l.bf16 %v5979_v61  ;;  %v7589_v14 = vunpack.i.h.bf16 %v5979_v61  ;;  %v430_v10 = vld [vmem:[%s5051_s23 + $0xdc] sm:$0xff]  ;;  %7590 = vst [vmem:[#allocation37_spill] sm:$0xff] %v6035_v51 }
  0xfd   : > { %v6021_v59 = vpop.permute.xlu0 %4250  ;;  %v287_v31 = vld [vmem:[%s5051_s23 + $0xe0] sm:$0xff]  ;;  %v4058_v8 = vunpack.i.h.bf16 %v5426_v16  ;;  %v4122_v61 = vunpack.i.l.bf16 %v5628_v4  ;;  %v1895_v47 = vpack.c.bf16 %v1675_v35, %v1674_v15  ;;  %v1603_v29 = vsel %vm1599_vm0, %v262_v19, %v3968_v41 }
  0xfe   : > { %v1822_v58 = vsel %vm1821_vm6, %v1785_v22, %v7588_v1  ;;  %v1823_v54 = vsel %vm1821_vm6, %v1786_v6, %v7589_v14  ;;  %v7591_v22 = vpack.i.bf16 %v5879_v48, %v5876_v60  ;;  %v1602_v6 = vsel %vm1599_vm0, %v261_v63, %v3967_v20 }
  0xff   : > { %v1896_v1 = vpack.c.bf16 %v1823_v54, %v1822_v58  ;;  %v4123_v14 = vunpack.i.h.bf16 %v5628_v4  ;;  %4540 = vrot.lane.b32.xlu0 %v5938_v24, %s5003_s15  ;;  %v4594_v51 = vpack.i.bf16 %v6014_v21, %v6011_v53  ;;  %v4589_v60 = vpack.i.bf16 %v6030_v38, %v6017_v34 }
 0x100   : > { %4545 = vrot.lane.b32.xlu1 %v7591_v22, %s5002_s14  ;;  %v4266_v16 = vpop.permute.xlu1 %4265  ;;  %v6055_v48 = vpack.i.bf16 %v430_v10, %v429_v42  ;;  %v1628_v20 = vsel %vm1599_vm0, %v287_v31, %v4032_v30  ;;  %v1629_v4 = vsel %vm1599_vm0, %v288_v11, %v4033_v57  ;;  %v4148_v63 = vunpack.i.h.bf16 %v5643_v27 }
 0x101   : > { %2211 = vmatprep.mubr.bf16.mxu0 %v1896_v1  ;;  %v4147_v15 = vunpack.i.l.bf16 %v5643_v27  ;;  %v4261_v35 = vpop.permute.xlu0 %4260  ;;  %v4213_v19 = vunpack.i.h.bf16 %v5867_v49  ;;  %v4212_v41 = vunpack.i.l.bf16 %v5867_v49  ;;  %v7592_v58 = vpack.i.bf16 %v5896_v3, %v5887_v36 }
 0x102   : > { %2212 = vmatmul.mubr.bf16.vlgmr.msra.gmra.mrb[0].mxu0 %v1895_v47  ;;  %v1639_v54 = vsel %vm1636_vm1, %v1602_v6, %v4057_v7  ;;  %v1640_v30 = vsel %vm1636_vm1, %v1603_v29, %v4058_v8  ;;  %v4258_v11 = vunpack.i.h.bf16 %v6004_v26  ;;  %v4257_v57 = vunpack.i.l.bf16 %v6004_v26 }
 0x103   : > { %v7593_v27 = vpack.i.bf16 %v5902_v28, %v5899_v56  ;;  %v1665_v49 = vsel %vm1636_vm1, %v1628_v20, %v4122_v61  ;;  %v1666_v42 = vsel %vm1636_vm1, %v1629_v4, %v4123_v14  ;;  %v4253_v36 = vunpack.i.h.bf16 %v6021_v59 }
 0x104   : > { %4555 = vrot.lane.b32.xlu1 %v7592_v58, %s5004_s20  ;;  %v4252_v3 = vunpack.i.l.bf16 %v6021_v59  ;;  %v4268_v7 = vunpack.i.h.bf16 %v4266_v16  ;;  %v4267_v10 = vunpack.i.l.bf16 %v4266_v16  ;;  %v4276_v31 = vpop.permute.xlu1 %4275  ;;  %v4263_v8 = vunpack.i.h.bf16 %v4261_v35 }
 0x105   : > { %4550 = vrot.lane.b32.xlu0 %v7593_v27, %s5004_s20  ;;  %v4262_v22 = vunpack.i.l.bf16 %v4261_v35  ;;  %v4271_v1 = vpop.permute.xlu0 %4270  ;;  %v6080_v26 = vsel %vm1673_vm2, %v1639_v54, %v4147_v15  ;;  %v6083_v56 = vsel %vm1673_vm2, %v1640_v30, %v4148_v63  ;;  %v4278_v28 = vunpack.i.h.bf16 %v4276_v31 }
 0x106   : > { %v4277_v61 = vunpack.i.l.bf16 %v4276_v31  ;;  %v1702_v6 = vsel %vm1673_vm2, %v1665_v49, %v4212_v41  ;;  %v1703_v59 = vsel %vm1673_vm2, %v1666_v42, %v4213_v19  ;;  %v4273_v14 = vunpack.i.h.bf16 %v4271_v1  ;;  %v6116_v49 = vld [vmem:[%s5051_s23 + $0xe6] sm:$0xff]  ;;  %v6119_v42 = vld [vmem:[%s5051_s23 + $0xee] sm:$0xff] }
 0x107   : > { %v4272_v47 = vunpack.i.l.bf16 %v4271_v1  ;;  %v7594_v29 = vpack.i.bf16 %v5913_v46, %v5910_v62  ;;  %v1739_v16 = vsel %vm1710_vm3, %v4212_v41, %v4257_v57  ;;  %v1740_v20 = vsel %vm1710_vm3, %v4213_v19, %v4258_v11 }
 0x108   : > { %4565 = vrot.lane.b32.xlu1 %v5938_v24, %s5000_s10  ;;  %v1714_v4 = vsel %vm1710_vm3, %v4148_v63, %v4253_v36  ;;  %v1713_v24 = vsel %vm1710_vm3, %v4147_v15, %v4252_v3  ;;  %v6097_v35 = vpop.permute.xlu1 %4285  ;;  %v1776_v58 = vsel %vm1747_vm4, %v1739_v16, %v4267_v10  ;;  %v1777_v54 = vsel %vm1747_vm4, %v1740_v20, %v4268_v7  ;;  %v6132_v7 = vld [vmem:[%s5051_s23 + $0xe5] sm:$0xff] }
 0x109   : > { %4560 = vrot.lane.b32.xlu0 %v7594_v29, %s5001_s13  ;;  %v1750_v30 = vsel %vm1747_vm4, %v1713_v24, %v4262_v22  ;;  %v1751_v62 = vsel %vm1747_vm4, %v1714_v4, %v4263_v8  ;;  %v4288_v46 = vunpack.i.h.bf16 %v6097_v35  ;;  %v4287_v19 = vunpack.i.l.bf16 %v6097_v35  ;;  %v6105_v41 = vpop.permute.xlu0 %4280  ;;  %v289_v29 = vld [vmem:[%s5051_s23 + $0xf0] sm:$0xff] }
 0x10a   : > { %v4283_v63 = vunpack.i.h.bf16 %v6105_v41  ;;  %v4282_v15 = vunpack.i.l.bf16 %v6105_v41  ;;  %v7595_v11 = vpack.i.bf16 %v5924_v55, %v5916_v44  ;;  %v1813_v57 = vsel %vm1784_vm5, %v1776_v58, %v4277_v61  ;;  %v6147_v61 = vld [vmem:[%s5051_s23 + $0xf6] sm:$0xff] }
 0x10b   : > { %v1814_v27 = vsel %vm1784_vm5, %v1777_v54, %v4278_v28  ;;  %v1787_v36 = vsel %vm1784_vm5, %v1750_v30, %v4272_v47  ;;  %v1788_v55 = vsel %vm1784_vm5, %v1751_v62, %v4273_v14  ;;  %v1850_v44 = vsel %vm1821_vm6, %v1813_v57, %v4287_v19  ;;  %v6144_v28 = vld [vmem:[%s5051_s23 + $0xed] sm:$0xff]  ;;  %v6150_v14 = vld [vmem:[%s5051_s23 + $0xfe] sm:$0xff]  ;;  %v6159_v24 = vld [vmem:[%s5051_s23 + $0xf5] sm:$0xff] }
 0x10c   : > { %4575 = vrot.lane.b32.xlu1 %v7595_v11, %s5002_s14  ;;  %v1851_v3 = vsel %vm1821_vm6, %v1814_v27, %v4288_v46  ;;  %v4037_v10 = vunpack.i.l.bf16 %v5410_v5  ;;  %v6135_v31 = vpop.permute.xlu1 %4295  ;;  %v1824_v8 = vsel %vm1821_vm6, %v1787_v36, %v4282_v15  ;;  %v1825_v22 = vsel %vm1821_vm6, %v1788_v55, %v4283_v63  ;;  %v6162_v58 = vld [vmem:[%s5051_s23 + $0xfd] sm:$0xff]  ;;  %v4696_v27 = vld [vmem:[%s7487_s2 + $0x88] sm:$0xff]  }
 0x10d   : > { %4570 = vrot.lane.b32.xlu0 %v5951_v33, %s5003_s15  ;;  %v1938_v1 = vpack.c.bf16 %v1851_v3, %v1850_v44  ;;  %v4038_v47 = vunpack.i.h.bf16 %v5410_v5  ;;  %v6154_v16 = vpop.permute.xlu0 %4290  ;;  %v1899_v20 = vpack.c.bf16 %v1825_v22, %v1824_v8  ;;  %v4614_v4 = vpack.i.bf16 %v6119_v42, %v6116_v49  ;;  %v290_v54 = vld [vmem:[%s5051_s23 + $0xf8] sm:$0xff] }
 0x10e   : > { %v4063_v30 = vunpack.i.h.bf16 %v5446_v32  ;;  %v4062_v62 = vunpack.i.l.bf16 %v5446_v32  ;;  %v7596_v5 = vpack.i.bf16 %v5963_v23, %v5960_v52  ;;  %v1898_v11 = vpack.c.bf16 %v6083_v56, %v6080_v26 }
 0x10f   : > { %2323 = vmatprep.mubr.bf16.mxu1 %v1938_v1  ;;  %v1937_v57 = vpack.c.bf16 %v1703_v59, %v1702_v6  ;;  %v4128_v36 = vunpack.i.h.bf16 %v5618_v2  ;;  %v4127_v55 = vunpack.i.l.bf16 %v5618_v2  ;;  %v7597_v32 = vpack.i.bf16 %v5976_v17, %v5973_v45  ;;  %2219 = vmatprep.mubr.bf16.mxu0 %v1899_v20 }
 0x110   : > { %4585 = vrot.lane.b32.xlu1 %v7596_v5, %s5002_s14  ;;  %v4609_v52 = vpack.i.bf16 %v6144_v28, %v6132_v7  ;;  %v4624_v23 = vpack.i.bf16 %v6150_v14, %v6147_v61  ;;  %v1630_v26 = vsel %vm1599_vm0, %v289_v29, %v4037_v10  ;;  %2220 = vmatmul.mubr.bf16.gmra.mrb[4].mxu0 %v1898_v11  ;;  %v4306_v56 = vpop.permute.xlu1 %4305  ;;  %v4042_v45 = vunpack.i.l.bf16 %v5420_v12 }
 0x111   : > { %4580 = vrot.lane.b32.xlu0 %v7597_v32, %s5004_s20  ;;  %2324 = vmatmul.mubr.bf16.vlgmr.msra.gmra.mrb[0].mxu1 %v1937_v57  ;;  %v4619_v2 = vpack.i.bf16 %v6162_v58, %v6159_v24  ;;  %v1631_v6 = vsel %vm1599_vm0, %v290_v54, %v4038_v47  ;;  %v4153_v17 = vunpack.i.h.bf16 %v5657_v40  ;;  %v4152_v59 = vunpack.i.l.bf16 %v5657_v40  ;;  %v4301_v44 = vpop.permute.xlu0 %4300 }
 0x112   : > { %3860 = vmatpush3.bf16.msra.mxu1 %v5494_v13  ;;  %v4218_v3 = vunpack.i.h.bf16 %v5842_v50  ;;  %v4217_v10 = vunpack.i.l.bf16 %v5842_v50  ;;  %v1641_v8 = vsel %vm1636_vm1, %v5945_v18, %v4062_v62  ;;  %v1642_v22 = vsel %vm1636_vm1, %v5954_v0, %v4063_v30  ;;  %v4697_v13 = vld [vmem:[%s7487_s2 + $0x90] sm:$0xff]   ;;  %v4698_v62 = vld [vmem:[%s7487_s2 + $0x98] sm:$0xff]  }
 0x113   : > { %3861 = vmatprep.subr.bf16.mxu1 %v4696_v27  ;;  %v4298_v40 = vunpack.i.h.bf16 %v6135_v31  ;;  %v4297_v50 = vunpack.i.l.bf16 %v6135_v31  ;;  %v1667_v53 = vsel %vm1636_vm1, %v1630_v26, %v4127_v55  ;;  %v1668_v18 = vsel %vm1636_vm1, %v1631_v6, %v4128_v36 }
 0x114   : > { %4595 = vrot.lane.b32.xlu1 %v4594_v51, %s5001_s13  ;;  %v4293_v0 = vunpack.i.h.bf16 %v6154_v16  ;;  %v4292_v21 = vunpack.i.l.bf16 %v6154_v16  ;;  %v4308_v51 = vunpack.i.h.bf16 %v4306_v56  ;;  %v4307_v1 = vunpack.i.l.bf16 %v4306_v56  ;;  %v4316_v47 = vpop.permute.xlu1 %4315 }
 0x115   : > { %4590 = vrot.lane.b32.xlu0 %v4589_v60, %s5004_s20  ;;  %v4303_v29 = vunpack.i.h.bf16 %v4301_v44  ;;  %v4302_v20 = vunpack.i.l.bf16 %v4301_v44  ;;  %v4311_v54 = vpop.permute.xlu0 %4310  ;;  %v6218_v31 = vsel %vm1673_vm2, %v1641_v8, %v4152_v59  ;;  %v6221_v34 = vsel %vm1673_vm2, %v1642_v22, %v4153_v17 }
 0x116   : > { %3862 = vmatpush3.bf16.msra.mxu1 %v4696_v27  ;;  %v4318_v38 = vunpack.i.h.bf16 %v4316_v47  ;;  %v4317_v60 = vunpack.i.l.bf16 %v4316_v47  ;;  %v6226_v16 = vsel %vm1673_vm2, %v1667_v53, %v4217_v10  ;;  %v6229_v30 = vsel %vm1673_vm2, %v1668_v18, %v4218_v3  ;;  %v6263_v53 = vld [vmem:[%s5051_s23 + $0x106] sm:$0xff] }
 0x117   : > { %3863 = vmatprep.subr.bf16.mxu1 %v4697_v13  ;;  %v1741_v5 = vsel %vm1710_vm3, %v4217_v10, %v4297_v50  ;;  %v1742_v11 = vsel %vm1710_vm3, %v4218_v3, %v4298_v40  ;;  %v4313_v57 = vunpack.i.h.bf16 %v4311_v54  ;;  %v4312_v27 = vunpack.i.l.bf16 %v4311_v54  ;;  %v394_v50 = vld [vmem:[%s5051_s23 + $0xdb] sm:$0xff]  ;;  %v432_v47 = vld [vmem:[%s5051_s23 + $0xec] sm:$0xff] }
 0x118   : > { %4605 = vrot.lane.b32.xlu1 %v6055_v48, %s5003_s15  ;;  %v1715_v36 = vsel %vm1710_vm3, %v4152_v59, %v4292_v21  ;;  %v1716_v55 = vsel %vm1710_vm3, %v4153_v17, %v4293_v0  ;;  %v1778_v32 = vsel %vm1747_vm4, %v1741_v5, %v4307_v1  ;;  %v1779_v26 = vsel %vm1747_vm4, %v1742_v11, %v4308_v51  ;;  %v6242_v56 = vpop.permute.xlu1 %4325  ;;  %v6251_v17 = vld [vmem:[%s5051_s23 + $0xd3] sm:$0xff]  ;;  %v291_v18 = vld [vmem:[%s5051_s23 + $0x100] sm:$0xff]  ;;  %v6304_v11 = vld [vmem:[%s5051_s23 + $0xeb] sm:$0xff] }
 0x119   : > { %4600 = vrot.lane.b32.xlu0 %v5951_v33, %s5000_s10  ;;  %v1752_v6 = vsel %vm1747_vm4, %v1715_v36, %v4302_v20  ;;  %v1753_v44 = vsel %vm1747_vm4, %v1716_v55, %v4303_v29  ;;  %v4328_v33 = vunpack.i.h.bf16 %v6242_v56  ;;  %v4327_v59 = vunpack.i.l.bf16 %v6242_v56  ;;  %v6248_v3 = vpop.permute.xlu0 %4320  ;;  %v4699_v21 = vld [vmem:[%s7487_s2 + $0xa0] ss:$0 sps:$4 sm:$0x33]   ;;  %v431_v1 = vld [vmem:[%s5051_s23 + $0xe4] sm:$0xff] }
 0x11a   : > { %3864 = vmatpush3.bf16.msra.mxu1 %v4697_v13  ;;  %v4323_v10 = vunpack.i.h.bf16 %v6248_v3  ;;  %v4322_v8 = vunpack.i.l.bf16 %v6248_v3  ;;  %v1815_v22 = vsel %vm1784_vm5, %v1778_v32, %v4317_v60  ;;  %v1816_v40 = vsel %vm1784_vm5, %v1779_v26, %v4318_v38  ;;  %v6266_v13 = vld [vmem:[%s5051_s23 + $0x10e] sm:$0xff]  ;;  %v6295_v29 = vld [vmem:[%s5051_s23 + $0xe3] sm:$0xff] }
 0x11b   : > { %3865 = vmatprep.subr.bf16.mxu1 %v4698_v62  ;;  %v1789_v49 = vsel %vm1784_vm5, %v1752_v6, %v4312_v27  ;;  %v1790_v42 = vsel %vm1784_vm5, %v1753_v44, %v4313_v57  ;;  %v1853_v0 = vsel %vm1821_vm6, %v1816_v40, %v4328_v33  ;;  %v4043_v20 = vunpack.i.h.bf16 %v5420_v12  ;;  %v6307_v57 = vld [vmem:[%s5051_s23 + $0x116] sm:$0xff]  ;;  %v6310_v27 = vld [vmem:[%s5051_s23 + $0x11e] sm:$0xff]  ;;  %v292_v36 = vld [vmem:[%s5051_s23 + $0x108] sm:$0xff] }
 0x11c   : > { %4615 = vrot.lane.b32.xlu1 %v4614_v4, %s5004_s20  ;;  %v1852_v4 = vsel %vm1821_vm6, %v1815_v22, %v4327_v59  ;;  %v6284_v7 = vpop.permute.xlu1 %4335  ;;  %v1826_v28 = vsel %vm1821_vm6, %v1789_v49, %v4322_v8  ;;  %v4629_v60 = vpack.i.bf16 %v394_v50, %v6251_v17  ;;  %v4644_v5 = vpack.i.bf16 %v6266_v13, %v6263_v53  ;;  %v7599_v22 = vld [vmem:[#allocation37_spill] sm:$0xff] }
 0x11d   : > { %4610 = vrot.lane.b32.xlu0 %v4609_v52, %s5002_s14  ;;  %v1827_v52 = vsel %vm1821_vm6, %v1790_v42, %v4323_v10  ;;  %v1941_v51 = vpack.c.bf16 %v1853_v0, %v1852_v4  ;;  %v6298_v54 = vpop.permute.xlu0 %4330  ;;  %v4068_v55 = vunpack.i.h.bf16 %v5440_v25  ;;  %v4067_v32 = vunpack.i.l.bf16 %v5440_v25 }
 0x11e   : > { %v1902_v38 = vpack.c.bf16 %v1827_v52, %v1826_v28  ;;  %3866 = vmatpush3.bf16.msra.mxu1 %v4698_v62  ;;  %v1901_v26 = vpack.c.bf16 %v6221_v34, %v6218_v31  ;;  %v1940_v6 = vpack.c.bf16 %v6229_v30, %v6226_v16  ;;  %v4133_v44 = vunpack.i.h.bf16 %v5639_v9  ;;  %v7598_v30 = vld [vmem:[#allocation36_spill] sm:$0xff] }
 0x11f   : > { %2331 = vmatprep.mubr.bf16.mxu1 %v1941_v51  ;;  %v4132_v62 = vunpack.i.l.bf16 %v5639_v9  ;;  %v6329_v25 = vpack.i.bf16 %v432_v47, %v431_v1  ;;  %v2177_v61 = vsel %vm2175_vm7, %v4699_v21, 0  ;;  %v3983_v14 = vunpack.i.h.bf16 %v5368_v37  ;;  %3937 = vmatprep.subr.msk.bf16.mxu1 %vm2175_vm7, %v4699_v21 }
 0x120   : > { %4625 = vrot.lane.b32.xlu1 %v4624_v23, %s5004_s20  ;;  %2227 = vmatprep.mubr.bf16.mxu0 %v1902_v38  ;;  %v1632_v23 = vsel %vm1599_vm0, %v291_v18, %v4042_v45  ;;  %v4346_v31 = vpop.permute.xlu1 %4345  ;;  %v4654_v9 = vpack.i.bf16 %v6304_v11, %v6295_v29  ;;  %v4649_v24 = vpack.i.bf16 %v6310_v27, %v6307_v57  ;;  %v4157_v34 = vunpack.i.l.bf16 %v5653_v39 }
 0x121   : > { %4620 = vrot.lane.b32.xlu0 %v4619_v2, %s5002_s14  ;;  %2228 = vmatmul.mubr.bf16.gmra.mrb[8].mxu0 %v1901_v26  ;;  %v1633_v58 = vsel %vm1599_vm0, %v292_v36, %v4043_v20  ;;  %v4158_v2 = vunpack.i.h.bf16 %v5653_v39  ;;  %v4341_v16 = vpop.permute.xlu0 %4340  ;;  %v4223_v12 = vunpack.i.h.bf16 %v5921_v43  ;;  %v4222_v45 = vunpack.i.l.bf16 %v5921_v43 }
 0x122   : > { %2332 = vmatmul.mubr.bf16.gmra.mrb[4].mxu1 %v1940_v6  ;;  %v1643_v17 = vsel %vm1636_vm1, %v7598_v30, %v4067_v32  ;;  %v1644_v40 = vsel %vm1636_vm1, %v7599_v22, %v4068_v55  ;;  %v4338_v50 = vunpack.i.h.bf16 %v6284_v7  ;;  %v4337_v39 = vunpack.i.l.bf16 %v6284_v7  ;;  %v511_v22 = vld [vmem:[%s5051_s23 + $0x126] sm:$0xff] }
 0x123   : > { %3868 = vmatpush3.bf16.msra.mxu1 %v2177_v61  ;;  %v1669_v53 = vsel %vm1636_vm1, %v1632_v23, %v4132_v62  ;;  %v1670_v43 = vsel %vm1636_vm1, %v1633_v58, %v4133_v44  ;;  %v4333_v13 = vunpack.i.h.bf16 %v6298_v54  ;;  %v4348_v18 = vunpack.i.h.bf16 %v4346_v31  ;;  %v514_v58 = vld [vmem:[%s5051_s23 + $0x13e] sm:$0xff] }
 0x124   : > { %4635 = vrot.lane.b32.xlu1 %v6055_v48, %s5000_s10  ;;  %v4332_v48 = vunpack.i.l.bf16 %v6298_v54  ;;  %v4347_v49 = vunpack.i.l.bf16 %v4346_v31  ;;  %v4356_v42 = vpop.permute.xlu1 %4355  ;;  %v4343_v4 = vunpack.i.h.bf16 %v4341_v16  ;;  %v4342_v0 = vunpack.i.l.bf16 %v4341_v16  ;;  %v513_v31 = vld [vmem:[%s5051_s23 + $0x136] sm:$0xff] }
 0x125   : > { %4630 = vrot.lane.b32.xlu0 %v4629_v60, %s5001_s13  ;;  %v4351_v21 = vpop.permute.xlu0 %4350  ;;  %v6360_v28 = vsel %vm1673_vm2, %v1643_v17, %v4157_v34  ;;  %v6363_v7 = vsel %vm1673_vm2, %v1644_v40, %v4158_v2  ;;  %v4358_v52 = vunpack.i.h.bf16 %v4356_v42  ;;  %v4357_v51 = vunpack.i.l.bf16 %v4356_v42  ;;  %v512_v40 = vld [vmem:[%s5051_s23 + $0x12e] sm:$0xff] }
 0x126   : > { %v1706_v1 = vsel %vm1673_vm2, %v1669_v53, %v4222_v45  ;;  %v1707_v47 = vsel %vm1673_vm2, %v1670_v43, %v4223_v12  ;;  %v1743_v29 = vsel %vm1710_vm3, %v4222_v45, %v4337_v39  ;;  %v1744_v20 = vsel %vm1710_vm3, %v4223_v12, %v4338_v50  ;;  %v267_v50 = vld [vmem:[%s5051_s23 + $0x40] sm:$0xff]  ;;  %v268_v39 = vld [vmem:[%s5051_s23 + $0x48] sm:$0xff]  ;;  %v293_v42 = vld [vmem:[%s5051_s23 + $0x110] sm:$0xff] }
 0x127   : > { %v4353_v54 = vunpack.i.h.bf16 %v4351_v21  ;;  %v4352_v38 = vunpack.i.l.bf16 %v4351_v21  ;;  %v1718_v60 = vsel %vm1710_vm3, %v4158_v2, %v4333_v13  ;;  %v1717_v11 = vsel %vm1710_vm3, %v4157_v34, %v4332_v48  ;;  %v7600_v53 = vld [vmem:[#allocation3_spill] sm:$0xff] }
 0x128   : > { %4645 = vrot.lane.b32.xlu1 %v4644_v5, %s5004_s20  ;;  %v1780_v5 = vsel %vm1747_vm4, %v1743_v29, %v4347_v49  ;;  %v1781_v57 = vsel %vm1747_vm4, %v1744_v20, %v4348_v18  ;;  %v6376_v27 = vpop.permute.xlu1 %4365  ;;  %v1754_v36 = vsel %vm1747_vm4, %v1717_v11, %v4342_v0  ;;  %v1755_v55 = vsel %vm1747_vm4, %v1718_v60, %v4343_v4  ;;  %v294_v4 = vld [vmem:[%s5051_s23 + $0x118] sm:$0xff]  ;;  %v7601_v0 = vld [vmem:[#allocation4_spill] sm:$0xff] }
 0x129   : > { %4640 = vrot.lane.b32.xlu0 %v6329_v25, %s5003_s15  ;;  %v4368_v32 = vunpack.i.h.bf16 %v6376_v27  ;;  %v4367_v26 = vunpack.i.l.bf16 %v6376_v27  ;;  %v6382_v6 = vpop.permute.xlu0 %4360  ;;  %v1817_v61 = vsel %vm1784_vm5, %v1780_v5, %v4357_v51  ;;  %v1818_v23 = vsel %vm1784_vm5, %v1781_v57, %v4358_v52  ;;  %v7602_v51 = vld [vmem:[#allocation2_spill] sm:$0xff] }
 0x12a   : > { %v4363_v44 = vunpack.i.h.bf16 %v6382_v6  ;;  %v4362_v62 = vunpack.i.l.bf16 %v6382_v6  ;;  %v1791_v2 = vsel %vm1784_vm5, %v1754_v36, %v4352_v38  ;;  %v1792_v34 = vsel %vm1784_vm5, %v1755_v55, %v4353_v54  ;;  %v7603_v54 = vld [vmem:[#allocation5_spill] sm:$0xff] }
 0x12b   : > { %v1854_v16 = vsel %vm1821_vm6, %v1817_v61, %v4367_v26  ;;  %v3982_v12 = vunpack.i.l.bf16 %v5368_v37  ;;  %v4048_v43 = vunpack.i.h.bf16 %v7600_v53  ;;  %v4047_v13 = vunpack.i.l.bf16 %v7600_v53  ;;  %v7605_v61 = vld [vmem:[#allocation34_spill] sm:$0xff] }
 0x12c   : > { %4655 = vrot.lane.b32.xlu1 %v4654_v9, %s5001_s13  ;;  %v1855_v9 = vsel %vm1821_vm6, %v1818_v23, %v4368_v32  ;;  %v6401_v45 = vpop.permute.xlu1 %4375  ;;  %v1829_v30 = vsel %vm1821_vm6, %v1792_v34, %v4363_v44  ;;  %v4674_v49 = vpack.i.bf16 %v514_v58, %v513_v31  ;;  %v4073_v21 = vunpack.i.h.bf16 %v7601_v0  ;;  %s7147_s13 = scalar_lea.vmem %s7489_s4, %s7113_s8 }
 0x12d   : > { %4650 = vrot.lane.b32.xlu0 %v4649_v24, %s5004_s20  ;;  %v1828_v24 = vsel %vm1821_vm6, %v1791_v2, %v4362_v62  ;;  %v1944_v17 = vpack.c.bf16 %v1855_v9, %v1854_v16  ;;  %v4371_v48 = vpop.permute.xlu0 %4370  ;;  %v4072_v52 = vunpack.i.l.bf16 %v7601_v0  ;;  %v1904_v29 = vpack.c.bf16 %v6363_v7, %v6360_v28 }
 0x12e   : > { %v1905_v18 = vpack.c.bf16 %v1829_v30, %v1828_v24  ;;  %v1943_v20 = vpack.c.bf16 %v1707_v47, %v1706_v1  ;;  %v4138_v38 = vunpack.i.h.bf16 %v7603_v54  ;;  %v4137_v60 = vunpack.i.l.bf16 %v7603_v54  ;;  %v7604_v1 = vld [vmem:[#allocation7_spill] sm:$0xff] }
 0x12f   : > { %2339 = vmatprep.mubr.bf16.mxu1 %v1944_v17  ;;  %v4669_v11 = vpack.i.bf16 %v512_v40, %v511_v22  ;;  %v1608_v5 = vsel %vm1599_vm0, %v267_v50, %v3982_v12  ;;  %v1609_v57 = vsel %vm1599_vm0, %v268_v39, %v3983_v14  ;;  %v1634_v28 = vsel %vm1599_vm0, %v293_v42, %v4047_v13 }
 0x130   : > { %4665 = vrot.lane.b32.xlu1 %v7602_v51, %s5003_s15  ;;  %2235 = vmatprep.mubr.bf16.mxu0 %v1905_v18  ;;  %v4386_v36 = vpop.permute.xlu1 %4385  ;;  %v1635_v7 = vsel %vm1599_vm0, %v294_v4, %v4048_v43  ;;  %v4163_v47 = vunpack.i.h.bf16 %v7604_v1  ;;  %v4162_v55 = vunpack.i.l.bf16 %v7604_v1  ;;  %v4228_v23 = vunpack.i.h.bf16 %v7605_v61 }
 0x131   : > { %4660 = vrot.lane.b32.xlu0 %v6329_v25, %s5000_s10  ;;  %2236 = vmatmul.mubr.bf16.gmra.mrb[12].mxu0 %v1904_v29  ;;  %v4381_v25 = vpop.permute.xlu0 %4380  ;;  %v4227_v31 = vunpack.i.l.bf16 %v7605_v61  ;;  %v1645_v37 = vsel %vm1636_vm1, %v1608_v5, %v4072_v52  ;;  %v1646_v14 = vsel %vm1636_vm1, %v1609_v57, %v4073_v21  ;;  %v4378_v58 = vunpack.i.h.bf16 %v6401_v45 }
 0x132   : > { %2340 = vmatmul.mubr.bf16.gmra.mrb[8].mxu1 %v1943_v20  ;;  %v4377_v2 = vunpack.i.l.bf16 %v6401_v45  ;;  %v1671_v34 = vsel %vm1636_vm1, %v1634_v28, %v4137_v60  ;;  %v1672_v16 = vsel %vm1636_vm1, %v1635_v7, %v4138_v38  ;;  %v4373_v9 = vunpack.i.h.bf16 %v4371_v48 }
 0x133   : > { %v4372_v12 = vunpack.i.l.bf16 %v4371_v48  ;;  %v4388_v24 = vunpack.i.h.bf16 %v4386_v36  ;;  %v4387_v30 = vunpack.i.l.bf16 %v4386_v36  ;;  %v4383_v22 = vunpack.i.h.bf16 %v4381_v25 }
 0x134   : > { %4675 = vrot.lane.b32.xlu1 %v4674_v49, %s5004_s20  ;;  %v4396_v17 = vpop.permute.xlu1 %4395  ;;  %v4382_v40 = vunpack.i.l.bf16 %v4381_v25  ;;  %v1682_v39 = vsel %vm1673_vm2, %v1645_v37, %v4162_v55  ;;  %v1683_v53 = vsel %vm1673_vm2, %v1646_v14, %v4163_v47  ;;  %v1708_v13 = vsel %vm1673_vm2, %v1671_v34, %v4227_v31 }
 0x135   : > { %4670 = vrot.lane.b32.xlu0 %v4669_v11, %s5004_s20  ;;  %v4391_v50 = vpop.permute.xlu0 %4390  ;;  %v4398_v43 = vunpack.i.h.bf16 %v4396_v17  ;;  %v4397_v45 = vunpack.i.l.bf16 %v4396_v17  ;;  %v1709_v18 = vsel %vm1673_vm2, %v1672_v16, %v4228_v23  ;;  %v1745_v49 = vsel %vm1710_vm3, %v4227_v31, %v4377_v2 }
 0x136   : > { %v1746_v48 = vsel %vm1710_vm3, %v4228_v23, %v4378_v58  ;;  %v4393_v42 = vunpack.i.h.bf16 %v4391_v50  ;;  %v4392_v4 = vunpack.i.l.bf16 %v4391_v50  ;;  %v1719_v0 = vsel %vm1710_vm3, %v4162_v55, %v4372_v12 }
 0x137   : > { %v1720_v21 = vsel %vm1710_vm3, %v4163_v47, %v4373_v9  ;;  %v1782_v52 = vsel %vm1747_vm4, %v1745_v49, %v4387_v30  ;;  %v1783_v51 = vsel %vm1747_vm4, %v1746_v48, %v4388_v24  ;;  %v1756_v20 = vsel %vm1747_vm4, %v1719_v0, %v4382_v40  ;;  %v7606_v24 = vld [vmem:[#allocation6_spill] sm:$0xff] }
 0x138   : > { %v6455_v29 = vpop.permute.xlu1 %4405  ;;  %v1757_v54 = vsel %vm1747_vm4, %v1720_v21, %v4383_v22  ;;  %v1819_v36 = vsel %vm1784_vm5, %v1782_v52, %v4397_v45  ;;  %v1820_v28 = vsel %vm1784_vm5, %v1783_v51, %v4398_v43  ;;  %v1793_v7 = vsel %vm1784_vm5, %v1756_v20, %v4392_v4 }
 0x139   : > { %v4408_v38 = vunpack.i.h.bf16 %v6455_v29  ;;  %v4407_v60 = vunpack.i.l.bf16 %v6455_v29  ;;  %v6461_v11 = vpop.permute.xlu0 %4400  ;;  %v1794_v1 = vsel %vm1784_vm5, %v1757_v54, %v4393_v42  ;;  %v1946_v58 = vpack.c.bf16 %v1709_v18, %v1708_v13 }
 0x13a   : > { %v4403_v5 = vunpack.i.h.bf16 %v6461_v11  ;;  %v4402_v57 = vunpack.i.l.bf16 %v6461_v11  ;;  %v1907_v16 = vpack.c.bf16 %v1683_v53, %v1682_v39  ;;  %v7607_v30 = vunpack.i.h.bf16 %v7606_v24 }
 0x13b   : > { %v1856_v47 = vsel %vm1821_vm6, %v1819_v36, %v4407_v60  ;;  %v1857_v55 = vsel %vm1821_vm6, %v1820_v28, %v4408_v38  ;;  %v7608_v22 = vunpack.i.l.bf16 %v7606_v24 }
 0x13c   : > { %v4416_v25 = vpop.permute.xlu1 %4415  ;;  %v1830_v61 = vsel %vm1821_vm6, %v1793_v7, %v4402_v57  ;;  %v1831_v23 = vsel %vm1821_vm6, %v1794_v1, %v4403_v5  ;;  %v1947_v31 = vpack.c.bf16 %v1857_v55, %v1856_v47  ;;  %v7609_v55 = vld [vmem:[#allocation35_spill] sm:$0xff] }
 0x13d   : > { %v4411_v37 = vpop.permute.xlu0 %4410  ;;  %v1908_v14 = vpack.c.bf16 %v1831_v23, %v1830_v61  ;;  %v4418_v9 = vunpack.i.h.bf16 %v4416_v25  ;;  %v4417_v12 = vunpack.i.l.bf16 %v4416_v25  ;;  %v7610_v25 = vunpack.i.h.bf16 %v7609_v55 }
 0x13e   : > { %v4413_v2 = vunpack.i.h.bf16 %v4411_v37  ;;  %v4412_v34 = vunpack.i.l.bf16 %v4411_v37  ;;  %2347 = vmatprep.mubr.bf16.mxu1 %v1947_v31  ;;  %v7611_v23 = vunpack.i.l.bf16 %v7609_v55 }
 0x13f   : > { %2243 = vmatprep.mubr.bf16.mxu0 %v1908_v14  ;;  %2348 = vmatmul.mubr.bf16.gmra.mrb[12].mxu1 %v1946_v58  ;;  %v7612_v58 = vld [vmem:[#allocation9_spill] sm:$0xff] }
 0x140   : > { %v1722_v17 = vsel %vm1710_vm3, %v7607_v30, %v4413_v2  ;;  %v1721_v40 = vsel %vm1710_vm3, %v7608_v22, %v4412_v34  ;;  %2244 = vmatmul.mubr.bf16.gmra.mrb[16].mxu0 %v1907_v16  ;;  %v6487_v50 = vpop.permute.xlu1 %4425  ;;  %v7613_v2 = vld [vmem:[#allocation8_spill] sm:$0xff] }
 0x141   : > { %v4428_v43 = vunpack.i.h.bf16 %v6487_v50  ;;  %v4427_v45 = vunpack.i.l.bf16 %v6487_v50  ;;  %v4421_v39 = vpop.permute.xlu0 %4420  ;;  %v1758_v18 = vsel %vm1747_vm4, %v1721_v40, %v4417_v12  ;;  %v1759_v49 = vsel %vm1747_vm4, %v1722_v17, %v4418_v9  ;;  %v7615_v12 = vld [vmem:[#allocation11_spill] sm:$0xff] }
 0x142   : > { %v4423_v53 = vunpack.i.h.bf16 %v4421_v39  ;;  %v4422_v13 = vunpack.i.l.bf16 %v4421_v39  ;;  %v7616_v24 = vunpack.i.l.bf16 %v7615_v12  ;;  %v7617_v17 = vunpack.i.h.bf16 %v7615_v12 }
 0x144   : > { %v4436_v48 = vpop.permute.xlu1 %4435  ;;  %v1795_v42 = vsel %vm1784_vm5, %v1758_v18, %v4422_v13  ;;  %v1796_v4 = vsel %vm1784_vm5, %v1759_v49, %v4423_v53 }
 0x145   : > { %v4438_v0 = vunpack.i.h.bf16 %v4436_v48  ;;  %v4437_v21 = vunpack.i.l.bf16 %v4436_v48  ;;  %v4431_v52 = vpop.permute.xlu0 %4430  ;;  %v1832_v51 = vsel %vm1821_vm6, %v1795_v42, %v4427_v45  ;;  %v1833_v20 = vsel %vm1821_vm6, %v1796_v4, %v4428_v43 }
 0x146   : > { %v4433_v54 = vunpack.i.h.bf16 %v4431_v52  ;;  %v4432_v36 = vunpack.i.l.bf16 %v4431_v52  ;;  %v1911_v28 = vpack.c.bf16 %v1833_v20, %v1832_v51 }
 0x147   : > { %v1861_v7 = vsel %vm1858_vm8, %v4282_v15, %v4437_v21  ;;  %v1862_v1 = vsel %vm1858_vm8, %v4283_v63, %v4438_v0  ;;  %v7614_v15 = vpack.c.bf16 %v7612_v58, %v7613_v2  ;;  %v7619_v58 = vld [vmem:[#allocation15_spill] sm:$0xff] }
 0x148   : > { %v1900_v47 = vpack.c.bf16 %v1862_v1, %v1861_v7  ;;  %v1860_v61 = vsel %vm1858_vm8, %v7610_v25, %v4433_v54  ;;  %v1859_v31 = vsel %vm1858_vm8, %v7611_v23, %v4432_v36  ;;  %2251 = vmatprep.mubr.bf16.mxu0 %v1911_v28  ;;  %v4446_v37 = vpop.permute.xlu1 %4445 }
 0x149   : > { %v4441_v14 = vpop.permute.xlu0 %4440  ;;  %2252 = vmatmul.mubr.bf16.gmra.mrb[20].mxu0 %v7614_v15  ;;  %v1897_v41 = vpack.c.bf16 %v1860_v61, %v1859_v31  ;;  %v4448_v16 = vunpack.i.h.bf16 %v4446_v37  ;;  %v4447_v9 = vunpack.i.l.bf16 %v4446_v37 }
 0x14a   : > { %v4443_v34 = vunpack.i.h.bf16 %v4441_v14  ;;  %v4442_v63 = vunpack.i.l.bf16 %v4441_v14  ;;  %v7618_v14 = vld [vmem:[#allocation16_spill] sm:$0xff] }
 0x14b   : > { %3869 = vmatprep.mubr.msk.bf16.mxu1 %vm2120_vm9, %v1897_v41  ;;  %v7620_v2 = vpack.c.bf16 %v7618_v14, %v7619_v58 }
 0x14c   : > { %v1723_v30 = vsel %vm1710_vm3, %v7616_v24, %v4442_v63  ;;  %v1724_v22 = vsel %vm1710_vm3, %v7617_v17, %v4443_v34  ;;  %3870 = vmatmul.mubr.msk.bf16.vlgmr.msra.gmra.mrb[16].mxu1 %vm2120_vm9, %v1900_v47  ;;  %v6524_v40 = vpop.permute.xlu1 %4455 }
 0x14d   : > { %v4458_v39 = vunpack.i.h.bf16 %v6524_v40  ;;  %v4457_v53 = vunpack.i.l.bf16 %v6524_v40  ;;  %v4451_v13 = vpop.permute.xlu0 %4450  ;;  %v1760_v48 = vsel %vm1747_vm4, %v1723_v30, %v4447_v9  ;;  %v1761_v42 = vsel %vm1747_vm4, %v1724_v22, %v4448_v16 }
 0x14e   : > { %v4453_v18 = vunpack.i.h.bf16 %v4451_v13  ;;  %v4452_v49 = vunpack.i.l.bf16 %v4451_v13 }
 0x150   : > { %v4466_v4 = vpop.permute.xlu1 %4465  ;;  %v1797_v0 = vsel %vm1784_vm5, %v1760_v48, %v4452_v49  ;;  %v1798_v21 = vsel %vm1784_vm5, %v1761_v42, %v4453_v18 }
 0x151   : > { %v4468_v52 = vunpack.i.h.bf16 %v4466_v4  ;;  %v4467_v51 = vunpack.i.l.bf16 %v4466_v4  ;;  %v4461_v20 = vpop.permute.xlu0 %4460  ;;  %v1834_v54 = vsel %vm1821_vm6, %v1797_v0, %v4457_v53  ;;  %v1835_v36 = vsel %vm1821_vm6, %v1798_v21, %v4458_v39 }
 0x152   : > { %v4463_v28 = vunpack.i.h.bf16 %v4461_v20  ;;  %v4462_v7 = vunpack.i.l.bf16 %v4461_v20  ;;  %v1914_v1 = vpack.c.bf16 %v1835_v36, %v1834_v54 }
 0x153   : > { %v1865_v47 = vsel %vm1858_vm8, %v4362_v62, %v4467_v51  ;;  %v1866_v55 = vsel %vm1858_vm8, %v4363_v44, %v4468_v52 }
 0x154   : > { %v1863_v25 = vsel %vm1858_vm8, %v4322_v8, %v4462_v7  ;;  %v1864_v61 = vsel %vm1858_vm8, %v4323_v10, %v4463_v28  ;;  %2259 = vmatprep.mubr.bf16.mxu0 %v1914_v1  ;;  %v4476_v23 = vpop.permute.xlu1 %4475  ;;  %v1906_v31 = vpack.c.bf16 %v1866_v55, %v1865_v47  ;;  %v7621_v8 = vld [vmem:[#allocation10_spill] sm:$0xff] }
 0x155   : > { %v4471_v37 = vpop.permute.xlu0 %4470  ;;  %2260 = vmatmul.mubr.bf16.gmra.mrb[24].mxu0 %v7620_v2  ;;  %v1903_v62 = vpack.c.bf16 %v1864_v61, %v1863_v25  ;;  %v4478_v44 = vunpack.i.h.bf16 %v4476_v23  ;;  %v4477_v41 = vunpack.i.l.bf16 %v4476_v23  ;;  %v7622_v34 = vunpack.i.h.bf16 %v7621_v8  ;;  %v7624_v61 = vld [vmem:[#allocation13_spill] sm:$0xff]  ;;  %v7625_v23 = vld [vmem:[#allocation12_spill] sm:$0xff] }
 0x156   : > { %v4473_v6 = vunpack.i.h.bf16 %v4471_v37  ;;  %v4472_v15 = vunpack.i.l.bf16 %v4471_v37  ;;  %v7623_v10 = vunpack.i.l.bf16 %v7621_v8 }
 0x157   : > { %3873 = vmatprep.mubr.msk.bf16.mxu1 %vm2120_vm9, %v1903_v62 }
 0x158   : > { %v1726_v3 = vsel %vm1710_vm3, %v7622_v34, %v4473_v6  ;;  %v1725_v63 = vsel %vm1710_vm3, %v7623_v10, %v4472_v15  ;;  %3874 = vmatmul.mubr.msk.bf16.gmra.mrb[20].mxu1 %vm2120_vm9, %v1906_v31  ;;  %v4486_v16 = vpop.permute.xlu1 %4485  ;;  %v7626_v31 = vpack.c.bf16 %v7624_v61, %v7625_v23 }
 0x159   : > { %v4488_v9 = vunpack.i.h.bf16 %v4486_v16  ;;  %v4487_v12 = vunpack.i.l.bf16 %v4486_v16  ;;  %v4481_v24 = vpop.permute.xlu0 %4480  ;;  %v1762_v22 = vsel %vm1747_vm4, %v1725_v63, %v4477_v41  ;;  %v1763_v13 = vsel %vm1747_vm4, %v1726_v3, %v4478_v44 }
 0x15a   : > { %v4483_v30 = vunpack.i.h.bf16 %v4481_v24  ;;  %v4482_v17 = vunpack.i.l.bf16 %v4481_v24 }
 0x15c   : > { %v4496_v18 = vpop.permute.xlu1 %4495  ;;  %v1799_v49 = vsel %vm1784_vm5, %v1762_v22, %v4482_v17  ;;  %v1800_v48 = vsel %vm1784_vm5, %v1763_v13, %v4483_v30 }
 0x15d   : > { %v4498_v42 = vunpack.i.h.bf16 %v4496_v18  ;;  %v4497_v4 = vunpack.i.l.bf16 %v4496_v18  ;;  %v4491_v0 = vpop.permute.xlu0 %4490  ;;  %v1836_v21 = vsel %vm1821_vm6, %v1799_v49, %v4487_v12  ;;  %v1837_v52 = vsel %vm1821_vm6, %v1800_v48, %v4488_v9 }
 0x15e   : > { %v4493_v51 = vunpack.i.h.bf16 %v4491_v0  ;;  %v4492_v20 = vunpack.i.l.bf16 %v4491_v0  ;;  %v1917_v54 = vpack.c.bf16 %v1837_v52, %v1836_v21 }
 0x15f   : > { %v1869_v36 = vsel %vm1858_vm8, %v4427_v45, %v4497_v4  ;;  %v1870_v28 = vsel %vm1858_vm8, %v4428_v43, %v4498_v42 }
 0x160   : > { %v1867_v7 = vsel %vm1858_vm8, %v4402_v57, %v4492_v20  ;;  %v1868_v1 = vsel %vm1858_vm8, %v4403_v5, %v4493_v51  ;;  %2267 = vmatprep.mubr.bf16.mxu0 %v1917_v54  ;;  %v4506_v47 = vpop.permute.xlu1 %4505  ;;  %v1912_v55 = vpack.c.bf16 %v1870_v28, %v1869_v36  ;;  %v7627_v57 = vld [vmem:[#allocation17_spill] sm:$0xff]  ;;  %v7630_v54 = vld [vmem:[#allocation22_spill] sm:$0xff] }
 0x161   : > { %v4501_v25 = vpop.permute.xlu0 %4500  ;;  %2268 = vmatmul.mubr.bf16.gmra.mrb[28].mxu0 %v7626_v31  ;;  %v1909_v45 = vpack.c.bf16 %v1868_v1, %v1867_v7  ;;  %v4508_v43 = vunpack.i.h.bf16 %v4506_v47  ;;  %v4507_v14 = vunpack.i.l.bf16 %v4506_v47  ;;  %v7628_v58 = vunpack.i.l.bf16 %v7627_v57  ;;  %v7631_v36 = vld [vmem:[#allocation21_spill] sm:$0xff] }
 0x162   : > { %v4503_v50 = vunpack.i.h.bf16 %v4501_v25  ;;  %v4502_v37 = vunpack.i.l.bf16 %v4501_v25  ;;  %v7629_v5 = vunpack.i.h.bf16 %v7627_v57  ;;  %v7632_v28 = vpack.c.bf16 %v7630_v54, %v7631_v36 }
 0x163   : > { %3877 = vmatprep.mubr.msk.bf16.mxu1 %vm2120_vm9, %v1909_v45 }
 0x164   : > { %v1727_v11 = vsel %vm1710_vm3, %v7628_v58, %v4502_v37  ;;  %v1728_v2 = vsel %vm1710_vm3, %v7629_v5, %v4503_v50  ;;  %3878 = vmatmul.mubr.msk.bf16.gmra.mrb[24].mxu1 %vm2120_vm9, %v1912_v55  ;;  %v4516_v62 = vpop.permute.xlu1 %4515 }
 0x165   : > { %v4518_v6 = vunpack.i.h.bf16 %v4516_v62  ;;  %v4517_v15 = vunpack.i.l.bf16 %v4516_v62  ;;  %v4511_v44 = vpop.permute.xlu0 %4510  ;;  %v1764_v34 = vsel %vm1747_vm4, %v1727_v11, %v4507_v14  ;;  %v1765_v3 = vsel %vm1747_vm4, %v1728_v2, %v4508_v43 }
 0x166   : > { %v4513_v41 = vunpack.i.h.bf16 %v4511_v44  ;;  %v4512_v8 = vunpack.i.l.bf16 %v4511_v44 }
 0x168   : > { %v4526_v10 = vpop.permute.xlu1 %4525  ;;  %v1801_v63 = vsel %vm1784_vm5, %v1764_v34, %v4512_v8  ;;  %v1802_v16 = vsel %vm1784_vm5, %v1765_v3, %v4513_v41 }
 0x169   : > { %v4528_v24 = vunpack.i.h.bf16 %v4526_v10  ;;  %v4527_v30 = vunpack.i.l.bf16 %v4526_v10  ;;  %v4521_v17 = vpop.permute.xlu0 %4520  ;;  %v1838_v22 = vsel %vm1821_vm6, %v1801_v63, %v4517_v15  ;;  %v1839_v13 = vsel %vm1821_vm6, %v1802_v16, %v4518_v6 }
 0x16a   : > { %v4523_v18 = vunpack.i.h.bf16 %v4521_v17  ;;  %v4522_v49 = vunpack.i.l.bf16 %v4521_v17  ;;  %v1920_v48 = vpack.c.bf16 %v1839_v13, %v1838_v22  ;;  %v7636_v13 = vld [vmem:[#allocation19_spill] sm:$0xff] }
 0x16b   : > { %v1873_v42 = vsel %vm1858_vm8, %v4487_v12, %v4527_v30  ;;  %v1874_v4 = vsel %vm1858_vm8, %v4488_v9, %v4528_v24 }
 0x16c   : > { %v1872_v0 = vsel %vm1858_vm8, %v4458_v39, %v4523_v18  ;;  %v1871_v21 = vsel %vm1858_vm8, %v4457_v53, %v4522_v49  ;;  %2275 = vmatprep.mubr.bf16.mxu0 %v1920_v48  ;;  %v4536_v52 = vpop.permute.xlu1 %4535  ;;  %v1918_v51 = vpack.c.bf16 %v1874_v4, %v1873_v42  ;;  %v7633_v39 = vld [vmem:[#allocation14_spill] sm:$0xff] }
 0x16d   : > { %v4531_v20 = vpop.permute.xlu0 %4530  ;;  %2276 = vmatmul.mubr.bf16.gmra.mrb[32].mxu0 %v7632_v28  ;;  %v1915_v7 = vpack.c.bf16 %v1872_v0, %v1871_v21  ;;  %v4538_v9 = vunpack.i.h.bf16 %v4536_v52  ;;  %v4537_v47 = vunpack.i.l.bf16 %v4536_v52  ;;  %v7634_v55 = vunpack.i.h.bf16 %v7633_v39  ;;  %v7637_v18 = vld [vmem:[#allocation18_spill] sm:$0xff]  ;;  %v7639_v52 = vld [vmem:[#allocation23_spill] sm:$0xff] }
 0x16e   : > { %v4533_v12 = vunpack.i.h.bf16 %v4531_v20  ;;  %v4532_v1 = vunpack.i.l.bf16 %v4531_v20  ;;  %v7635_v53 = vunpack.i.l.bf16 %v7633_v39  ;;  %v7638_v49 = vpack.c.bf16 %v7636_v13, %v7637_v18  ;;  %v7645_v18 = vld [vmem:[#allocation20_spill] sm:$0xff] }
 0x16f   : > { %3881 = vmatprep.mubr.msk.bf16.mxu1 %vm2120_vm9, %v1915_v7 }
 0x170   : > { %v1730_v40 = vsel %vm1710_vm3, %v7634_v55, %v4533_v12  ;;  %v1729_v25 = vsel %vm1710_vm3, %v7635_v53, %v4532_v1  ;;  %3882 = vmatmul.mubr.msk.bf16.gmra.mrb[28].mxu1 %vm2120_vm9, %v1918_v51  ;;  %v7640_v51 = vunpack.i.l.bf16 %v7639_v52 }
 0x171   : > { %v4541_v45 = vpop.permute.xlu0 %4540  ;;  %v1766_v43 = vsel %vm1747_vm4, %v1729_v25, %v4537_v47  ;;  %v1767_v14 = vsel %vm1747_vm4, %v1730_v40, %v4538_v9 }
 0x172   : > { %v4546_v61 = vpop.permute.xlu1 %4545  ;;  %v4543_v50 = vunpack.i.h.bf16 %v4541_v45  ;;  %v4542_v37 = vunpack.i.l.bf16 %v4541_v45 }
 0x173   : > { %v4548_v23 = vunpack.i.h.bf16 %v4546_v61  ;;  %v4547_v31 = vunpack.i.l.bf16 %v4546_v61 }
 0x174   : > { %v1803_v58 = vsel %vm1784_vm5, %v1766_v43, %v4542_v37  ;;  %v1804_v11 = vsel %vm1784_vm5, %v1767_v14, %v4543_v50 }
 0x175   : > { %v1840_v44 = vsel %vm1821_vm6, %v1803_v58, %v4547_v31  ;;  %v1841_v41 = vsel %vm1821_vm6, %v1804_v11, %v4548_v23  ;;  %v7642_v11 = vld [vmem:[#allocation28_spill] sm:$0xff] }
 0x176   : > { %v4556_v57 = vpop.permute.xlu1 %4555  ;;  %v1923_v3 = vpack.c.bf16 %v1841_v41, %v1840_v44 }
 0x177   : > { %v4558_v5 = vunpack.i.h.bf16 %v4556_v57  ;;  %v4557_v2 = vunpack.i.l.bf16 %v4556_v57  ;;  %v4551_v62 = vpop.permute.xlu0 %4550 }
 0x178   : > { %v4553_v8 = vunpack.i.h.bf16 %v4551_v62  ;;  %v4552_v34 = vunpack.i.l.bf16 %v4551_v62  ;;  %2283 = vmatprep.mubr.bf16.mxu0 %v1923_v3 }
 0x179   : > { %v1877_v10 = vsel %vm1858_vm8, %v4547_v31, %v4557_v2  ;;  %v1878_v63 = vsel %vm1858_vm8, %v4548_v23, %v4558_v5  ;;  %2284 = vmatmul.mubr.bf16.gmra.mrb[36].mxu0 %v7638_v49  ;;  %v7643_v5 = vld [vmem:[#allocation27_spill] sm:$0xff]  ;;  %v7646_v49 = vunpack.i.l.bf16 %v7645_v18 }
 0x17a   : > { %v1876_v16 = vsel %vm1858_vm8, %v4518_v6, %v4553_v8  ;;  %v1875_v24 = vsel %vm1858_vm8, %v4517_v15, %v4552_v34  ;;  %v4566_v30 = vpop.permute.xlu1 %4565  ;;  %v1924_v17 = vpack.c.bf16 %v1878_v63, %v1877_v10  ;;  %v7641_v15 = vunpack.i.h.bf16 %v7639_v52 }
 0x17b   : > { %v4561_v22 = vpop.permute.xlu0 %4560  ;;  %v1921_v48 = vpack.c.bf16 %v1876_v16, %v1875_v24  ;;  %v4568_v0 = vunpack.i.h.bf16 %v4566_v30  ;;  %v4567_v21 = vunpack.i.l.bf16 %v4566_v30  ;;  %v7644_v2 = vpack.c.bf16 %v7642_v11, %v7643_v5 }
 0x17c   : > { %v4563_v42 = vunpack.i.h.bf16 %v4561_v22  ;;  %v4562_v4 = vunpack.i.l.bf16 %v4561_v22 }
 0x17d   : > { %3885 = vmatprep.mubr.msk.bf16.mxu1 %vm2120_vm9, %v1921_v48 }
 0x17e   : > { %v1731_v6 = vsel %vm1710_vm3, %v7640_v51, %v4562_v4  ;;  %v1732_v20 = vsel %vm1710_vm3, %v7641_v15, %v4563_v42  ;;  %3886 = vmatmul.mubr.msk.bf16.gmra.mrb[32].mxu1 %vm2120_vm9, %v1924_v17  ;;  %v4576_v54 = vpop.permute.xlu1 %4575  ;;  %v7647_v42 = vunpack.i.h.bf16 %v7645_v18 }
 0x17f   : > { %v4578_v36 = vunpack.i.h.bf16 %v4576_v54  ;;  %v4577_v28 = vunpack.i.l.bf16 %v4576_v54  ;;  %v4571_v7 = vpop.permute.xlu0 %4570  ;;  %v1768_v9 = vsel %vm1747_vm4, %v1731_v6, %v4567_v21  ;;  %v1769_v47 = vsel %vm1747_vm4, %v1732_v20, %v4568_v0 }
 0x180   : > { %v4573_v12 = vunpack.i.h.bf16 %v4571_v7  ;;  %v4572_v1 = vunpack.i.l.bf16 %v4571_v7 }
 0x182   : > { %v4586_v39 = vpop.permute.xlu1 %4585  ;;  %v1805_v55 = vsel %vm1784_vm5, %v1768_v9, %v4572_v1  ;;  %v1806_v40 = vsel %vm1784_vm5, %v1769_v47, %v4573_v12 }
 0x183   : > { %v4581_v53 = vpop.permute.xlu0 %4580  ;;  %v1842_v25 = vsel %vm1821_vm6, %v1805_v55, %v4577_v28  ;;  %v1843_v61 = vsel %vm1821_vm6, %v1806_v40, %v4578_v36  ;;  %v4588_v50 = vunpack.i.h.bf16 %v4586_v39  ;;  %v4587_v37 = vunpack.i.l.bf16 %v4586_v39 }
 0x184   : > { %v4583_v23 = vunpack.i.h.bf16 %v4581_v53  ;;  %v4582_v31 = vunpack.i.l.bf16 %v4581_v53  ;;  %v1926_v45 = vpack.c.bf16 %v1843_v61, %v1842_v25 }
 0x186   : > { %v1880_v43 = vsel %vm1858_vm8, %v4578_v36, %v4583_v23  ;;  %v1879_v14 = vsel %vm1858_vm8, %v4577_v28, %v4582_v31  ;;  %2291 = vmatprep.mubr.bf16.mxu0 %v1926_v45  ;;  %v4596_v57 = vpop.permute.xlu1 %4595  ;;  %v7648_v31 = vld [vmem:[#allocation25_spill] sm:$0xff]  ;;  %v7649_v45 = vld [vmem:[#allocation24_spill] sm:$0xff] }
 0x187   : > { %v4591_v58 = vpop.permute.xlu0 %4590  ;;  %2292 = vmatmul.mubr.bf16.gmra.mrb[40].mxu0 %v7644_v2  ;;  %v1927_v62 = vpack.c.bf16 %v1880_v43, %v1879_v14  ;;  %v4598_v8 = vunpack.i.h.bf16 %v4596_v57  ;;  %v4597_v34 = vunpack.i.l.bf16 %v4596_v57 }
 0x188   : > { %v4593_v44 = vunpack.i.h.bf16 %v4591_v58  ;;  %v4592_v41 = vunpack.i.l.bf16 %v4591_v58 }
 0x189   : > { %3889 = vmatprep.mubr.msk.bf16.mxu1 %vm2120_vm9, %v1927_v62  ;;  %v1733_v48 = vsel %vm1710_vm3, %v7646_v49, %v4597_v34  ;;  %v1734_v4 = vsel %vm1710_vm3, %v7647_v42, %v4598_v8 }
 0x18a   : > { %v1882_v3 = vsel %vm1858_vm8, %v4588_v50, %v4593_v44  ;;  %v1881_v10 = vsel %vm1858_vm8, %v4587_v37, %v4592_v41  ;;  %v4606_v63 = vpop.permute.xlu1 %4605  ;;  %v7651_v44 = vld [vmem:[#allocation29_spill] sm:$0xff] }
 0x18b   : > { %v4608_v16 = vunpack.i.h.bf16 %v4606_v63  ;;  %v4607_v24 = vunpack.i.l.bf16 %v4606_v63  ;;  %v4601_v30 = vpop.permute.xlu0 %4600  ;;  %v1930_v17 = vpack.c.bf16 %v1882_v3, %v1881_v10  ;;  %v7652_v41 = vunpack.i.l.bf16 %v7651_v44 }
 0x18c   : > { %v4603_v22 = vunpack.i.h.bf16 %v4601_v30  ;;  %v4602_v13 = vunpack.i.l.bf16 %v4601_v30  ;;  %v7653_v34 = vunpack.i.h.bf16 %v7651_v44 }
 0x18d   : > { %3890 = vmatmul.mubr.msk.bf16.gmra.mrb[36].mxu1 %vm2120_vm9, %v1930_v17 }
 0x18e   : > { %v1771_v0 = vsel %vm1747_vm4, %v1734_v4, %v4603_v22  ;;  %v1770_v21 = vsel %vm1747_vm4, %v1733_v48, %v4602_v13  ;;  %v4616_v52 = vpop.permute.xlu1 %4615 }
 0x18f   : > { %v4618_v51 = vunpack.i.h.bf16 %v4616_v52  ;;  %v4617_v6 = vunpack.i.l.bf16 %v4616_v52  ;;  %v4611_v15 = vpop.permute.xlu0 %4610  ;;  %v1807_v20 = vsel %vm1784_vm5, %v1770_v21, %v4607_v24  ;;  %v1808_v54 = vsel %vm1784_vm5, %v1771_v0, %v4608_v16 }
 0x190   : > { %v4613_v36 = vunpack.i.h.bf16 %v4611_v15  ;;  %v4612_v28 = vunpack.i.l.bf16 %v4611_v15  ;;  %v1844_v7 = vsel %vm1821_vm6, %v1807_v20, %v4587_v37  ;;  %v1845_v12 = vsel %vm1821_vm6, %v1808_v54, %v4588_v50 }
 0x191   : > { %v1929_v1 = vpack.c.bf16 %v1845_v12, %v1844_v7  ;;  %v7650_v37 = vpack.c.bf16 %v7648_v31, %v7649_v45 }
 0x192   : > { %v1884_v9 = vsel %vm1858_vm8, %v4613_v36, %v4618_v51  ;;  %v1883_v47 = vsel %vm1858_vm8, %v4612_v28, %v4617_v6  ;;  %v4626_v39 = vpop.permute.xlu1 %4625 }
 0x193   : > { %v4628_v55 = vunpack.i.h.bf16 %v4626_v39  ;;  %v4627_v40 = vunpack.i.l.bf16 %v4626_v39  ;;  %v6665_v53 = vpop.permute.xlu0 %4620  ;;  %2299 = vmatprep.mubr.bf16.mxu0 %v1929_v1  ;;  %v1933_v25 = vpack.c.bf16 %v1884_v9, %v1883_v47  ;;  %v7654_v1 = vld [vmem:[#allocation33_spill] sm:$0xff]  ;;  %v7655_v9 = vld [vmem:[#allocation32_spill] sm:$0xff] }
 0x194   : > { %v4623_v61 = vunpack.i.h.bf16 %v6665_v53  ;;  %v4622_v23 = vunpack.i.l.bf16 %v6665_v53  ;;  %2300 = vmatmul.mubr.bf16.gmra.mrb[44].mxu0 %v7650_v37  ;;  %v7656_v47 = vpack.c.bf16 %v7654_v1, %v7655_v9 }
 0x195   : > { %3893 = vmatprep.mubr.msk.bf16.mxu1 %vm2120_vm9, %v1933_v25  ;;  %v7657_v25 = vld [vmem:[#allocation26_spill] sm:$0xff] }
 0x196   : > { %v1886_v50 = vsel %vm1858_vm8, %v4623_v61, %v4628_v55  ;;  %v1885_v43 = vsel %vm1858_vm8, %v4622_v23, %v4627_v40  ;;  %v4636_v14 = vpop.permute.xlu1 %4635  ;;  %v7658_v31 = vunpack.i.l.bf16 %v7657_v25  ;;  %v7659_v56 = vunpack.i.h.bf16 %v7657_v25 }
 0x197   : > { %v4631_v57 = vpop.permute.xlu0 %4630  ;;  %v1936_v58 = vpack.c.bf16 %v1886_v50, %v1885_v43  ;;  %v4638_v2 = vunpack.i.h.bf16 %v4636_v14  ;;  %v4637_v62 = vunpack.i.l.bf16 %v4636_v14 }
 0x198   : > { %v4633_v11 = vunpack.i.h.bf16 %v4631_v57  ;;  %v4632_v5 = vunpack.i.l.bf16 %v4631_v57 }
 0x199   : > { %3894 = vmatmul.mubr.msk.bf16.gmra.mrb[40].mxu1 %vm2120_vm9, %v1936_v58 }
 0x19a   : > { %v1735_v8 = vsel %vm1710_vm3, %v7652_v41, %v4632_v5  ;;  %v1736_v3 = vsel %vm1710_vm3, %v7653_v34, %v4633_v11  ;;  %v4646_v10 = vpop.permute.xlu1 %4645 }
 0x19b   : > { %v4648_v63 = vunpack.i.h.bf16 %v4646_v10  ;;  %v4647_v16 = vunpack.i.l.bf16 %v4646_v10  ;;  %v4641_v24 = vpop.permute.xlu0 %4640  ;;  %v1772_v18 = vsel %vm1747_vm4, %v1735_v8, %v4637_v62  ;;  %v1773_v49 = vsel %vm1747_vm4, %v1736_v3, %v4638_v2  ;;  %v7660_v10 = vld [vmem:[#allocation31_spill] sm:$0xff] }
 0x19c   : > { %v4643_v30 = vunpack.i.h.bf16 %v4641_v24  ;;  %v4642_v17 = vunpack.i.l.bf16 %v4641_v24 }
 0x19d   : > { %v1887_v22 = vsel %vm1858_vm8, %v4287_v19, %v4647_v16  ;;  %v1888_v13 = vsel %vm1858_vm8, %v4288_v46, %v4648_v63  ;;  %v7661_v63 = vld [vmem:[#allocation30_spill] sm:$0xff] }
 0x19e   : > { %v4656_v48 = vpop.permute.xlu1 %4655  ;;  %v1939_v42 = vpack.c.bf16 %v1888_v13, %v1887_v22  ;;  %v1809_v4 = vsel %vm1784_vm5, %v1772_v18, %v4642_v17  ;;  %v1810_v0 = vsel %vm1784_vm5, %v1773_v49, %v4643_v30  ;;  %v7662_v16 = vpack.c.bf16 %v7660_v10, %v7661_v63 }
 0x19f   : > { %v4651_v21 = vpop.permute.xlu0 %4650  ;;  %v1846_v52 = vsel %vm1821_vm6, %v1809_v4, %v4612_v28  ;;  %v1847_v51 = vsel %vm1821_vm6, %v1810_v0, %v4613_v36  ;;  %v4658_v46 = vunpack.i.h.bf16 %v4656_v48  ;;  %v4657_v15 = vunpack.i.l.bf16 %v4656_v48 }
 0x1a0   : > { %v4653_v19 = vunpack.i.h.bf16 %v4651_v21  ;;  %v4652_v6 = vunpack.i.l.bf16 %v4651_v21  ;;  %3897 = vmatprep.mubr.msk.bf16.mxu1 %vm2120_vm9, %v1939_v42  ;;  %v1932_v35 = vpack.c.bf16 %v1847_v51, %v1846_v52 }
 0x1a2   : > { %v1890_v20 = vsel %vm1858_vm8, %v4328_v33, %v4653_v19  ;;  %v1889_v54 = vsel %vm1858_vm8, %v4327_v59, %v4652_v6  ;;  %2307 = vmatprep.mubr.bf16.mxu0 %v1932_v35  ;;  %v4666_v7 = vpop.permute.xlu1 %4665  ;;  %v1737_v33 = vsel %vm1710_vm3, %v7658_v31, %v4657_v15  ;;  %v1738_v59 = vsel %vm1710_vm3, %v7659_v56, %v4658_v46 }
 0x1a3   : > { %v4668_v28 = vunpack.i.h.bf16 %v4666_v7  ;;  %v4667_v12 = vunpack.i.l.bf16 %v4666_v7  ;;  %v4661_v36 = vpop.permute.xlu0 %4660  ;;  %2308 = vmatmul.mubr.bf16.gmra.mrb[48].mxu0 %v7656_v47  ;;  %v1942_v39 = vpack.c.bf16 %v1890_v20, %v1889_v54 }
 0x1a4   : > { %v4663_v55 = vunpack.i.h.bf16 %v4661_v36  ;;  %v4662_v40 = vunpack.i.l.bf16 %v4661_v36 }
 0x1a5   : > { %3898 = vmatmul.mubr.msk.bf16.gmra.mrb[44].mxu1 %vm2120_vm9, %v1942_v39 }
 0x1a6   : > { %v1775_v45 = vsel %vm1747_vm4, %v1738_v59, %v4663_v55  ;;  %v1774_v37 = vsel %vm1747_vm4, %v1737_v33, %v4662_v40  ;;  %v4676_v50 = vpop.permute.xlu1 %4675  ;;  %v6763_v40 = vld [vmem:[%s7488_s3] ss:$0 sm:$0xff] }
 0x1a7   : > { %v4678_v43 = vunpack.i.h.bf16 %v4676_v50  ;;  %v4677_v14 = vunpack.i.l.bf16 %v4676_v50  ;;  %v4671_v57 = vpop.permute.xlu0 %4670  ;;  %v1811_v58 = vsel %vm1784_vm5, %v1774_v37, %v4667_v12  ;;  %v1812_v11 = vsel %vm1784_vm5, %v1775_v45, %v4668_v28 }
 0x1a8   : > { %v4673_v5 = vunpack.i.h.bf16 %v4671_v57  ;;  %v4672_v2 = vunpack.i.l.bf16 %v4671_v57  ;;  %v1848_v62 = vsel %vm1821_vm6, %v1811_v58, %v4622_v23  ;;  %v1849_v44 = vsel %vm1821_vm6, %v1812_v11, %v4623_v61 }
 0x1a9   : > { %v1893_v41 = vsel %vm1858_vm8, %v4407_v60, %v4677_v14  ;;  %v1894_v8 = vsel %vm1858_vm8, %v4408_v38, %v4678_v43  ;;  %v1935_v34 = vpack.c.bf16 %v1849_v44, %v1848_v62 }
 0x1aa   : > { %v1892_v3 = vsel %vm1858_vm8, %v4368_v32, %v4673_v5  ;;  %v1891_v23 = vsel %vm1858_vm8, %v4367_v26, %v4672_v2  ;;  %v1948_v53 = vpack.c.bf16 %v1894_v8, %v1893_v41 }
 0x1ab   : > { %2315 = vmatprep.mubr.bf16.mxu0 %v1935_v34  ;;  %v1945_v61 = vpack.c.bf16 %v1892_v3, %v1891_v23 }
 0x1ac   : > { %2316 = vmatmul.mubr.bf16.gmra.mrb[52].mxu0 %v7662_v16 }
 0x1ad   : > { %3901 = vmatprep.mubr.msk.bf16.mxu1 %vm2120_vm9, %v1945_v61 }
 0x1ae   : > { %3902 = vmatmul.mubr.msk.bf16.gmra.mrb[48].mxu1 %vm2120_vm9, %v1948_v53 }
 0x1d5   : > { %v2213_v29 = vpop.f32.mrb[0].mxu0 }
 0x1d6   : > { %v2215_v38 = vpop.f32.mrb[1].mxu0  ;;  %v2214_v59 = vadd.f32 %v6763_v40, %v2213_v29 }
 0x1d7   : > { %v2216_v60 = vpop.f32.mrb[2].mxu0 }
 0x1d8   : > { %v2218_v24 = vpop.f32.mrb[3].mxu0  ;;  %v2217_v57 = vadd.f32 %v6763_v40, %v2216_v60 }
 0x1e3   : > { %v2221_v32 = vpop.f32.mrb[4].mxu0 }
 0x1e4   : > { %v6742_v30 = vpop.f32.mrb[0].mxu1  ;;  %v2223_v27 = vpop.f32.mrb[5].mxu0  ;;  %v2222_v33 = vadd.f32 %v6763_v40, %v2221_v32 }
 0x1e5   : > { %v2327_v26 = vpop.f32.mrb[1].mxu1  ;;  %v2224_v17 = vpop.f32.mrb[6].mxu0 }
 0x1e6   : > { %v6744_v22 = vpop.f32.mrb[2].mxu1  ;;  %v2226_v13 = vpop.f32.mrb[7].mxu0  ;;  %v2225_v50 = vadd.f32 %v6763_v40, %v2224_v17 }
 0x1e7   : > { %v2330_v18 = vpop.f32.mrb[3].mxu1 }
 0x1f4   : > { %v2229_v49 = vpop.f32.mrb[8].mxu0 }
 0x1f5   : > { %v6746_v48 = vpop.f32.mrb[4].mxu1  ;;  %v2231_v42 = vpop.f32.mrb[9].mxu0  ;;  %v2230_v3 = vadd.f32 %v6763_v40, %v2229_v49 }
 0x1f6   : > { %v2335_v4 = vpop.f32.mrb[5].mxu1  ;;  %v2232_v0 = vpop.f32.mrb[10].mxu0 }
 0x1f7   : > { %v6748_v21 = vpop.f32.mrb[6].mxu1  ;;  %v2234_v52 = vpop.f32.mrb[11].mxu0  ;;  %v2233_v29 = vadd.f32 %v6763_v40, %v2232_v0 }
 0x1f8   : > { %v2338_v51 = vpop.f32.mrb[7].mxu1 }
 0x204   : > { %v2237_v19 = vpop.f32.mrb[12].mxu0 }
 0x205   : > { %v6750_v6 = vpop.f32.mrb[8].mxu1  ;;  %v2239_v35 = vpop.f32.mrb[13].mxu0  ;;  %v2238_v8 = vadd.f32 %v6763_v40, %v2237_v19 }
 0x206   : > { %v2343_v46 = vpop.f32.mrb[9].mxu1  ;;  %v2240_v15 = vpop.f32.mrb[14].mxu0 }
 0x207   : > { %v6752_v20 = vpop.f32.mrb[10].mxu1  ;;  %v2242_v54 = vpop.f32.mrb[15].mxu0  ;;  %v2241_v10 = vadd.f32 %v6763_v40, %v2240_v15 }
 0x208   : > { %v2346_v7 = vpop.f32.mrb[11].mxu1 }
 0x212   : > { %v6754_v28 = vpop.f32.mrb[12].mxu1 }
 0x213   : > { %v2245_v12 = vpop.f32.mrb[16].mxu0  ;;  %v2351_v36 = vpop.f32.mrb[13].mxu1 }
 0x214   : > { %v2247_v1 = vpop.f32.mrb[17].mxu0  ;;  %v6756_v9 = vpop.f32.mrb[14].mxu1  ;;  %v2246_v0 = vadd.f32 %v6763_v40, %v2245_v12 }
 0x215   : > { %v6758_v47 = vpop.f32.mrb[18].mxu0  ;;  %v2354_v39 = vpop.f32.mrb[15].mxu1 }
 0x216   : > { %v2250_v55 = vpop.f32.mrb[19].mxu0  ;;  %v2249_v54 = vadd.f32 %v6763_v40, %v6758_v47 }
 0x21c   : > { %v2253_v25 = vpop.f32.mrb[20].mxu0 }
 0x21d   : > { %v2255_v31 = vpop.f32.mrb[21].mxu0  ;;  %v2254_v42 = vadd.f32 %v6763_v40, %v2253_v25 }
 0x21e   : > { %v2256_v56 = vpop.f32.mrb[22].mxu0 }
 0x21f   : > { %v2258_v45 = vpop.f32.mrb[23].mxu0  ;;  %v3871_v37 = vpop.f32.mrb[16].mxu1  ;;  %v2257_v35 = vadd.f32 %v6763_v40, %v2256_v56 }
 0x220   : > { %v6768_v43 = vadd.f32 %v3871_v37, %v2222_v33  ;;  %v2390_v14 = vpop.f32.mrb[17].mxu1 }
 0x221   : > { %v6771_v58 = vadd.f32 %v2390_v14, %v2214_v59  ;;  %v3872_v11 = vpop.f32.mrb[18].mxu1 }
 0x222   : > { %4700 = vtanh.f32 %v6768_v43  ;;  %v6774_v5 = vadd.f32 %v3872_v11, %v2225_v50  ;;  %v2393_v2 = vpop.f32.mrb[19].mxu1 }
 0x223   : > { %v6776_v62 = vadd.f32 %v2393_v2, %v2217_v57  ;;  %4702 = vtanh.f32 %v6771_v58 }
 0x224   : > { %4704 = vtanh.f32 %v6774_v5 }
 0x225   : > { %4706 = vtanh.f32 %v6776_v62 }
 0x228   : > { %v2261_v44 = vpop.f32.mrb[24].mxu0 }
 0x229   : > { %v2263_v41 = vpop.f32.mrb[25].mxu0  ;;  %v2262_v59 = vadd.f32 %v6763_v40, %v2261_v44 }
 0x22a   : > { %v6781_v34 = vpop.f32.mrb[26].mxu0 }
 0x22b   : > { %v2266_v23 = vpop.f32.mrb[27].mxu0  ;;  %v3875_v53 = vpop.f32.mrb[20].mxu1  ;;  %v2265_v41 = vadd.f32 %v6763_v40, %v6781_v34 }
 0x22c   : > { %v4701_v61 = vpop.eup %4700  ;;  %v6786_v63 = vadd.f32 %v3875_v53, %v2238_v8  ;;  %v2406_v16 = vpop.f32.mrb[21].mxu1 }
 0x22d   : > { %v6789_v38 = vadd.f32 %v2406_v16, %v2230_v3  ;;  %v3876_v60 = vpop.f32.mrb[22].mxu1  ;;  %2897 = vrot.lane.b32.xlu0 %v4701_v61, %s5005_s6  ;;  %v4703_v26 = vpop.eup %4702 }
 0x22e   : > { %4708 = vtanh.f32 %v6786_v63  ;;  %v6793_v24 = vadd.f32 %v3876_v60, %v2241_v10  ;;  %v2409_v32 = vpop.f32.mrb[23].mxu1  ;;  %v4705_v17 = vpop.eup %4704 }
 0x22f   : > { %v6795_v27 = vadd.f32 %v2409_v32, %v2233_v29  ;;  %4710 = vtanh.f32 %v6789_v38  ;;  %2899 = vrot.lane.b32.xlu1 %v4705_v17, %s5005_s6  ;;  %v4707_v18 = vpop.eup %4706 }
 0x230   : > { %4712 = vtanh.f32 %v6793_v24 }
 0x231   : > { %2893 = vrot.lane.b32.xlu0 %v4703_v26, %s5005_s6 }
 0x233   : > { %2895 = vrot.lane.b32.xlu1 %v4707_v18, %s5005_s6 }
 0x234   : > { %v2269_v13 = vpop.f32.mrb[28].mxu0 }
 0x235   : > { %v2271_v49 = vpop.f32.mrb[29].mxu0  ;;  %v2270_v33 = vadd.f32 %v6763_v40, %v2269_v13 }
 0x236   : > { %v2272_v4 = vpop.f32.mrb[30].mxu0 }
 0x237   : > { %v2274_v52 = vpop.f32.mrb[31].mxu0  ;;  %v3879_v51 = vpop.f32.mrb[24].mxu1  ;;  %v2273_v14 = vadd.f32 %v6763_v40, %v2272_v4 }
 0x238   : > { %v4709_v19 = vpop.eup %4708  ;;  %v6805_v46 = vadd.f32 %v3879_v51, %v2254_v42  ;;  %v2422_v15 = vpop.f32.mrb[25].mxu1 }
 0x239   : > { %v6809_v7 = vadd.f32 %v2422_v15, %v2246_v0  ;;  %v3880_v36 = vpop.f32.mrb[26].mxu1  ;;  %2905 = vrot.lane.b32.xlu0 %v4709_v19, %s5005_s6  ;;  %v4711_v55 = vpop.eup %4710 }
 0x23a   : > { %4714 = vtanh.f32 %v6805_v46  ;;  %v6813_v12 = vadd.f32 %v3880_v36, %v2257_v35  ;;  %v2425_v1 = vpop.f32.mrb[27].mxu1  ;;  %v4713_v25 = vpop.eup %4712 }
 0x23b   : > { %4716 = vtanh.f32 %v6795_v27  ;;  %v6816_v39 = vadd.f32 %v2425_v1, %v2249_v54  ;;  %2907 = vrot.lane.b32.xlu1 %v4713_v25, %s5005_s6 }
 0x23c   : > { %4718 = vtanh.f32 %v6809_v7 }
 0x23d   : > { %2901 = vrot.lane.b32.xlu0 %v4711_v55, %s5005_s6  ;;  %4720 = vtanh.f32 %v6813_v12 }
 0x23e   : > { %4722 = vtanh.f32 %v6816_v39 }
 0x240   : > { %v2277_v47 = vpop.f32.mrb[32].mxu0 }
 0x241   : > { %v2279_v31 = vpop.f32.mrb[33].mxu0  ;;  %v2278_v26 = vadd.f32 %v6763_v40, %v2277_v47 }
 0x242   : > { %v2280_v56 = vpop.f32.mrb[34].mxu0 }
 0x243   : > { %v2282_v45 = vpop.f32.mrb[35].mxu0  ;;  %v3883_v37 = vpop.f32.mrb[28].mxu1  ;;  %v2281_v0 = vadd.f32 %v6763_v40, %v2280_v56 }
 0x244   : > { %v4715_v50 = vpop.eup %4714  ;;  %v6826_v57 = vadd.f32 %v3883_v37, %v2270_v33  ;;  %v2438_v11 = vpop.f32.mrb[29].mxu1 }
 0x245   : > { %v4717_v2 = vpop.eup %4716  ;;  %v6830_v8 = vadd.f32 %v2438_v11, %v2262_v59  ;;  %v3884_v3 = vpop.f32.mrb[30].mxu1  ;;  %2913 = vrot.lane.b32.xlu0 %v4715_v50, %s5005_s6 }
 0x246   : > { %2903 = vrot.lane.b32.xlu1 %v4717_v2, %s5005_s6  ;;  %v6834_v44 = vadd.f32 %v3884_v3, %v2273_v14  ;;  %v2441_v23 = vpop.f32.mrb[31].mxu1  ;;  %v4719_v61 = vpop.eup %4718 }
 0x247   : > { %4724 = vtanh.f32 %v6830_v8  ;;  %v6837_v53 = vadd.f32 %v2441_v23, %v2265_v41  ;;  %v4721_v10 = vpop.eup %4720 }
 0x248   : > { %4726 = vtanh.f32 %v6826_v57  ;;  %v4723_v60 = vpop.eup %4722 }
 0x249   : > { %2909 = vrot.lane.b32.xlu0 %v4719_v61, %s5005_s6  ;;  %4728 = vtanh.f32 %v6837_v53 }
 0x24a   : > { %2915 = vrot.lane.b32.xlu1 %v4721_v10, %s5005_s6 }
 0x24c   : > { %v2285_v34 = vpop.f32.mrb[36].mxu0 }
 0x24d   : > { %v2286_v16 = vadd.f32 %v6763_v40, %v2285_v34  ;;  %v2287_v29 = vpop.f32.mrb[37].mxu0 }
 0x24e   : > { %v2288_v32 = vpop.f32.mrb[38].mxu0  ;;  %2911 = vrot.lane.b32.xlu1 %v4723_v60, %s5005_s6 }
 0x24f   : > { %v2289_v17 = vadd.f32 %v6763_v40, %v2288_v32  ;;  %v2290_v13 = vpop.f32.mrb[39].mxu0 }
 0x251   : > { %v3887_v18 = vpop.f32.mrb[32].mxu1  ;;  %v4725_v4 = vpop.eup %4724 }
 0x252   : > { %v6846_v49 = vadd.f32 %v3887_v18, %v2286_v16  ;;  %v2454_v42 = vpop.f32.mrb[33].mxu1  ;;  %2917 = vrot.lane.b32.xlu0 %v4725_v4, %s5005_s6  ;;  %v4727_v54 = vpop.eup %4726 }
 0x253   : > { %v6850_v52 = vadd.f32 %v2454_v42, %v2278_v26  ;;  %v3888_v51 = vpop.f32.mrb[34].mxu1  ;;  %v4729_v47 = vpop.eup %4728 }
 0x254   : > { %v6852_v19 = vadd.f32 %v3888_v51, %v2289_v17  ;;  %v2457_v35 = vpop.f32.mrb[35].mxu1  ;;  %2919 = vrot.lane.b32.xlu1 %v4729_v47, %s5005_s6 }
 0x255   : > { %4730 = vtanh.f32 %v6850_v52  ;;  %v6856_v15 = vadd.f32 %v2457_v35, %v2281_v0  ;;  %v2334_v35 = vadd.f32 %v6763_v40, %v6746_v48 }
 0x256   : > { %4732 = vtanh.f32 %v6834_v44  ;;  %2921 = vrot.lane.b32.xlu0 %v4727_v54, %s5005_s6 }
 0x257   : > { %4734 = vtanh.f32 %v6846_v49 }
 0x258   : > { %4736 = vtanh.f32 %v6856_v15 }
 0x259   : > { %4738 = vtanh.f32 %v6852_v19 }
 0x25a   : > { %v2293_v36 = vpop.f32.mrb[40].mxu0 }
 0x25b   : > { %v2295_v1 = vpop.f32.mrb[41].mxu0  ;;  %v2294_v33 = vadd.f32 %v6763_v40, %v2293_v36 }
 0x25c   : > { %v2296_v55 = vpop.f32.mrb[42].mxu0  ;;  %v2326_v1 = vadd.f32 %v6763_v40, %v6742_v30 }
 0x25d   : > { %v2298_v25 = vpop.f32.mrb[43].mxu0  ;;  %v2297_v37 = vadd.f32 %v6763_v40, %v2296_v55 }
 0x25f   : > { %v4731_v31 = vpop.eup %4730 }
 0x260   : > { %v3891_v56 = vpop.f32.mrb[36].mxu1  ;;  %2925 = vrot.lane.b32.xlu0 %v4731_v31, %s5005_s6  ;;  %v4733_v59 = vpop.eup %4732 }
 0x261   : > { %v2470_v45 = vpop.f32.mrb[37].mxu1  ;;  %2923 = vrot.lane.b32.xlu1 %v4733_v59, %s5005_s6  ;;  %v4735_v11 = vpop.eup %4734 }
 0x262   : > { %v6868_v50 = vadd.f32 %v2470_v45, %v2294_v33  ;;  %v3892_v14 = vpop.f32.mrb[38].mxu1  ;;  %v4737_v23 = vpop.eup %4736  ;;  %v2337_v45 = vadd.f32 %v6763_v40, %v6748_v21 }
 0x263   : > { %v2473_v2 = vpop.f32.mrb[39].mxu1  ;;  %v4739_v32 = vpop.eup %4738 }
 0x264   : > { %4740 = vtanh.f32 %v6868_v50  ;;  %v6871_v41 = vadd.f32 %v2473_v2, %v2297_v37  ;;  %2929 = vrot.lane.b32.xlu0 %v4735_v11, %s5005_s6 }
 0x265   : > { %2927 = vrot.lane.b32.xlu1 %v4737_v23, %s5005_s6 }
 0x266   : > { %4742 = vtanh.f32 %v6871_v41 }
 0x267   : > { %v2301_v3 = vpop.f32.mrb[44].mxu0 }
 0x268   : > { %v2302_v61 = vadd.f32 %v6763_v40, %v2301_v3  ;;  %v2303_v10 = vpop.f32.mrb[45].mxu0 }
 0x269   : > { %v2304_v34 = vpop.f32.mrb[46].mxu0  ;;  %2931 = vrot.lane.b32.xlu1 %v4739_v32, %s5005_s6  ;;  %v3800_v10 = vmul.f32 -1.442695, %v6768_v43  ;;  %v2345_v43 = vadd.f32 %v6763_v40, %v6752_v20 }
 0x26a   : > { %v6877_v16 = vadd.f32 %v3891_v56, %v2302_v61  ;;  %v2305_v29 = vadd.f32 %v6763_v40, %v2304_v34  ;;  %v2306_v60 = vpop.f32.mrb[47].mxu0  ;;  %v2350_v61 = vadd.f32 %v6763_v40, %v6754_v28 }
 0x26c   : > { %v6880_v26 = vadd.f32 %v3892_v14, %v2305_v29  ;;  %v3895_v17 = vpop.f32.mrb[40].mxu1  ;;  %v2329_v14 = vadd.f32 %v6763_v40, %v6744_v22  ;;  %v2342_v29 = vadd.f32 %v6763_v40, %v6750_v6 }
 0x26d   : > { %v2486_v13 = vpop.f32.mrb[41].mxu1 }
 0x26e   : > { %v4741_v18 = vpop.eup %4740  ;;  %v3896_v42 = vpop.f32.mrb[42].mxu1 }
 0x26f   : > { %v2489_v4 = vpop.f32.mrb[43].mxu1  ;;  %2933 = vrot.lane.b32.xlu0 %v4741_v18, %s5005_s6 }
 0x270   : > { %v4743_v0 = vpop.eup %4742 }
 0x271   : > { %2935 = vrot.lane.b32.xlu1 %v4743_v0, %s5005_s6  ;;  %v2353_v0 = vadd.f32 %v6763_v40, %v6756_v9 }
 0x276   : > { %v2309_v51 = vpop.f32.mrb[48].mxu0 }
 0x277   : > { %v2310_v54 = vadd.f32 %v6763_v40, %v2309_v51  ;;  %v2311_v36 = vpop.f32.mrb[49].mxu0 }
 0x278   : > { %v2312_v55 = vpop.f32.mrb[50].mxu0  ;;  %v3899_v47 = vpop.f32.mrb[44].mxu1 }
 0x279   : > { %v6890_v25 = vadd.f32 %v2486_v13, %v2310_v54  ;;  %v2313_v31 = vadd.f32 %v6763_v40, %v2312_v55  ;;  %v6893_v33 = vadd.f32 %v3899_v47, %v2334_v35  ;;  %v2314_v56 = vpop.f32.mrb[51].mxu0  ;;  %v2502_v59 = vpop.f32.mrb[45].mxu1  ;;  %v3798_v35 = vmul.f32 -1.442695, %v6771_v58 }
 0x27a   : > { %v6897_v48 = vadd.f32 %v2502_v59, %v2326_v1  ;;  %v3900_v37 = vpop.f32.mrb[46].mxu1  ;;  %v3799_v55 = vmul.f32 -1.442695, %v6776_v62  ;;  %v3804_v47 = vmul.f32 -1.442695, %v6786_v63 }
 0x27b   : > { %v6901_v30 = vadd.f32 %v2489_v4, %v2313_v31  ;;  %v2505_v11 = vpop.f32.mrb[47].mxu1  ;;  %v6903_v2 = vadd.f32 %v3900_v37, %v2337_v45  ;;  %4744 = vtanh.f32 %v6893_v33  ;;  %v3805_v37 = vmul.f32 -1.442695, %v6793_v24 }
 0x27c   : > { %v6905_v3 = vadd.f32 %v2505_v11, %v2329_v14  ;;  %4746 = vpow2.f32 %v3800_v10  ;;  %v3803_v11 = vmul.f32 -1.442695, %v6795_v27  ;;  %v3806_v24 = vmul.f32 -1.442695, %v6809_v7 }
 0x27d   : > { %4748 = vtanh.f32 %v6897_v48 }
 0x27e   : > { %4750 = vtanh.f32 %v6903_v2 }
 0x27f   : > { %v2317_v23 = vpop.f32.mrb[52].mxu0  ;;  %4752 = vpow2.f32 %v3798_v35  ;;  %v3810_v35 = vmul.f32 -1.442695, %v6830_v8 }
 0x280   : > { %v2318_v21 = vadd.f32 %v6763_v40, %v2317_v23  ;;  %v2319_v34 = vpop.f32.mrb[53].mxu0  ;;  %4754 = vtanh.f32 %v6877_v16 }
 0x281   : > { %v2320_v22 = vpop.f32.mrb[54].mxu0  ;;  %v3903_v60 = vpop.f32.mrb[48].mxu1  ;;  %4756 = vtanh.f32 %v6905_v3  ;;  %v3809_v34 = vmul.f32 -1.442695, %v6813_v12 }
 0x282   : > { %v6914_v32 = vadd.f32 %v3895_v17, %v2318_v21  ;;  %v2321_v13 = vadd.f32 %v6763_v40, %v2320_v22  ;;  %v6917_v18 = vadd.f32 %v3903_v60, %v2350_v61  ;;  %v2322_v4 = vpop.f32.mrb[55].mxu0  ;;  %v2518_v28 = vpop.f32.mrb[49].mxu1  ;;  %v3801_v40 = vmul.f32 -1.442695, %v6774_v5 }
 0x283   : > { %v6923_v51 = vadd.f32 %v2518_v28, %v2342_v29  ;;  %v3904_v6 = vpop.f32.mrb[50].mxu1  ;;  %4758 = vtanh.f32 %v6880_v26  ;;  %v3802_v5 = vmul.f32 -1.442695, %v6789_v38  ;;  %v3808_v38 = vmul.f32 -1.442695, %v6805_v46 }
 0x284   : > { %v6926_v17 = vadd.f32 %v3896_v42, %v2321_v13  ;;  %v2521_v54 = vpop.f32.mrb[51].mxu1  ;;  %v6929_v36 = vadd.f32 %v3904_v6, %v2353_v0  ;;  %4760 = vpow2.f32 %v3801_v40  ;;  %v3807_v4 = vmul.f32 -1.442695, %v6816_v39 }
 0x285   : > { %v6931_v1 = vadd.f32 %v2521_v54, %v2345_v43  ;;  %v4745_v20 = vpop.eup %4744  ;;  %4762 = vtanh.f32 %v6917_v18 }
 0x286   : > { %2953 = vrot.lane.b32.xlu0 %v4745_v20, %s5005_s6  ;;  %v4747_v9 = vpop.eup %4746  ;;  %4764 = vpow2.f32 %v3799_v55 }
 0x287   : > { %v4749_v58 = vpop.eup %4748  ;;  %v2643_v56 = vadd.f32 1.0, %v4747_v9  ;;  %4766 = vpow2.f32 %v3804_v47 }
 0x288   : > { %v4751_v42 = vpop.eup %4750 }
 0x289   : > { %2955 = vrot.lane.b32.xlu1 %v4751_v42, %s5005_s6  ;;  %v4753_v31 = vpop.eup %4752  ;;  %4768 = vrcp.f32 %v2643_v56 }
 0x28a   : > { %2949 = vrot.lane.b32.xlu0 %v4749_v58, %s5005_s6  ;;  %v4755_v59 = vpop.eup %4754  ;;  %v2641_v62 = vadd.f32 1.0, %v4753_v31  ;;  %4770 = vtanh.f32 %v6923_v51  ;;  %v3812_v58 = vmul.f32 -1.442695, %v6826_v57 }
 0x28b   : > { %v4757_v45 = vpop.eup %4756  ;;  %4772 = vpow2.f32 %v3802_v5 }
 0x28c   : > { %4774 = vtanh.f32 %v6929_v36 }
 0x28d   : > { %2951 = vrot.lane.b32.xlu1 %v4757_v45, %s5005_s6  ;;  %v4759_v63 = vpop.eup %4758  ;;  %4776 = vrcp.f32 %v2641_v62 }
 0x28e   : > { %2937 = vrot.lane.b32.xlu0 %v4755_v59, %s5005_s6  ;;  %4778 = vtanh.f32 %v6890_v25  ;;  %v4761_v14 = vpop.eup %4760 }
 0x28f   : > { %4780 = vpow2.f32 %v3805_v37  ;;  %v4763_v23 = vpop.eup %4762  ;;  %v2644_v21 = vadd.f32 1.0, %v4761_v14  ;;  %v3811_v37 = vmul.f32 -1.442695, %v6837_v53 }
 0x290   : > { %4782 = vtanh.f32 %v6931_v1  ;;  %v4765_v61 = vpop.eup %4764 }
 0x291   : > { %2939 = vrot.lane.b32.xlu1 %v4759_v63, %s5005_s6  ;;  %4784 = vpow2.f32 %v3808_v38  ;;  %v4767_v10 = vpop.eup %4766  ;;  %v2642_v12 = vadd.f32 1.0, %v4765_v61 }
 0x292   : > { %2961 = vrot.lane.b32.xlu0 %v4763_v23, %s5005_s6  ;;  %4786 = vtanh.f32 %v6914_v32  ;;  %v2647_v7 = vadd.f32 1.0, %v4767_v10 }
 0x293   : > { %v6958_v46 = vpop.eup %4768  ;;  %4788 = vpow2.f32 %v3803_v11 }
 0x294   : > { %v4771_v29 = vpop.eup %4770  ;;  %4790 = vtanh.f32 %v6901_v30 }
 0x295   : > { %v4773_v27 = vpop.eup %4772  ;;  %4792 = vpow2.f32 %v3806_v24 }
 0x296   : > { %2957 = vrot.lane.b32.xlu0 %v4771_v29, %s5005_s6  ;;  %v4775_v22 = vpop.eup %4774  ;;  %4794 = vrcp.f32 %v2644_v21  ;;  %v2645_v0 = vadd.f32 1.0, %v4773_v27  ;;  %v3814_v21 = vmul.f32 -1.442695, %v6850_v52  ;;  %v3813_v29 = vmul.f32 -1.442695, %v6834_v44 }
 0x297   : > { %v6963_v13 = vpop.eup %4776  ;;  %4796 = vpow2.f32 %v3809_v34  ;;  %2963 = vrot.lane.b32.xlu1 %v4775_v22, %s5005_s6  ;;  %v3816_v52 = vmul.f32 -1.442695, %v6846_v49 }
 0x298   : > { %v4779_v28 = vpop.eup %4778  ;;  %4798 = vtanh.f32 %v6926_v17 }
 0x299   : > { %v4781_v43 = vpop.eup %4780  ;;  %4800 = vrcp.f32 %v2647_v7 }
 0x29a   : > { %2941 = vrot.lane.b32.xlu0 %v4779_v28, %s5005_s6  ;;  %v4783_v6 = vpop.eup %4782  ;;  %4802 = vpow2.f32 %v3807_v4  ;;  %v2648_v39 = vadd.f32 1.0, %v4781_v43 }
 0x29b   : > { %v4785_v54 = vpop.eup %4784  ;;  %2959 = vrot.lane.b32.xlu1 %v4783_v6, %s5005_s6  ;;  %4804 = vrcp.f32 %v2642_v12 }
 0x29c   : > { %v4787_v20 = vpop.eup %4786  ;;  %4806 = vrcp.f32 %v2645_v0  ;;  %v2651_v47 = vadd.f32 1.0, %v4785_v54 }
 0x29d   : > { %v4789_v40 = vpop.eup %4788  ;;  %4808 = vpow2.f32 %v3810_v35 }
 0x29e   : > { %2945 = vrot.lane.b32.xlu0 %v4787_v20, %s5005_s6  ;;  %v4791_v55 = vpop.eup %4790  ;;  %4810 = vrcp.f32 %v2648_v39  ;;  %v2646_v59 = vadd.f32 1.0, %v4789_v40  ;;  %v3815_v39 = vmul.f32 -1.442695, %v6856_v15 }
 0x29f   : > { %v2898_v60 = vpop.permute.xlu0 %2897  ;;  %v4793_v31 = vpop.eup %4792  ;;  %2943 = vrot.lane.b32.xlu1 %v4791_v55, %s5005_s6  ;;  %4812 = vpow2.f32 %v3812_v58 }
 0x2a0   : > { %v3003_v42 = vmul.f32 %v6958_v46, %v2898_v60  ;;  %v6975_v56 = vpop.eup %4794  ;;  %4814 = vrcp.f32 %v2651_v47  ;;  %v2649_v63 = vadd.f32 1.0, %v4793_v31  ;;  %v3817_v31 = vmul.f32 -1.442695, %v6852_v19 }
 0x2a1   : > { %v2900_v8 = vpop.permute.xlu1 %2899  ;;  %v4797_v5 = vpop.eup %4796  ;;  %4816 = vrcp.f32 %v2646_v59 }
 0x2a2   : > { %3077 = vrot.lane.b32.xlu0 %v3003_v42, %s5006_s7  ;;  %v4799_v62 = vpop.eup %4798  ;;  %v3004_v38 = vmul.f32 %v6975_v56, %v2900_v8  ;;  %v2652_v11 = vadd.f32 1.0, %v4797_v5  ;;  %4818 = vrcp.f32 %v2649_v63 }
 0x2a3   : > { %v2894_v9 = vpop.permute.xlu0 %2893  ;;  %2947 = vrot.lane.b32.xlu1 %v4799_v62, %s5005_s6  ;;  %v6982_v14 = vpop.eup %4800  ;;  %4820 = vpow2.f32 %v3811_v37 }
 0x2a4   : > { %v3001_v57 = vmul.f32 %v6963_v13, %v2894_v9  ;;  %v4803_v61 = vpop.eup %4802  ;;  %4822 = vrcp.f32 %v2652_v11 }
 0x2a5   : > { %v2896_v23 = vpop.permute.xlu1 %2895  ;;  %v6986_v10 = vpop.eup %4804  ;;  %v2650_v7 = vadd.f32 1.0, %v4803_v61  ;;  %4824 = vpow2.f32 %v3814_v21 }
 0x2a6   : > { %3073 = vrot.lane.b32.xlu0 %v3001_v57, %s5006_s7  ;;  %v6989_v34 = vpop.eup %4806  ;;  %v3002_v27 = vmul.f32 %v6986_v10, %v2896_v23  ;;  %4826 = vpow2.f32 %v3813_v29  ;;  %v3818_v57 = vmul.f32 -1.442695, %v6868_v50  ;;  %v3819_v50 = vmul.f32 -1.442695, %v6871_v41 }
 0x2a7   : > { %3079 = vrot.lane.b32.xlu1 %v3004_v38, %s5006_s7  ;;  %v4809_v22 = vpop.eup %4808  ;;  %4828 = vrcp.f32 %v2650_v7 }
 0x2a8   : > { %v6996_v28 = vpop.eup %4810  ;;  %v2653_v44 = vadd.f32 1.0, %v4809_v22  ;;  %4830 = vpow2.f32 %v3816_v52 }
 0x2a9   : > { %v4813_v12 = vpop.eup %4812 }
 0x2aa   : > { %v7001_v0 = vpop.eup %4814  ;;  %v2655_v49 = vadd.f32 1.0, %v4813_v12  ;;  %4832 = vrcp.f32 %v2653_v44 }
 0x2ab   : > { %v2906_v45 = vpop.permute.xlu0 %2905  ;;  %3075 = vrot.lane.b32.xlu1 %v3002_v27, %s5006_s7  ;;  %v7005_v20 = vpop.eup %4816 }
 0x2ac   : > { %v3007_v24 = vmul.f32 %v6982_v14, %v2906_v45  ;;  %v7010_v40 = vpop.eup %4818  ;;  %4834 = vrcp.f32 %v2655_v49 }
 0x2ad   : > { %v2908_v60 = vpop.permute.xlu1 %2907  ;;  %v4821_v42 = vpop.eup %4820  ;;  %4836 = vpow2.f32 %v3815_v39 }
 0x2ae   : > { %3085 = vrot.lane.b32.xlu0 %v3007_v24, %s5006_s7  ;;  %v3008_v43 = vmul.f32 %v6996_v28, %v2908_v60  ;;  %v7014_v47 = vpop.eup %4822  ;;  %v2654_v45 = vadd.f32 1.0, %v4821_v42  ;;  %4838 = vpow2.f32 %v3817_v31 }
 0x2af   : > { %v2902_v53 = vpop.permute.xlu0 %2901  ;;  %v4825_v59 = vpop.eup %4824 }
 0x2b0   : > { %v3005_v4 = vmul.f32 %v6989_v34, %v2902_v53  ;;  %3087 = vrot.lane.b32.xlu1 %v3008_v43, %s5006_s7  ;;  %v4827_v5 = vpop.eup %4826  ;;  %v2657_v37 = vadd.f32 1.0, %v4825_v59  ;;  %4840 = vrcp.f32 %v2654_v45 }
 0x2b1   : > { %v7021_v62 = vpop.eup %4828  ;;  %v2656_v23 = vadd.f32 1.0, %v4827_v5  ;;  %4842 = vpow2.f32 %v3818_v57  ;;  %v3828_v57 = vmul.f32 -1.442695, %v6893_v33 }
 0x2b2   : > { %3081 = vrot.lane.b32.xlu0 %v3005_v4, %s5006_s7  ;;  %v4831_v38 = vpop.eup %4830  ;;  %4844 = vrcp.f32 %v2657_v37 }
 0x2b3   : > { %v2659_v21 = vadd.f32 1.0, %v4831_v38  ;;  %4846 = vrcp.f32 %v2656_v23  ;;  %v3826_v23 = vmul.f32 -1.442695, %v6897_v48  ;;  %v3827_v48 = vmul.f32 -1.442695, %v6905_v3 }
 0x2b4   : > { %v7025_v11 = vpop.eup %4832  ;;  %4848 = vpow2.f32 %v3819_v50  ;;  %v3829_v50 = vmul.f32 -1.442695, %v6903_v2  ;;  %v3830_v3 = vmul.f32 -1.442695, %v6923_v51  ;;  %v3824_v51 = vmul.f32 -1.442695, %v6914_v32 }
 0x2b5   : > { %4850 = vrcp.f32 %v2659_v21  ;;  %v3825_v32 = vmul.f32 -1.442695, %v6926_v17 }
 0x2b6   : > { %v7030_v53 = vpop.eup %4834 }
 0x2b7   : > { %v2914_v6 = vpop.permute.xlu0 %2913  ;;  %v4837_v29 = vpop.eup %4836 }
 0x2b8   : > { %v2904_v35 = vpop.permute.xlu1 %2903  ;;  %v3011_v54 = vmul.f32 %v7001_v0, %v2914_v6  ;;  %v2658_v7 = vadd.f32 1.0, %v4837_v29  ;;  %v4839_v41 = vpop.eup %4838 }
 0x2b9   : > { %v3006_v9 = vmul.f32 %v7005_v20, %v2904_v35  ;;  %v2660_v12 = vadd.f32 1.0, %v4839_v41  ;;  %v3832_v41 = vmul.f32 -1.442695, %v6917_v18  ;;  %v3831_v18 = vmul.f32 -1.442695, %v6931_v1 }
 0x2ba   : > { %3093 = vrot.lane.b32.xlu0 %v3011_v54, %s5006_s7  ;;  %v7035_v60 = vpop.eup %4840  ;;  %4852 = vrcp.f32 %v2658_v7 }
 0x2bb   : > { %v2910_v58 = vpop.permute.xlu0 %2909  ;;  %3083 = vrot.lane.b32.xlu1 %v3006_v9, %s5006_s7  ;;  %v4843_v4 = vpop.eup %4842  ;;  %4854 = vrcp.f32 %v2660_v12 }
 0x2bc   : > { %v3009_v55 = vmul.f32 %v7010_v40, %v2910_v58  ;;  %v2916_v8 = vpop.permute.xlu1 %2915  ;;  %v7038_v43 = vpop.eup %4844  ;;  %v2661_v35 = vadd.f32 1.0, %v4843_v4 }
 0x2bd   : > { %v3012_v15 = vmul.f32 %v7014_v47, %v2916_v8  ;;  %v7042_v49 = vpop.eup %4846 }
 0x2be   : > { %3089 = vrot.lane.b32.xlu0 %v3009_v55, %s5006_s7  ;;  %v4849_v9 = vpop.eup %4848  ;;  %4856 = vrcp.f32 %v2661_v35  ;;  %v3822_v35 = vmul.f32 -1.442695, %v6890_v25 }
 0x2bf   : > { %3095 = vrot.lane.b32.xlu1 %v3012_v15, %s5006_s7  ;;  %v7046_v42 = vpop.eup %4850  ;;  %v2662_v31 = vadd.f32 1.0, %v4849_v9 }
 0x2c0   : > { %v2912_v63 = vpop.permute.xlu1 %2911 }
 0x2c1   : > { %v3010_v19 = vmul.f32 %v7021_v62, %v2912_v63  ;;  %4858 = vrcp.f32 %v2662_v31 }
 0x2c2   : > { %4860 = vpow2.f32 %v3828_v57 }
 0x2c3   : > { %3091 = vrot.lane.b32.xlu1 %v3010_v19, %s5006_s7  ;;  %4862 = vpow2.f32 %v3826_v23 }
 0x2c4   : > { %v2918_v61 = vpop.permute.xlu0 %2917  ;;  %v7051_v15 = vpop.eup %4852  ;;  %4864 = vpow2.f32 %v3829_v50 }
 0x2c5   : > { %v3013_v24 = vmul.f32 %v7025_v11, %v2918_v61  ;;  %v7055_v5 = vpop.eup %4854 }
 0x2c6   : > { %v2920_v52 = vpop.permute.xlu1 %2919 }
 0x2c7   : > { %3097 = vrot.lane.b32.xlu0 %v3013_v24, %s5006_s7  ;;  %v3014_v44 = vmul.f32 %v7035_v60, %v2920_v52  ;;  %v3820_v24 = vmul.f32 -1.442695, %v6877_v16 }
 0x2c8   : > { %v2922_v27 = vpop.permute.xlu0 %2921  ;;  %v7059_v19 = vpop.eup %4856 }
 0x2c9   : > { %v3015_v22 = vmul.f32 %v7030_v53, %v2922_v27  ;;  %3099 = vrot.lane.b32.xlu1 %v3014_v44, %s5006_s7  ;;  %4866 = vpow2.f32 %v3820_v24  ;;  %v3821_v27 = vmul.f32 -1.442695, %v6880_v26  ;;  %v3833_v26 = vmul.f32 -1.442695, %v6929_v36 }
 0x2ca   : > { %4868 = vpow2.f32 %v3827_v48  ;;  %v3823_v36 = vmul.f32 -1.442695, %v6901_v30 }
 0x2cb   : > { %3101 = vrot.lane.b32.xlu0 %v3015_v22, %s5006_s7  ;;  %v7067_v33 = vpop.eup %4858  ;;  %4870 = vpow2.f32 %v3821_v27 }
 0x2cc   : > { %v4861_v2 = vpop.eup %4860 }
 0x2cd   : > { %v4863_v22 = vpop.eup %4862  ;;  %v2671_v7 = vadd.f32 1.0, %v4861_v2 }
 0x2ce   : > { %v4865_v16 = vpop.eup %4864  ;;  %v2669_v52 = vadd.f32 1.0, %v4863_v22 }
 0x2cf   : > { %4872 = vrcp.f32 %v2671_v7  ;;  %v2672_v12 = vadd.f32 1.0, %v4865_v16 }
 0x2d0   : > { %4874 = vpow2.f32 %v3832_v41 }
 0x2d1   : > { %4876 = vrcp.f32 %v2669_v52 }
 0x2d2   : > { %v2926_v6 = vpop.permute.xlu0 %2925  ;;  %4878 = vrcp.f32 %v2672_v12 }
 0x2d3   : > { %v3017_v54 = vmul.f32 %v7038_v43, %v2926_v6  ;;  %v2924_v39 = vpop.permute.xlu1 %2923  ;;  %v4867_v4 = vpop.eup %4866  ;;  %4880 = vpow2.f32 %v3830_v3 }
 0x2d4   : > { %v3016_v58 = vmul.f32 %v7042_v49, %v2924_v39  ;;  %v4869_v44 = vpop.eup %4868  ;;  %v2663_v6 = vadd.f32 1.0, %v4867_v4 }
 0x2d5   : > { %3105 = vrot.lane.b32.xlu0 %v3017_v54, %s5006_s7  ;;  %v4871_v54 = vpop.eup %4870  ;;  %v2670_v39 = vadd.f32 1.0, %v4869_v44 }
 0x2d6   : > { %v2930_v55 = vpop.permute.xlu0 %2929  ;;  %3103 = vrot.lane.b32.xlu1 %v3016_v58, %s5006_s7  ;;  %4882 = vrcp.f32 %v2663_v6  ;;  %v2664_v9 = vadd.f32 1.0, %v4871_v54 }
 0x2d7   : > { %v3019_v8 = vmul.f32 %v7046_v42, %v2930_v55  ;;  %v2928_v59 = vpop.permute.xlu1 %2927  ;;  %4884 = vpow2.f32 %v3833_v26 }
 0x2d8   : > { %v3018_v45 = vmul.f32 %v7051_v15, %v2928_v59  ;;  %4886 = vpow2.f32 %v3822_v35 }
 0x2d9   : > { %3109 = vrot.lane.b32.xlu0 %v3019_v8, %s5006_s7  ;;  %4888 = vrcp.f32 %v2670_v39  ;;  %v7079_v58 = vpop.eup %4872 }
 0x2da   : > { %3107 = vrot.lane.b32.xlu1 %v3018_v45, %s5006_s7  ;;  %v4875_v55 = vpop.eup %4874  ;;  %4890 = vpow2.f32 %v3831_v18 }
 0x2db   : > { %v2932_v63 = vpop.permute.xlu1 %2931  ;;  %4892 = vrcp.f32 %v2664_v9  ;;  %v7083_v31 = vpop.eup %4876  ;;  %v2675_v1 = vadd.f32 1.0, %v4875_v55 }
 0x2dc   : > { %v3020_v37 = vmul.f32 %v7055_v5, %v2932_v63  ;;  %4894 = vpow2.f32 %v3824_v51  ;;  %v7085_v59 = vpop.eup %4878 }
 0x2dd   : > { %v4881_v45 = vpop.eup %4880  ;;  %4896 = vpow2.f32 %v3823_v36 }
 0x2de   : > { %3111 = vrot.lane.b32.xlu1 %v3020_v37, %s5006_s7  ;;  %4898 = vrcp.f32 %v2675_v1  ;;  %v2673_v50 = vadd.f32 1.0, %v4881_v45 }
 0x2df   : > { %4900 = vpow2.f32 %v3825_v32 }
 0x2e0   : > { %v7089_v30 = vpop.eup %4882  ;;  %4902 = vrcp.f32 %v2673_v50 }
 0x2e1   : > { %v2934_v38 = vpop.permute.xlu0 %2933  ;;  %v4885_v23 = vpop.eup %4884 }
 0x2e2   : > { %v3021_v61 = vmul.f32 %v7059_v19, %v2934_v38 }
 0x2e3   : > { %v2936_v21 = vpop.permute.xlu1 %2935 }
 0x2e4   : > { %3113 = vrot.lane.b32.xlu0 %v3021_v61, %s5006_s7  ;;  %v3022_v29 = vmul.f32 %v7067_v33, %v2936_v21  ;;  %v4887_v61 = vpop.eup %4886 }
 0x2e5   : > { %v7095_v24 = vpop.eup %4888  ;;  %v2665_v7 = vadd.f32 1.0, %v4887_v61 }
 0x2e6   : > { %3115 = vrot.lane.b32.xlu1 %v3022_v29, %s5006_s7  ;;  %v2676_v29 = vadd.f32 1.0, %v4885_v23  ;;  %v4891_v2 = vpop.eup %4890  ;;  %v2787_v23 = vld [vmem:[%s7127_s19 + $0x10] sm:$0xff] }
 0x2e7   : > { %v7099_v22 = vpop.eup %4892  ;;  %v2674_v4 = vadd.f32 1.0, %v4891_v2 }
 0x2e8   : > { %v4895_v16 = vpop.eup %4894  ;;  %4904 = vrcp.f32 %v2676_v29  ;;  %v2823_v29 = vmul.f32 %v6958_v46, %v2787_v23 }
 0x2e9   : > { %v4897_v12 = vpop.eup %4896  ;;  %4906 = vrcp.f32 %v2665_v7  ;;  %v2667_v3 = vadd.f32 1.0, %v4895_v16 }
 0x2ea   : > { %v7105_v44 = vpop.eup %4898  ;;  %v2666_v6 = vadd.f32 1.0, %v4897_v12  ;;  %4908 = vrcp.f32 %v2674_v4 }
 0x2eb   : > { %v4901_v35 = vpop.eup %4900  ;;  %4910 = vrcp.f32 %v2667_v3  ;;  %v2791_v3 = vld [vmem:[%s7127_s19 + $0x30] sm:$0xff] }
 0x2ec   : > { %v7109_v39 = vpop.eup %4902  ;;  %4912 = vrcp.f32 %v2666_v6  ;;  %v2668_v18 = vadd.f32 1.0, %v4901_v35 }
 0x2ee   : > { %4914 = vrcp.f32 %v2668_v18 }
 0x2f2   : > { %v7115_v55 = vpop.eup %4904 }
 0x2f8   : > { %v2954_v25 = vpop.permute.xlu0 %2953 }
 0x2f9   : > { %v3031_v8 = vmul.f32 %v7079_v58, %v2954_v25 }
 0x2fb   : > { %3133 = vrot.lane.b32.xlu0 %v3031_v8, %s5006_s7  ;;  %v2956_v57 = vpop.permute.xlu1 %2955  ;;  %v7119_v8 = vpop.eup %4906 }
 0x2fc   : > { %v2950_v63 = vpop.permute.xlu0 %2949  ;;  %v3032_v37 = vmul.f32 %v7085_v59, %v2956_v57  ;;  %v7129_v32 = vpop.eup %4908 }
 0x2fd   : > { %v3029_v38 = vmul.f32 %v7083_v31, %v2950_v63 }
 0x2fe   : > { %3135 = vrot.lane.b32.xlu1 %v3032_v37, %s5006_s7  ;;  %v7133_v37 = vpop.eup %4910 }
 0x2ff   : > { %3129 = vrot.lane.b32.xlu0 %v3029_v38, %s5006_s7  ;;  %v2952_v17 = vpop.permute.xlu1 %2951  ;;  %v7138_v50 = vpop.eup %4912 }
 0x300   : > { %v2938_v21 = vpop.permute.xlu0 %2937  ;;  %v3030_v48 = vmul.f32 %v7095_v24, %v2952_v17  ;;  %v7151_v7 = vpop.eup %4914 }
 0x301   : > { %v3023_v27 = vmul.f32 %v7089_v30, %v2938_v21 }
 0x302   : > { %3131 = vrot.lane.b32.xlu1 %v3030_v48, %s5006_s7 }
 0x303   : > { %3117 = vrot.lane.b32.xlu0 %v3023_v27, %s5006_s7  ;;  %v2940_v41 = vpop.permute.xlu1 %2939  ;;  %v2785_v27 = vld [vmem:[%s7127_s19] sm:$0xff] }
 0x304   : > { %v3024_v52 = vmul.f32 %v7099_v22, %v2940_v41  ;;  %v2962_v26 = vpop.permute.xlu0 %2961  ;;  %v2788_v41 = vld [vmem:[%s7127_s19 + $0x18] sm:$0xff] }
 0x305   : > { %v3035_v54 = vmul.f32 %v7105_v44, %v2962_v26  ;;  %v2824_v6 = vmul.f32 %v6975_v56, %v2788_v41 }
 0x306   : > { %3119 = vrot.lane.b32.xlu1 %v3024_v52, %s5006_s7  ;;  %v2821_v52 = vmul.f32 %v6963_v13, %v2785_v27  ;;  %v2790_v27 = vld [vmem:[%s7127_s19 + $0x28] sm:$0xff] }
 0x307   : > { %3141 = vrot.lane.b32.xlu0 %v3035_v54, %s5006_s7  ;;  %v2786_v54 = vld [vmem:[%s7127_s19 + $0x8] sm:$0xff] }
 0x308   : > { %v2958_v9 = vpop.permute.xlu0 %2957 }
 0x309   : > { %v3033_v51 = vmul.f32 %v7109_v39, %v2958_v9  ;;  %v2964_v36 = vpop.permute.xlu1 %2963  ;;  %v2827_v9 = vmul.f32 %v6982_v14, %v2791_v3 }
 0x30a   : > { %v3036_v25 = vmul.f32 %v7115_v55, %v2964_v36  ;;  %v2789_v36 = vld [vmem:[%s7127_s19 + $0x20] sm:$0xff] }
 0x30b   : > { %3137 = vrot.lane.b32.xlu0 %v3033_v51, %s5006_s7 }
 0x30c   : > { %v2942_v1 = vpop.permute.xlu0 %2941  ;;  %3143 = vrot.lane.b32.xlu1 %v3036_v25, %s5006_s7  ;;  %v2822_v25 = vmul.f32 %v6986_v10, %v2786_v54 }
 0x30d   : > { %v3025_v45 = vmul.f32 %v7119_v8, %v2942_v1  ;;  %v2960_v57 = vpop.permute.xlu1 %2959 }
 0x30e   : > { %v3034_v63 = vmul.f32 %v7129_v32, %v2960_v57  ;;  %v2792_v57 = vld [vmem:[%s7127_s19 + $0x38] sm:$0xff] }
 0x30f   : > { %3121 = vrot.lane.b32.xlu0 %v3025_v45, %s5006_s7 }
 0x310   : > { %v2946_v38 = vpop.permute.xlu0 %2945  ;;  %3139 = vrot.lane.b32.xlu1 %v3034_v63, %s5006_s7 }
 0x311   : > { %v3027_v61 = vmul.f32 %v7133_v37, %v2946_v38  ;;  %v2944_v17 = vpop.permute.xlu1 %2943  ;;  %v2825_v38 = vmul.f32 %v6989_v34, %v2789_v36 }
 0x312   : > { %v3026_v21 = vmul.f32 %v7138_v50, %v2944_v17 }
 0x313   : > { %3125 = vrot.lane.b32.xlu0 %v3027_v61, %s5006_s7  ;;  %v2795_v61 = vld [vmem:[%s7127_s19 + $0x50] sm:$0xff] }
 0x314   : > { %v3078_v48 = vpop.permute.xlu0 %3077  ;;  %3123 = vrot.lane.b32.xlu1 %v3026_v21, %s5006_s7  ;;  %v2828_v21 = vmul.f32 %v6996_v28, %v2792_v57 }
 0x315   : > { %v3183_v2 = vadd.f32 %v3078_v48, %v2823_v29  ;;  %v2948_v16 = vpop.permute.xlu1 %2947 }
 0x316   : > { %v3028_v4 = vmul.f32 %v7151_v7, %v2948_v16  ;;  %v2831_v16 = vmul.f32 %v7001_v0, %v2795_v61 }
 0x317   : > { %3219 = vst.msk [vmem:[%s7147_s13 + $0x10] sm:$0xff] %vm1858_vm8, %v3183_v2  ;;  %4916 = vtanh.f32 %v3183_v2 }
 0x318   : > { %v3074_v12 = vpop.permute.xlu0 %3073  ;;  %3127 = vrot.lane.b32.xlu1 %v3028_v4, %s5006_s7  ;;  %v2793_v4 = vld [vmem:[%s7127_s19 + $0x40] sm:$0xff] }
 0x319   : > { %v3181_v26 = vadd.f32 %v3074_v12, %v2821_v52  ;;  %v3080_v35 = vpop.permute.xlu1 %3079  ;;  %v2826_v12 = vmul.f32 %v7005_v20, %v2790_v27 }
 0x31a   : > { %v3184_v18 = vadd.f32 %v3080_v35, %v2824_v6 }
 0x31b   : > { %3217 = vst.msk [vmem:[%s7147_s13] sm:$0xff] %vm1858_vm8, %v3181_v26  ;;  %4918 = vtanh.f32 %v3181_v26  ;;  %v2796_v26 = vld [vmem:[%s7127_s19 + $0x58] sm:$0xff] }
 0x31c   : > { %3220 = vst.msk [vmem:[%s7147_s13 + $0x18] sm:$0xff] %vm1858_vm8, %v3184_v18  ;;  %4920 = vtanh.f32 %v3184_v18  ;;  %v2829_v18 = vmul.f32 %v7010_v40, %v2793_v4  ;;  %v2832_v36 = vmul.f32 %v7014_v47, %v2796_v26  ;;  %v2798_v26 = vld [vmem:[%s7127_s19 + $0x68] sm:$0xff] }
 0x31d   : > { %v3076_v45 = vpop.permute.xlu1 %3075 }
 0x31e   : > { %v3182_v63 = vadd.f32 %v3076_v45, %v2822_v25  ;;  %v2794_v45 = vld [vmem:[%s7127_s19 + $0x48] sm:$0xff] }
 0x31f   : > { %v2830_v61 = vmul.f32 %v7021_v62, %v2794_v45 }
 0x320   : > { %v3086_v51 = vpop.permute.xlu0 %3085  ;;  %3218 = vst.msk [vmem:[%s7147_s13 + $0x8] sm:$0xff] %vm1858_vm8, %v3182_v63 }
 0x321   : > { %v3187_v1 = vadd.f32 %v3086_v51, %v2827_v9  ;;  %v4917_v17 = vpop.eup %4916 }
 0x322   : > { %v3088_v48 = vpop.permute.xlu1 %3087  ;;  %3329 = vrot.lane.b32.xlu0 %v4917_v17, %s5005_s6 }
 0x323   : > { %3223 = vst.msk [vmem:[%s7147_s13 + $0x30] sm:$0xff] %vm1858_vm8, %v3187_v1  ;;  %4922 = vtanh.f32 %v3187_v1  ;;  %v3188_v2 = vadd.f32 %v3088_v48, %v2828_v21 }
 0x324   : > { %v3082_v23 = vpop.permute.xlu0 %3081  ;;  %4924 = vtanh.f32 %v3182_v63 }
 0x325   : > { %v3185_v29 = vadd.f32 %v3082_v23, %v2825_v38  ;;  %v4919_v52 = vpop.eup %4918  ;;  %3224 = vst.msk [vmem:[%s7147_s13 + $0x38] sm:$0xff] %vm1858_vm8, %v3188_v2  ;;  %v2797_v38 = vld [vmem:[%s7127_s19 + $0x60] sm:$0xff] }
 0x326   : > { %3325 = vrot.lane.b32.xlu0 %v4919_v52, %s5005_s6  ;;  %v4921_v35 = vpop.eup %4920  ;;  %v2833_v21 = vmul.f32 %v7025_v11, %v2797_v38 }
 0x327   : > { %3221 = vst.msk [vmem:[%s7147_s13 + $0x20] sm:$0xff] %vm1858_vm8, %v3185_v29  ;;  %4926 = vtanh.f32 %v3185_v29  ;;  %3331 = vrot.lane.b32.xlu1 %v4921_v35, %s5005_s6 }
 0x328   : > { %4928 = vtanh.f32 %v3188_v2  ;;  %v2799_v2 = vld [vmem:[%s7127_s19 + $0x70] sm:$0xff] }
 0x329   : > { %v2835_v4 = vmul.f32 %v7030_v53, %v2799_v2 }
 0x32c   : > { %v3094_v41 = vpop.permute.xlu0 %3093 }
 0x32d   : > { %v3191_v3 = vadd.f32 %v3094_v41, %v2831_v16  ;;  %v3084_v6 = vpop.permute.xlu1 %3083  ;;  %v4923_v51 = vpop.eup %4922 }
 0x32e   : > { %v3186_v54 = vadd.f32 %v3084_v6, %v2826_v12  ;;  %3337 = vrot.lane.b32.xlu0 %v4923_v51, %s5005_s6  ;;  %v4925_v57 = vpop.eup %4924  ;;  %v2800_v51 = vld [vmem:[%s7127_s19 + $0x78] sm:$0xff] }
 0x32f   : > { %3227 = vst.msk [vmem:[%s7147_s13 + $0x50] sm:$0xff] %vm1858_vm8, %v3191_v3  ;;  %4930 = vtanh.f32 %v3191_v3  ;;  %3327 = vrot.lane.b32.xlu1 %v4925_v57, %s5005_s6  ;;  %v2803_v57 = vld [vmem:[%s7127_s19 + $0x90] sm:$0xff]  ;;  %v2836_v38 = vmul.f32 %v7042_v49, %v2800_v51 }
 0x330   : > { %v3090_v9 = vpop.permute.xlu0 %3089  ;;  %3222 = vst.msk [vmem:[%s7147_s13 + $0x28] sm:$0xff] %vm1858_vm8, %v3186_v54  ;;  %4932 = vtanh.f32 %v3186_v54  ;;  %v2801_v54 = vld [vmem:[%s7127_s19 + $0x80] sm:$0xff] }
 0x331   : > { %v3189_v25 = vadd.f32 %v3090_v9, %v2829_v18  ;;  %v3096_v1 = vpop.permute.xlu1 %3095  ;;  %v4927_v23 = vpop.eup %4926  ;;  %v2834_v18 = vmul.f32 %v7035_v60, %v2798_v26 }
 0x332   : > { %v3192_v63 = vadd.f32 %v3096_v1, %v2832_v36  ;;  %3333 = vrot.lane.b32.xlu0 %v4927_v23, %s5005_s6  ;;  %v4929_v29 = vpop.eup %4928 }
 0x333   : > { %3225 = vst.msk [vmem:[%s7147_s13 + $0x40] sm:$0xff] %vm1858_vm8, %v3189_v25  ;;  %4934 = vtanh.f32 %v3189_v25  ;;  %3339 = vrot.lane.b32.xlu1 %v4929_v29, %s5005_s6  ;;  %v2837_v25 = vmul.f32 %v7038_v43, %v2801_v54 }
 0x334   : > { %3228 = vst.msk [vmem:[%s7147_s13 + $0x58] sm:$0xff] %vm1858_vm8, %v3192_v63  ;;  %4936 = vtanh.f32 %v3192_v63 }
 0x335   : > { %v3092_v17 = vpop.permute.xlu1 %3091 }
 0x336   : > { %v3190_v48 = vadd.f32 %v3092_v17, %v2830_v61 }
 0x338   : > { %3226 = vst.msk [vmem:[%s7147_s13 + $0x48] sm:$0xff] %vm1858_vm8, %v3190_v48  ;;  %4938 = vtanh.f32 %v3190_v48 }
 0x339   : > { %v3098_v27 = vpop.permute.xlu0 %3097  ;;  %v4931_v41 = vpop.eup %4930 }
 0x33a   : > { %v3193_v16 = vadd.f32 %v3098_v27, %v2833_v21  ;;  %3345 = vrot.lane.b32.xlu0 %v4931_v41, %s5005_s6  ;;  %v4933_v52 = vpop.eup %4932  ;;  %v2839_v21 = vmul.f32 %v7046_v42, %v2803_v57  ;;  %v2802_v27 = vld [vmem:[%s7127_s19 + $0x88] sm:$0xff] }
 0x33b   : > { %3335 = vrot.lane.b32.xlu1 %v4933_v52, %s5005_s6  ;;  %v3100_v9 = vpop.permute.xlu1 %3099 }
 0x33c   : > { %3229 = vst.msk [vmem:[%s7147_s13 + $0x60] sm:$0xff] %vm1858_vm8, %v3193_v16  ;;  %4940 = vtanh.f32 %v3193_v16  ;;  %v3194_v36 = vadd.f32 %v3100_v9, %v2834_v18  ;;  %v2838_v16 = vmul.f32 %v7051_v15, %v2802_v27  ;;  %v2816_v27 = vld [vmem:[%s7127_s19 + $0xf8] sm:$0xff] }
 0x33d   : > { %v3102_v12 = vpop.permute.xlu0 %3101  ;;  %v4935_v6 = vpop.eup %4934 }
 0x33e   : > { %v3195_v3 = vadd.f32 %v3102_v12, %v2835_v4  ;;  %3341 = vrot.lane.b32.xlu0 %v4935_v6, %s5005_s6  ;;  %v4937_v35 = vpop.eup %4936  ;;  %3230 = vst.msk [vmem:[%s7147_s13 + $0x68] sm:$0xff] %vm1858_vm8, %v3194_v36  ;;  %v2804_v4 = vld [vmem:[%s7127_s19 + $0x98] sm:$0xff] }
 0x33f   : > { %3347 = vrot.lane.b32.xlu1 %v4937_v35, %s5005_s6  ;;  %v2840_v6 = vmul.f32 %v7055_v5, %v2804_v4 }
 0x340   : > { %3231 = vst.msk [vmem:[%s7147_s13 + $0x70] sm:$0xff] %vm1858_vm8, %v3195_v3  ;;  %4942 = vtanh.f32 %v3195_v3  ;;  %v2805_v3 = vld [vmem:[%s7127_s19 + $0xa0] sm:$0xff] }
 0x341   : > { %4944 = vtanh.f32 %v3194_v36  ;;  %v2841_v18 = vmul.f32 %v7059_v19, %v2805_v3  ;;  %v2814_v3 = vld [vmem:[%s7127_s19 + $0xe8] sm:$0xff] }
 0x342   : > { %v4939_v1 = vpop.eup %4938 }
 0x343   : > { %3343 = vrot.lane.b32.xlu1 %v4939_v1, %s5005_s6 }
 0x346   : > { %v4941_v63 = vpop.eup %4940 }
 0x347   : > { %v3106_v45 = vpop.permute.xlu0 %3105  ;;  %3349 = vrot.lane.b32.xlu0 %v4941_v63, %s5005_s6 }
 0x348   : > { %v3197_v23 = vadd.f32 %v3106_v45, %v2837_v25  ;;  %v3104_v61 = vpop.permute.xlu1 %3103  ;;  %v2806_v25 = vld [vmem:[%s7127_s19 + $0xa8] sm:$0xff] }
 0x349   : > { %v3196_v17 = vadd.f32 %v3104_v61, %v2836_v38  ;;  %v2842_v45 = vmul.f32 %v7067_v33, %v2806_v25 }
 0x34a   : > { %3233 = vst.msk [vmem:[%s7147_s13 + $0x80] sm:$0xff] %vm1858_vm8, %v3197_v23  ;;  %4946 = vtanh.f32 %v3197_v23  ;;  %v4943_v48 = vpop.eup %4942 }
 0x34b   : > { %v3110_v29 = vpop.permute.xlu0 %3109  ;;  %3232 = vst.msk [vmem:[%s7147_s13 + $0x78] sm:$0xff] %vm1858_vm8, %v3196_v17  ;;  %4948 = vtanh.f32 %v3196_v17  ;;  %3353 = vrot.lane.b32.xlu0 %v4943_v48, %s5005_s6  ;;  %v4945_v12 = vpop.eup %4944 }
 0x34c   : > { %v3199_v2 = vadd.f32 %v3110_v29, %v2839_v21  ;;  %v3108_v41 = vpop.permute.xlu1 %3107  ;;  %3351 = vrot.lane.b32.xlu1 %v4945_v12, %s5005_s6  ;;  %v2815_v21 = vld [vmem:[%s7127_s19 + $0xf0] sm:$0xff] }
 0x34d   : > { %v3198_v52 = vadd.f32 %v3108_v41, %v2838_v16  ;;  %v2851_v29 = vmul.f32 %v7079_v58, %v2815_v21  ;;  %v2852_v41 = vmul.f32 %v7085_v59, %v2816_v27 }
 0x34e   : > { %3235 = vst.msk [vmem:[%s7147_s13 + $0x90] sm:$0xff] %vm1858_vm8, %v3199_v2  ;;  %4950 = vtanh.f32 %v3199_v2  ;;  %v2813_v2 = vld [vmem:[%s7127_s19 + $0xe0] sm:$0xff] }
 0x34f   : > { %3234 = vst.msk [vmem:[%s7147_s13 + $0x88] sm:$0xff] %vm1858_vm8, %v3198_v52  ;;  %4952 = vtanh.f32 %v3198_v52  ;;  %v2849_v4 = vmul.f32 %v7083_v31, %v2813_v2  ;;  %v2820_v2 = vld [vmem:[%s7127_s19 + $0x118] sm:$0xff] }
 0x350   : > { %v3112_v35 = vpop.permute.xlu1 %3111 }
 0x351   : > { %v3200_v54 = vadd.f32 %v3112_v35, %v2840_v6  ;;  %v2807_v6 = vld [vmem:[%s7127_s19 + $0xb0] sm:$0xff] }
 0x353   : > { %3236 = vst.msk [vmem:[%s7147_s13 + $0x98] sm:$0xff] %vm1858_vm8, %v3200_v54  ;;  %4954 = vtanh.f32 %v3200_v54  ;;  %v2850_v54 = vmul.f32 %v7095_v24, %v2814_v3  ;;  %v2856_v3 = vmul.f32 %v7115_v55, %v2820_v2 }
 0x354   : > { %v4947_v26 = vpop.eup %4946 }
 0x355   : > { %3357 = vrot.lane.b32.xlu0 %v4947_v26, %s5005_s6  ;;  %v4949_v9 = vpop.eup %4948 }
 0x356   : > { %v3114_v51 = vpop.permute.xlu0 %3113  ;;  %3355 = vrot.lane.b32.xlu1 %v4949_v9, %s5005_s6 }
 0x357   : > { %v3201_v36 = vadd.f32 %v3114_v51, %v2841_v18  ;;  %v2843_v18 = vmul.f32 %v7089_v30, %v2807_v6 }
 0x358   : > { %v4951_v1 = vpop.eup %4950  ;;  %v3116_v57 = vpop.permute.xlu1 %3115 }
 0x359   : > { %3237 = vst.msk [vmem:[%s7147_s13 + $0xa0] sm:$0xff] %vm1858_vm8, %v3201_v36  ;;  %4956 = vtanh.f32 %v3201_v36  ;;  %3361 = vrot.lane.b32.xlu0 %v4951_v1, %s5005_s6  ;;  %v3202_v63 = vadd.f32 %v3116_v57, %v2842_v45  ;;  %v4953_v38 = vpop.eup %4952  ;;  %v2808_v36 = vld [vmem:[%s7127_s19 + $0xb8] sm:$0xff] }
 0x35a   : > { %3359 = vrot.lane.b32.xlu1 %v4953_v38, %s5005_s6  ;;  %v2844_v45 = vmul.f32 %v7099_v22, %v2808_v36  ;;  %v2811_v36 = vld [vmem:[%s7127_s19 + $0xd0] sm:$0xff] }
 0x35b   : > { %3238 = vst.msk [vmem:[%s7147_s13 + $0xa8] sm:$0xff] %vm1858_vm8, %v3202_v63  ;;  %4958 = vtanh.f32 %v3202_v63 }
 0x35d   : > { %v4955_v23 = vpop.eup %4954 }
 0x35e   : > { %3363 = vrot.lane.b32.xlu1 %v4955_v23, %s5005_s6  ;;  %v2819_v23 = vld [vmem:[%s7127_s19 + $0x110] sm:$0xff] }
 0x363   : > { %v4957_v61 = vpop.eup %4956 }
 0x364   : > { %3365 = vrot.lane.b32.xlu0 %v4957_v61, %s5005_s6  ;;  %v2855_v61 = vmul.f32 %v7105_v44, %v2819_v23 }
 0x365   : > { %v4959_v17 = vpop.eup %4958 }
 0x366   : > { %3367 = vrot.lane.b32.xlu1 %v4959_v17, %s5005_s6 }
 0x36d   : > { %v3134_v48 = vpop.permute.xlu0 %3133 }
 0x36e   : > { %v3211_v16 = vadd.f32 %v3134_v48, %v2851_v29  ;;  %v2817_v29 = vld [vmem:[%s7127_s19 + $0x100] sm:$0xff] }
 0x370   : > { %3247 = vst.msk [vmem:[%s7147_s13 + $0xf0] sm:$0xff] %vm1858_vm8, %v3211_v16  ;;  %4960 = vtanh.f32 %v3211_v16  ;;  %v3136_v52 = vpop.permute.xlu1 %3135  ;;  %v2853_v16 = vmul.f32 %v7109_v39, %v2817_v29 }
 0x371   : > { %v3130_v12 = vpop.permute.xlu0 %3129  ;;  %v3212_v26 = vadd.f32 %v3136_v52, %v2852_v41  ;;  %v2809_v52 = vld [vmem:[%s7127_s19 + $0xc0] sm:$0xff] }
 0x372   : > { %v3209_v35 = vadd.f32 %v3130_v12, %v2849_v4 }
 0x373   : > { %3248 = vst.msk [vmem:[%s7147_s13 + $0xf8] sm:$0xff] %vm1858_vm8, %v3212_v26  ;;  %4962 = vtanh.f32 %v3212_v26 }
 0x374   : > { %3245 = vst.msk [vmem:[%s7147_s13 + $0xe0] sm:$0xff] %vm1858_vm8, %v3209_v35  ;;  %4964 = vtanh.f32 %v3209_v35  ;;  %v3132_v9 = vpop.permute.xlu1 %3131  ;;  %v2818_v35 = vld [vmem:[%s7127_s19 + $0x108] sm:$0xff] }
 0x375   : > { %v3118_v51 = vpop.permute.xlu0 %3117  ;;  %v3210_v25 = vadd.f32 %v3132_v9, %v2850_v54 }
 0x376   : > { %v3203_v1 = vadd.f32 %v3118_v51, %v2843_v18  ;;  %v2845_v18 = vmul.f32 %v7119_v8, %v2809_v52 }
 0x377   : > { %3246 = vst.msk [vmem:[%s7147_s13 + $0xe8] sm:$0xff] %vm1858_vm8, %v3210_v25  ;;  %4966 = vtanh.f32 %v3210_v25  ;;  %v2854_v25 = vmul.f32 %v7129_v32, %v2818_v35 }
 0x378   : > { %3239 = vst.msk [vmem:[%s7147_s13 + $0xb0] sm:$0xff] %vm1858_vm8, %v3203_v1  ;;  %4968 = vtanh.f32 %v3203_v1  ;;  %v3120_v57 = vpop.permute.xlu1 %3119 }
 0x379   : > { %v3204_v38 = vadd.f32 %v3120_v57, %v2844_v45  ;;  %v3142_v21 = vpop.permute.xlu0 %3141  ;;  %v2810_v57 = vld [vmem:[%s7127_s19 + $0xc8] sm:$0xff] }
 0x37a   : > { %v4961_v63 = vpop.eup %4960  ;;  %v3215_v27 = vadd.f32 %v3142_v21, %v2855_v61 }
 0x37b   : > { %3385 = vrot.lane.b32.xlu0 %v4961_v63, %s5005_s6  ;;  %3240 = vst.msk [vmem:[%s7147_s13 + $0xb8] sm:$0xff] %vm1858_vm8, %v3204_v38  ;;  %4970 = vtanh.f32 %v3204_v38  ;;  %v2847_v38 = vmul.f32 %v7133_v37, %v2811_v36 }
 0x37c   : > { %3251 = vst.msk [vmem:[%s7147_s13 + $0x110] sm:$0xff] %vm1858_vm8, %v3215_v27  ;;  %4972 = vtanh.f32 %v3215_v27 }
 0x37d   : > { %v4963_v17 = vpop.eup %4962  ;;  %v3138_v4 = vpop.permute.xlu0 %3137 }
 0x37e   : > { %v4965_v48 = vpop.eup %4964  ;;  %3387 = vrot.lane.b32.xlu1 %v4963_v17, %s5005_s6  ;;  %v3213_v6 = vadd.f32 %v3138_v4, %v2853_v16  ;;  %v3144_v26 = vpop.permute.xlu1 %3143  ;;  %v2846_v17 = vmul.f32 %v7138_v50, %v2810_v57 }
 0x37f   : > { %3381 = vrot.lane.b32.xlu0 %v4965_v48, %s5005_s6  ;;  %v3216_v54 = vadd.f32 %v3144_v26, %v2856_v3  ;;  %v2812_v48 = vld [vmem:[%s7127_s19 + $0xd8] sm:$0xff] }
 0x380   : > { %3249 = vst.msk [vmem:[%s7147_s13 + $0x100] sm:$0xff] %vm1858_vm8, %v3213_v6  ;;  %4974 = vtanh.f32 %v3213_v6  ;;  %v2848_v16 = vmul.f32 %v7151_v7, %v2812_v48 }
 0x381   : > { %v4967_v41 = vpop.eup %4966  ;;  %v3122_v51 = vpop.permute.xlu0 %3121  ;;  %3252 = vst.msk [vmem:[%s7147_s13 + $0x118] sm:$0xff] %vm1858_vm8, %v3216_v54  ;;  %4976 = vtanh.f32 %v3216_v54 }
 0x382   : > { %v4969_v12 = vpop.eup %4968  ;;  %3383 = vrot.lane.b32.xlu1 %v4967_v41, %s5005_s6  ;;  %v3205_v1 = vadd.f32 %v3122_v51, %v2845_v18  ;;  %v3140_v45 = vpop.permute.xlu1 %3139 }
 0x383   : > { %3369 = vrot.lane.b32.xlu0 %v4969_v12, %s5005_s6  ;;  %v3214_v63 = vadd.f32 %v3140_v45, %v2854_v25 }
 0x384   : > { %3241 = vst.msk [vmem:[%s7147_s13 + $0xc0] sm:$0xff] %vm1858_vm8, %v3205_v1  ;;  %4978 = vtanh.f32 %v3205_v1 }
 0x385   : > { %v4971_v9 = vpop.eup %4970  ;;  %v3126_v23 = vpop.permute.xlu0 %3125  ;;  %3250 = vst.msk [vmem:[%s7147_s13 + $0x108] sm:$0xff] %vm1858_vm8, %v3214_v63  ;;  %4980 = vtanh.f32 %v3214_v63 }
 0x386   : > { %3371 = vrot.lane.b32.xlu1 %v4971_v9, %s5005_s6  ;;  %v4973_v61 = vpop.eup %4972  ;;  %v3207_v21 = vadd.f32 %v3126_v23, %v2847_v38  ;;  %v3124_v29 = vpop.permute.xlu1 %3123 }
 0x387   : > { %3393 = vrot.lane.b32.xlu0 %v4973_v61, %s5005_s6  ;;  %v3206_v27 = vadd.f32 %v3124_v29, %v2846_v17 }
 0x388   : > { %3243 = vst.msk [vmem:[%s7147_s13 + $0xd0] sm:$0xff] %vm1858_vm8, %v3207_v21  ;;  %4982 = vtanh.f32 %v3207_v21 }
 0x389   : > { %3242 = vst.msk [vmem:[%s7147_s13 + $0xc8] sm:$0xff] %vm1858_vm8, %v3206_v27  ;;  %4984 = vtanh.f32 %v3206_v27 }
 0x38a   : > { %v4975_v2 = vpop.eup %4974  ;;  %v3128_v41 = vpop.permute.xlu1 %3127 }
 0x38b   : > { %3389 = vrot.lane.b32.xlu0 %v4975_v2, %s5005_s6  ;;  %v4977_v4 = vpop.eup %4976  ;;  %v3208_v52 = vadd.f32 %v3128_v41, %v2848_v16 }
 0x38c   : > { %3395 = vrot.lane.b32.xlu1 %v4977_v4, %s5005_s6 }
 0x38d   : > { %3244 = vst.msk [vmem:[%s7147_s13 + $0xd8] sm:$0xff] %vm1858_vm8, %v3208_v52  ;;  %4986 = vtanh.f32 %v3208_v52 }
 0x38e   : > { %v4979_v12 = vpop.eup %4978 }
 0x38f   : > { %3373 = vrot.lane.b32.xlu0 %v4979_v12, %s5005_s6  ;;  %v4981_v3 = vpop.eup %4980 }
 0x390   : > { %3391 = vrot.lane.b32.xlu1 %v4981_v3, %s5005_s6 }
 0x392   : > { %v4983_v6 = vpop.eup %4982 }
 0x393   : > { %3377 = vrot.lane.b32.xlu0 %v4983_v6, %s5005_s6  ;;  %v4985_v26 = vpop.eup %4984 }
 0x394   : > { %v3330_v35 = vpop.permute.xlu0 %3329  ;;  %3375 = vrot.lane.b32.xlu1 %v4985_v26, %s5005_s6 }
 0x395   : > { %v3435_v54 = vmul.f32 %v6958_v46, %v3330_v35 }
 0x397   : > { %3509 = vrot.lane.b32.xlu0 %v3435_v54, %s5005_s6  ;;  %v4987_v18 = vpop.eup %4986 }
 0x398   : > { %v3326_v9 = vpop.permute.xlu0 %3325  ;;  %3379 = vrot.lane.b32.xlu1 %v4987_v18, %s5005_s6 }
 0x399   : > { %v3433_v51 = vmul.f32 %v6963_v13, %v3326_v9  ;;  %v3332_v36 = vpop.permute.xlu1 %3331 }
 0x39a   : > { %v3436_v25 = vmul.f32 %v6975_v56, %v3332_v36 }
 0x39b   : > { %3505 = vrot.lane.b32.xlu0 %v3433_v51, %s5005_s6 }
 0x39c   : > { %3511 = vrot.lane.b32.xlu1 %v3436_v25, %s5005_s6 }
 0x3a0   : > { %v3338_v1 = vpop.permute.xlu0 %3337 }
 0x3a1   : > { %v3439_v45 = vmul.f32 %v6982_v14, %v3338_v1  ;;  %v3328_v57 = vpop.permute.xlu1 %3327 }
 0x3a2   : > { %v3434_v46 = vmul.f32 %v6986_v10, %v3328_v57 }
 0x3a3   : > { %3517 = vrot.lane.b32.xlu0 %v3439_v45, %s5005_s6 }
 0x3a4   : > { %v3334_v63 = vpop.permute.xlu0 %3333  ;;  %3507 = vrot.lane.b32.xlu1 %v3434_v46, %s5005_s6 }
 0x3a5   : > { %v3437_v13 = vmul.f32 %v6989_v34, %v3334_v63  ;;  %v3340_v38 = vpop.permute.xlu1 %3339 }
 0x3a6   : > { %v3440_v56 = vmul.f32 %v6996_v28, %v3340_v38 }
 0x3a7   : > { %3513 = vrot.lane.b32.xlu0 %v3437_v13, %s5005_s6 }
 0x3a8   : > { %3519 = vrot.lane.b32.xlu1 %v3440_v56, %s5005_s6 }
 0x3ac   : > { %v3346_v23 = vpop.permute.xlu0 %3345 }
 0x3ad   : > { %v3443_v14 = vmul.f32 %v7001_v0, %v3346_v23  ;;  %v3336_v61 = vpop.permute.xlu1 %3335 }
 0x3ae   : > { %v3438_v10 = vmul.f32 %v7005_v20, %v3336_v61 }
 0x3af   : > { %3525 = vrot.lane.b32.xlu0 %v3443_v14, %s5005_s6 }
 0x3b0   : > { %v3342_v17 = vpop.permute.xlu0 %3341  ;;  %3515 = vrot.lane.b32.xlu1 %v3438_v10, %s5005_s6 }
 0x3b1   : > { %v3441_v34 = vmul.f32 %v7010_v40, %v3342_v17  ;;  %v3348_v21 = vpop.permute.xlu1 %3347 }
 0x3b2   : > { %v3444_v28 = vmul.f32 %v7014_v47, %v3348_v21 }
 0x3b3   : > { %3521 = vrot.lane.b32.xlu0 %v3441_v34, %s5005_s6 }
 0x3b4   : > { %3527 = vrot.lane.b32.xlu1 %v3444_v28, %s5005_s6 }
 0x3b5   : > { %v3344_v29 = vpop.permute.xlu1 %3343 }
 0x3b6   : > { %v3442_v0 = vmul.f32 %v7021_v62, %v3344_v29 }
 0x3b8   : > { %3523 = vrot.lane.b32.xlu1 %v3442_v0, %s5005_s6 }
 0x3b9   : > { %v3350_v48 = vpop.permute.xlu0 %3349 }
 0x3ba   : > { %v3445_v20 = vmul.f32 %v7025_v11, %v3350_v48 }
 0x3bc   : > { %3529 = vrot.lane.b32.xlu0 %v3445_v20, %s5005_s6 }
 0x3bd   : > { %v3354_v27 = vpop.permute.xlu0 %3353 }
 0x3be   : > { %v3447_v40 = vmul.f32 %v7030_v53, %v3354_v27  ;;  %v3352_v47 = vpop.permute.xlu1 %3351 }
 0x3bf   : > { %v3446_v2 = vmul.f32 %v7035_v60, %v3352_v47 }
 0x3c0   : > { %3533 = vrot.lane.b32.xlu0 %v3447_v40, %s5005_s6 }
 0x3c1   : > { %3531 = vrot.lane.b32.xlu1 %v3446_v2, %s5005_s6 }
 0x3c7   : > { %v3358_v16 = vpop.permute.xlu0 %3357 }
 0x3c8   : > { %v3449_v62 = vmul.f32 %v7038_v43, %v3358_v16  ;;  %v3356_v41 = vpop.permute.xlu1 %3355 }
 0x3c9   : > { %v3448_v11 = vmul.f32 %v7042_v49, %v3356_v41 }
 0x3ca   : > { %3537 = vrot.lane.b32.xlu0 %v3449_v62, %s5005_s6 }
 0x3cb   : > { %v3362_v4 = vpop.permute.xlu0 %3361  ;;  %3535 = vrot.lane.b32.xlu1 %v3448_v11, %s5005_s6 }
 0x3cc   : > { %v3451_v53 = vmul.f32 %v7046_v42, %v3362_v4  ;;  %v3360_v52 = vpop.permute.xlu1 %3359 }
 0x3cd   : > { %v3450_v60 = vmul.f32 %v7051_v15, %v3360_v52 }
 0x3ce   : > { %3541 = vrot.lane.b32.xlu0 %v3451_v53, %s5005_s6 }
 0x3cf   : > { %3539 = vrot.lane.b32.xlu1 %v3450_v60, %s5005_s6 }
 0x3d0   : > { %v3364_v12 = vpop.permute.xlu1 %3363 }
 0x3d1   : > { %v3452_v43 = vmul.f32 %v7055_v5, %v3364_v12 }
 0x3d3   : > { %3543 = vrot.lane.b32.xlu1 %v3452_v43, %s5005_s6 }
 0x3d6   : > { %v3366_v3 = vpop.permute.xlu0 %3365 }
 0x3d7   : > { %v3453_v49 = vmul.f32 %v7059_v19, %v3366_v3 }
 0x3d8   : > { %v3368_v6 = vpop.permute.xlu1 %3367 }
 0x3d9   : > { %3545 = vrot.lane.b32.xlu0 %v3453_v49, %s5005_s6  ;;  %v3454_v42 = vmul.f32 %v7067_v33, %v3368_v6 }
 0x3db   : > { %3547 = vrot.lane.b32.xlu1 %v3454_v42, %s5005_s6 }
 0x3ed   : > { %v3386_v26 = vpop.permute.xlu0 %3385 }
 0x3ee   : > { %v3463_v15 = vmul.f32 %v7079_v58, %v3386_v26 }
 0x3f0   : > { %3565 = vrot.lane.b32.xlu0 %v3463_v15, %s5005_s6  ;;  %v3388_v35 = vpop.permute.xlu1 %3387 }
 0x3f1   : > { %v3464_v5 = vmul.f32 %v7085_v59, %v3388_v35  ;;  %v3382_v54 = vpop.permute.xlu0 %3381 }
 0x3f2   : > { %v3461_v18 = vmul.f32 %v7083_v31, %v3382_v54 }
 0x3f3   : > { %3567 = vrot.lane.b32.xlu1 %v3464_v5, %s5005_s6 }
 0x3f4   : > { %v3384_v19 = vpop.permute.xlu1 %3383  ;;  %3561 = vrot.lane.b32.xlu0 %v3461_v18, %s5005_s6 }
 0x3f5   : > { %v3462_v33 = vmul.f32 %v7095_v24, %v3384_v19  ;;  %v3370_v9 = vpop.permute.xlu0 %3369 }
 0x3f6   : > { %v3455_v51 = vmul.f32 %v7089_v30, %v3370_v9 }
 0x3f7   : > { %3563 = vrot.lane.b32.xlu1 %v3462_v33, %s5005_s6 }
 0x3f8   : > { %v3372_v58 = vpop.permute.xlu1 %3371  ;;  %3549 = vrot.lane.b32.xlu0 %v3455_v51, %s5005_s6 }
 0x3f9   : > { %v3456_v59 = vmul.f32 %v7099_v22, %v3372_v58  ;;  %v3394_v31 = vpop.permute.xlu0 %3393 }
 0x3fb   : > { %3551 = vrot.lane.b32.xlu1 %v3456_v59, %s5005_s6 }
 0x3fd   : > { %v3390_v36 = vpop.permute.xlu0 %3389 }
 0x3fe   : > { %v3465_v25 = vmul.f32 %v7109_v39, %v3390_v36  ;;  %v3396_v1 = vpop.permute.xlu1 %3395 }
 0x400   : > { %3569 = vrot.lane.b32.xlu0 %v3465_v25, %s5005_s6 }
 0x401   : > { %v3374_v24 = vpop.permute.xlu0 %3373 }
 0x402   : > { %v3457_v30 = vmul.f32 %v7119_v8, %v3374_v24  ;;  %v3392_v45 = vpop.permute.xlu1 %3391 }
 0x403   : > { %v3466_v57 = vmul.f32 %v7129_v32, %v3392_v45  ;;  %v3467_v32 = vmul.f32 %v7105_v44, %v3394_v31 }
 0x404   : > { %3553 = vrot.lane.b32.xlu0 %v3457_v30, %s5005_s6 }
 0x405   : > { %v3378_v46 = vpop.permute.xlu0 %3377  ;;  %3571 = vrot.lane.b32.xlu1 %v3466_v57, %s5005_s6 }
 0x406   : > { %v3459_v22 = vmul.f32 %v7133_v37, %v3378_v46  ;;  %v3376_v63 = vpop.permute.xlu1 %3375 }
 0x407   : > { %v3458_v39 = vmul.f32 %v7138_v50, %v3376_v63  ;;  %v3468_v50 = vmul.f32 %v7115_v55, %v3396_v1 }
 0x408   : > { %3557 = vrot.lane.b32.xlu0 %v3459_v22, %s5005_s6 }
 0x409   : > { %v3510_v8 = vpop.permute.xlu0 %3509  ;;  %3555 = vrot.lane.b32.xlu1 %v3458_v39, %s5005_s6 }
 0x40a   : > { %3615 = vst.msk [vmem:[%s7399_s16 + $0x10] sm:$0xff] %vm1858_vm8, %v3510_v8  ;;  %v3380_v37 = vpop.permute.xlu1 %3379 }
 0x40b   : > { %v3460_v13 = vmul.f32 %v7151_v7, %v3380_v37 }
 0x40c   : > { %3573 = vrot.lane.b32.xlu0 %v3467_v32, %s5005_s6 }
 0x40d   : > { %v3506_v38 = vpop.permute.xlu0 %3505  ;;  %3559 = vrot.lane.b32.xlu1 %v3460_v13, %s5005_s6 }
 0x40e   : > { %3613 = vst.msk [vmem:[%s7399_s16] sm:$0xff] %vm1858_vm8, %v3506_v38  ;;  %v3512_v44 = vpop.permute.xlu1 %3511 }
 0x40f   : > { %3616 = vst.msk [vmem:[%s7399_s16 + $0x18] sm:$0xff] %vm1858_vm8, %v3512_v44 }
 0x411   : > { %3575 = vrot.lane.b32.xlu1 %v3468_v50, %s5005_s6 }
 0x415   : > { %v3518_v56 = vpop.permute.xlu0 %3517 }
 0x416   : > { %3619 = vst.msk [vmem:[%s7399_s16 + $0x30] sm:$0xff] %vm1858_vm8, %v3518_v56  ;;  %v3508_v7 = vpop.permute.xlu1 %3507 }
 0x417   : > { %3614 = vst.msk [vmem:[%s7399_s16 + $0x8] sm:$0xff] %vm1858_vm8, %v3508_v7 }
 0x419   : > { %v3514_v23 = vpop.permute.xlu0 %3513 }
 0x41a   : > { %3617 = vst.msk [vmem:[%s7399_s16 + $0x20] sm:$0xff] %vm1858_vm8, %v3514_v23  ;;  %v3520_v14 = vpop.permute.xlu1 %3519 }
 0x41b   : > { %3620 = vst.msk [vmem:[%s7399_s16 + $0x38] sm:$0xff] %vm1858_vm8, %v3520_v14 }
 0x421   : > { %v3526_v55 = vpop.permute.xlu0 %3525 }
 0x422   : > { %3623 = vst.msk [vmem:[%s7399_s16 + $0x50] sm:$0xff] %vm1858_vm8, %v3526_v55  ;;  %v3516_v61 = vpop.permute.xlu1 %3515 }
 0x423   : > { %3618 = vst.msk [vmem:[%s7399_s16 + $0x28] sm:$0xff] %vm1858_vm8, %v3516_v61 }
 0x425   : > { %v3522_v10 = vpop.permute.xlu0 %3521 }
 0x426   : > { %3621 = vst.msk [vmem:[%s7399_s16 + $0x40] sm:$0xff] %vm1858_vm8, %v3522_v10  ;;  %v3528_v17 = vpop.permute.xlu1 %3527 }
 0x427   : > { %3624 = vst.msk [vmem:[%s7399_s16 + $0x58] sm:$0xff] %vm1858_vm8, %v3528_v17 }
 0x42a   : > { %v3524_v34 = vpop.permute.xlu1 %3523 }
 0x42b   : > { %3622 = vst.msk [vmem:[%s7399_s16 + $0x48] sm:$0xff] %vm1858_vm8, %v3524_v34 }
 0x42e   : > { %v3530_v21 = vpop.permute.xlu0 %3529 }
 0x42f   : > { %3625 = vst.msk [vmem:[%s7399_s16 + $0x60] sm:$0xff] %vm1858_vm8, %v3530_v21 }
 0x432   : > { %v3534_v28 = vpop.permute.xlu0 %3533 }
 0x433   : > { %3627 = vst.msk [vmem:[%s7399_s16 + $0x70] sm:$0xff] %vm1858_vm8, %v3534_v28  ;;  %v3532_v29 = vpop.permute.xlu1 %3531 }
 0x434   : > { %3626 = vst.msk [vmem:[%s7399_s16 + $0x68] sm:$0xff] %vm1858_vm8, %v3532_v29 }
 0x43c   : > { %v3538_v0 = vpop.permute.xlu0 %3537 }
 0x43d   : > { %3629 = vst.msk [vmem:[%s7399_s16 + $0x80] sm:$0xff] %vm1858_vm8, %v3538_v0  ;;  %v3536_v48 = vpop.permute.xlu1 %3535 }
 0x43e   : > { %3628 = vst.msk [vmem:[%s7399_s16 + $0x78] sm:$0xff] %vm1858_vm8, %v3536_v48 }
 0x440   : > { %v3542_v20 = vpop.permute.xlu0 %3541 }
 0x441   : > { %3631 = vst.msk [vmem:[%s7399_s16 + $0x90] sm:$0xff] %vm1858_vm8, %v3542_v20  ;;  %v3540_v27 = vpop.permute.xlu1 %3539 }
 0x442   : > { %3630 = vst.msk [vmem:[%s7399_s16 + $0x88] sm:$0xff] %vm1858_vm8, %v3540_v27 }
 0x445   : > { %v3544_v40 = vpop.permute.xlu1 %3543 }
 0x446   : > { %3632 = vst.msk [vmem:[%s7399_s16 + $0x98] sm:$0xff] %vm1858_vm8, %v3544_v40 }
 0x44b   : > { %v3546_v47 = vpop.permute.xlu0 %3545 }
 0x44c   : > { %3633 = vst.msk [vmem:[%s7399_s16 + $0xa0] sm:$0xff] %vm1858_vm8, %v3546_v47 }
 0x44d   : > { %v3548_v2 = vpop.permute.xlu1 %3547 }
 0x44e   : > { %3634 = vst.msk [vmem:[%s7399_s16 + $0xa8] sm:$0xff] %vm1858_vm8, %v3548_v2 }
 0x462   : > { %v3566_v16 = vpop.permute.xlu0 %3565 }
 0x463   : > { %3643 = vst.msk [vmem:[%s7399_s16 + $0xf0] sm:$0xff] %vm1858_vm8, %v3566_v16 }
 0x465   : > { %v3568_v62 = vpop.permute.xlu1 %3567 }
 0x466   : > { %3644 = vst.msk [vmem:[%s7399_s16 + $0xf8] sm:$0xff] %vm1858_vm8, %v3568_v62  ;;  %v3562_v41 = vpop.permute.xlu0 %3561 }
 0x467   : > { %3641 = vst.msk [vmem:[%s7399_s16 + $0xe0] sm:$0xff] %vm1858_vm8, %v3562_v41 }
 0x469   : > { %v3564_v11 = vpop.permute.xlu1 %3563 }
 0x46a   : > { %3642 = vst.msk [vmem:[%s7399_s16 + $0xe8] sm:$0xff] %vm1858_vm8, %v3564_v11  ;;  %v3550_v4 = vpop.permute.xlu0 %3549 }
 0x46b   : > { %3635 = vst.msk [vmem:[%s7399_s16 + $0xb0] sm:$0xff] %vm1858_vm8, %v3550_v4 }
 0x46d   : > { %v3552_v53 = vpop.permute.xlu1 %3551 }
 0x46e   : > { %3636 = vst.msk [vmem:[%s7399_s16 + $0xb8] sm:$0xff] %vm1858_vm8, %v3552_v53 }
 0x472   : > { %v3570_v52 = vpop.permute.xlu0 %3569 }
 0x473   : > { %3645 = vst.msk [vmem:[%s7399_s16 + $0x100] sm:$0xff] %vm1858_vm8, %v3570_v52 }
 0x476   : > { %v3554_v60 = vpop.permute.xlu0 %3553 }
 0x477   : > { %3637 = vst.msk [vmem:[%s7399_s16 + $0xc0] sm:$0xff] %vm1858_vm8, %v3554_v60  ;;  %v3572_v12 = vpop.permute.xlu1 %3571 }
 0x478   : > { %3646 = vst.msk [vmem:[%s7399_s16 + $0x108] sm:$0xff] %vm1858_vm8, %v3572_v12 }
 0x47a   : > { %v3558_v43 = vpop.permute.xlu0 %3557 }
 0x47b   : > { %3639 = vst.msk [vmem:[%s7399_s16 + $0xd0] sm:$0xff] %vm1858_vm8, %v3558_v43  ;;  %v3556_v3 = vpop.permute.xlu1 %3555 }
 0x47c   : > { %3638 = vst.msk [vmem:[%s7399_s16 + $0xc8] sm:$0xff] %vm1858_vm8, %v3556_v3 }
 0x47e   : > { %v3574_v49 = vpop.permute.xlu0 %3573 }
 0x47f   : > { %3647 = vst.msk [vmem:[%s7399_s16 + $0x110] sm:$0xff] %vm1858_vm8, %v3574_v49  ;;  %v3560_v6 = vpop.permute.xlu1 %3559 }
 0x480   : > { %3640 = vst.msk [vmem:[%s7399_s16 + $0xd8] sm:$0xff] %vm1858_vm8, %v3560_v6 }
 0x483   : > { %v3576_v42 = vpop.permute.xlu1 %3575 }
 0x484   : > { %3648 = vst.msk [vmem:[%s7399_s16 + $0x118] sm:$0xff] %vm1858_vm8, %v3576_v42 }
 0x485 PF: > { %s16_s18 = sadd.s32 1, %s4994_s18  }
 0x486   : > { %p13_p4 = scmp.ge.s32.totalorder %s16_s18, 4  }
 0x488   :  { %15 = sbr.rel (!%p13_p4) target bundleno = 1 (0x1), region = 81 }

</bundles_post_ra>
